<compile_context>
chip_gen: v7x
topology: tpu7x:2x2x1
jax: 0.10.0
libtpu: 0.0.40
codegen_flags: <defaults>
</compile_context>

<pallas_src>
import functools

import jax
import jax.numpy as jnp
from jax.experimental import pallas as pl
from jax.experimental.pallas import tpu as pltpu


def _mha_kernel(x_ref, wqkv_ref, wo_ref, bo_ref, o_ref, *,
                num_heads, head_size):
    # x_ref:    (1, T, C)     one batch element (f32)
    # wqkv_ref: (C, 3*HH)     fused [Wq*scale | Wk | Wv] (bf16)
    # wo_ref:   (HH, C)       output projection weight (bf16)
    # bo_ref:   (1, C)        output projection bias (f32)
    # o_ref:    (1, T, C)
    T = x_ref.shape[1]
    C = x_ref.shape[2]
    HH = num_heads * head_size

    x = x_ref[0].astype(jnp.bfloat16)                               # (T, C)

    # Single fused Q/K/V projection (scale already folded into Q weights).
    qkv = jnp.dot(x, wqkv_ref[...], preferred_element_type=jnp.float32)
    qkv = qkv.astype(jnp.bfloat16)                                  # (T, 3*HH)
    q = qkv[:, 0:HH]           # these slices are 128-lane aligned (HH = 384)
    k = qkv[:, HH:2 * HH]
    v = qkv[:, 2 * HH:3 * HH]

    # Causal mask built once from 2-D iotas (TPU-friendly). Large finite
    # negative instead of -inf (future-proof against fully-masked rows).
    row = jax.lax.broadcasted_iota(jnp.int32, (T, T), 0)
    col = jax.lax.broadcasted_iota(jnp.int32, (T, T), 1)
    causal = row >= col
    neg = jnp.float32(-1e30)

    acc = jnp.zeros((T, C), jnp.float32)
    for h in range(num_heads):                    # static, fully unrolled
        lo = h * head_size
        hi = lo + head_size
        qh = q[:, lo:hi]                                            # (T, hs)
        kh = k[:, lo:hi]
        vh = v[:, lo:hi]

        # q @ k^T without an explicit transpose of k.
        s = jax.lax.dot_general(
            qh, kh, dimension_numbers=(((1,), (1,)), ((), ())),
            preferred_element_type=jnp.float32)                     # (T, T)
        s = jnp.where(causal, s, neg)
        m = jnp.max(s, axis=-1, keepdims=True)
        p = jnp.exp(s - m)
        denom = jnp.sum(p, axis=-1, keepdims=True)
        # attention dropout: eval mode == identity

        head = jnp.dot(p.astype(jnp.bfloat16), vh,
                       preferred_element_type=jnp.float32)          # (T, hs)
        # Normalize after the matmul; reciprocal goes to the EUP slot.
        head = head * pl.reciprocal(denom, approx=True)

        # Per-head output projection accumulation (replaces concat + cat@Wo).
        acc = acc + jnp.dot(head.astype(jnp.bfloat16), wo_ref[lo:hi, :],
                            preferred_element_type=jnp.float32)     # (T, C)

    out = acc + bo_ref[...]                 # bias broadcast-added exactly once
    # output dropout: eval mode == identity
    o_ref[0] = out.astype(o_ref.dtype)


def _mha_pallas_call(B, T, C, HH, dtype, *, num_heads, head_size):
    kernel = functools.partial(
        _mha_kernel, num_heads=num_heads, head_size=head_size)

    flops = B * (2 * T * C * 3 * HH                          # fused QKV proj
                 + num_heads * 4 * T * T * head_size         # q@k^T and p@v
                 + 2 * T * HH * C)                           # output proj
    bytes_accessed = (2 * B * T * C * 4          # x in + out (f32)
                      + C * 3 * HH * 2           # fused qkv weight (bf16)
                      + HH * C * 2               # wo (bf16)
                      + C * 4)                   # bias (f32)
    cost = pl.CostEstimate(
        flops=int(flops),
        transcendentals=int(B * num_heads * T * T),
        bytes_accessed=int(bytes_accessed),
    )

    return pl.pallas_call(
        kernel,
        out_shape=jax.ShapeDtypeStruct((B, T, C), dtype),
        grid_spec=pltpu.PrefetchScalarGridSpec(
            num_scalar_prefetch=0,
            grid=(B,),
            in_specs=[
                pl.BlockSpec((1, T, C), lambda b: (b, 0, 0)),        # x
                pl.BlockSpec((C, 3 * HH), lambda b: (0, 0)),         # wqkv
                pl.BlockSpec((HH, C), lambda b: (0, 0)),             # wo
                pl.BlockSpec((1, C), lambda b: (0, 0)),              # bias
            ],
            out_specs=pl.BlockSpec((1, T, C), lambda b: (b, 0, 0)),
        ),
        compiler_params=pltpu.CompilerParams(
            dimension_semantics=("parallel",),   # B shards across v7x's 2 TCs
            vmem_limit_bytes=32 * 1024 * 1024,
        ),
        cost_estimate=cost,
    )


def multi_head_attention(x, wq, wk, wv, wo, bo, *, num_heads, head_size):
    """x: (B, T, C).  wq/wk/wv: (C, H*hs).  wo: (H*hs, C).  bo: (C,)."""
    B, T, C = x.shape
    HH = num_heads * head_size
    assert wq.shape == (C, HH) and wk.shape == (C, HH) and wv.shape == (C, HH)
    assert wo.shape == (HH, C) and bo.shape == (C,)

    scale = head_size ** -0.5
    # Fuse Q/K/V weights (fold the attention scale into Wq) and cast to bf16.
    wqkv = jnp.concatenate([wq * scale, wk, wv], axis=1).astype(jnp.bfloat16)
    wo_bf16 = wo.astype(jnp.bfloat16)
    bo2d = bo.reshape(1, C).astype(jnp.float32)

    fn = _mha_pallas_call(B, T, C, HH, x.dtype,
                          num_heads=num_heads, head_size=head_size)
    return fn(x, wqkv, wo_bf16, bo2d)


def _mha_reference(x, wq, wk, wv, wo, bo, *, num_heads, head_size):
    """Pure-JAX f32 reference matching the PyTorch forward (eval dropout)."""
    B, T, C = x.shape
    HH = num_heads * head_size
    q = x @ wq
    k = x @ wk
    v = x @ wv

    def split(a):
        return a.reshape(B, T, num_heads, head_size).transpose(0, 2, 1, 3)

    qh, kh, vh = split(q), split(k), split(v)
    s = jnp.einsum('bhtd,bhsd->bhts', qh, kh) * (head_size ** -0.5)
    mask = jnp.tril(jnp.ones((T, T), dtype=bool))
    s = jnp.where(mask, s, -jnp.inf)
    attn = jax.nn.softmax(s, axis=-1)
    out = jnp.einsum('bhts,bhsd->bhtd', attn, vh)              # (B, H, T, hs)
    cat = out.transpose(0, 2, 1, 3).reshape(B, T, HH)
    return cat @ wo + bo


def _init_params(key, n_embd, num_heads, head_size):
    """Deterministic init mimicking nn.Linear's U(-1/sqrt(fan_in), ...)."""
    HH = num_heads * head_size
    kq, kk, kv, kw, kb = jax.random.split(key, 5)
    bqkv = 1.0 / (n_embd ** 0.5)     # nn.Linear(n_embd, head_size) bound
    bproj = 1.0 / (HH ** 0.5)        # nn.Linear(HH, n_embd) bound
    wq = jax.random.uniform(kq, (n_embd, HH), jnp.float32, -bqkv, bqkv)
    wk = jax.random.uniform(kk, (n_embd, HH), jnp.float32, -bqkv, bqkv)
    wv = jax.random.uniform(kv, (n_embd, HH), jnp.float32, -bqkv, bqkv)
    wo = jax.random.uniform(kw, (HH, n_embd), jnp.float32, -bproj, bproj)
    bo = jax.random.uniform(kb, (n_embd,), jnp.float32, -bproj, bproj)
    return wq, wk, wv, wo, bo


if __name__ == "__main__":
    # Small shapes consistent with the module: block_size=64, n_embd=384,
    # 6 heads of size 64 (num_heads * head_size == n_embd).
    B, T, n_embd = 2, 64, 384
    num_heads, head_size = 6, 64

    key = jax.random.PRNGKey(0)
    kx, kp = jax.random.split(key)
    x = jax.random.normal(kx, (B, T, n_embd), jnp.float32)
    wq, wk, wv, wo, bo = _init_params(kp, n_embd, num_heads, head_size)

    out = multi_head_attention(x, wq, wk, wv, wo, bo,
                               num_heads=num_heads, head_size=head_size)
    out = jax.block_until_ready(out)
    assert out.shape == (B, T, n_embd)

    ref = _mha_reference(x, wq, wk, wv, wo, bo,
                         num_heads=num_heads, head_size=head_size)
    assert jnp.allclose(out, ref, atol=2e-2, rtol=2e-2), "mismatch vs reference"

    print("KERNEL_OK")
</pallas_src>

<mosaic_0001>
module attributes {stable_mosaic.version = 11 : i64} {
  func.func @_mha_kernel(%arg0: i32, %arg1: memref<1x64x384xf32, #tpu.memory_space<vmem>>, %arg2: memref<384x1152xbf16, #tpu.memory_space<vmem>>, %arg3: memref<384x384xbf16, #tpu.memory_space<vmem>>, %arg4: memref<1x384xf32, #tpu.memory_space<vmem>>, %arg5: memref<1x64x384xf32, #tpu.memory_space<vmem>>) attributes {dimension_semantics = [#tpu.dimension_semantics<parallel>], iteration_bounds = array<i64: 2>, scalar_prefetch = 0 : i64, scratch_operands = 0 : i64, tpu.core_type = #tpu.core_type<tc>, window_params = [{transform_indices = @transform_0, window_bounds = array<i64: 1, 64, 384>}, {pipeline_mode = #tpu.pipeline_mode<synchronous>, transform_indices = @transform_1, window_bounds = array<i64: 384, 1152>}, {pipeline_mode = #tpu.pipeline_mode<synchronous>, transform_indices = @transform_2, window_bounds = array<i64: 384, 384>}, {pipeline_mode = #tpu.pipeline_mode<synchronous>, transform_indices = @transform_3, window_bounds = array<i64: 1, 384>}, {transform_indices = @transform_4, window_bounds = array<i64: 1, 64, 384>}]} {
    %c0 = arith.constant 0 : index
    %c0_0 = arith.constant 0 : index
    %c0_1 = arith.constant 0 : index
    %0 = vector.load %arg1[%c0, %c0_0, %c0_1] : memref<1x64x384xf32, #tpu.memory_space<vmem>>, vector<1x64x384xf32>
    %1 = vector.shape_cast %0 : vector<1x64x384xf32> to vector<64x384xf32>
    %2 = arith.truncf %1 : vector<64x384xf32> to vector<64x384xbf16>
    %c0_2 = arith.constant 0 : index
    %c0_3 = arith.constant 0 : index
    %3 = vector.load %arg2[%c0_2, %c0_3] : memref<384x1152xbf16, #tpu.memory_space<vmem>>, vector<384x1152xbf16>
    %cst = arith.constant dense<0.000000e+00> : vector<64x1152xf32>
    %4 = tpu.matmul %2, %3, %cst {dimension_numbers = #tpu.dot_dimension_numbers<[1], [0], [0], [1], [0, 0, 1, 1], [], []>} : vector<64x384xbf16>, vector<384x1152xbf16>, vector<64x1152xf32> -> vector<64x1152xf32>
    %5 = arith.truncf %4 : vector<64x1152xf32> to vector<64x1152xbf16>
    %6 = vector.extract_strided_slice %5 {offsets = [0, 0], sizes = [64, 384], strides = [1, 1]} : vector<64x1152xbf16> to vector<64x384xbf16>
    %7 = vector.extract_strided_slice %5 {offsets = [0, 384], sizes = [64, 384], strides = [1, 1]} : vector<64x1152xbf16> to vector<64x384xbf16>
    %8 = vector.extract_strided_slice %5 {offsets = [0, 768], sizes = [64, 384], strides = [1, 1]} : vector<64x1152xbf16> to vector<64x384xbf16>
    %9 = tpu.iota {dimensions = array<i32: 0>} : vector<64x64xi32>
    %10 = tpu.iota {dimensions = array<i32: 1>} : vector<64x64xi32>
    %11 = arith.cmpi sge, %9, %10 : vector<64x64xi32>
    %cst_4 = arith.constant 0.000000e+00 : f32
    %12 = vector.broadcast %cst_4 : f32 to vector<64x384xf32>
    %13 = vector.extract_strided_slice %6 {offsets = [0, 0], sizes = [64, 64], strides = [1, 1]} : vector<64x384xbf16> to vector<64x64xbf16>
    %14 = vector.extract_strided_slice %7 {offsets = [0, 0], sizes = [64, 64], strides = [1, 1]} : vector<64x384xbf16> to vector<64x64xbf16>
    %15 = vector.extract_strided_slice %8 {offsets = [0, 0], sizes = [64, 64], strides = [1, 1]} : vector<64x384xbf16> to vector<64x64xbf16>
    %cst_5 = arith.constant dense<0.000000e+00> : vector<64x64xf32>
    %16 = tpu.matmul %13, %14, %cst_5 {dimension_numbers = #tpu.dot_dimension_numbers<[1], [1], [0], [0], [0, 0, 1, 0], [], []>} : vector<64x64xbf16>, vector<64x64xbf16>, vector<64x64xf32> -> vector<64x64xf32>
    %cst_6 = arith.constant -1.000000e+30 : f32
    %17 = vector.broadcast %cst_6 : f32 to vector<64x64xf32>
    %18 = arith.select %11, %16, %17 : vector<64x64xi1>, vector<64x64xf32>
    %cst_7 = arith.constant dense<0xFF800000> : vector<64xf32>
    %19 = vector.multi_reduction <maximumf>, %18, %cst_7 [1] : vector<64x64xf32> to vector<64xf32>
    %20 = vector.shape_cast %19 : vector<64xf32> to vector<64x1xf32>
    %21 = vector.broadcast %20 : vector<64x1xf32> to vector<64x64xf32>
    %22 = arith.subf %18, %21 : vector<64x64xf32>
    %23 = math.exp %22 : vector<64x64xf32>
    %cst_8 = arith.constant dense<0.000000e+00> : vector<64xf32>
    %24 = vector.multi_reduction <add>, %23, %cst_8 [1] : vector<64x64xf32> to vector<64xf32>
    %25 = vector.shape_cast %24 : vector<64xf32> to vector<64x1xf32>
    %26 = arith.truncf %23 : vector<64x64xf32> to vector<64x64xbf16>
    %cst_9 = arith.constant dense<0.000000e+00> : vector<64x64xf32>
    %27 = tpu.matmul %26, %15, %cst_9 {dimension_numbers = #tpu.dot_dimension_numbers<[1], [0], [0], [1], [0, 0, 1, 1], [], []>} : vector<64x64xbf16>, vector<64x64xbf16>, vector<64x64xf32> -> vector<64x64xf32>
    %28 = tpu.reciprocal %25 {approx = true} : vector<64x1xf32> -> vector<64x1xf32>
    %29 = vector.broadcast %28 : vector<64x1xf32> to vector<64x64xf32>
    %30 = arith.mulf %27, %29 : vector<64x64xf32>
    %31 = arith.truncf %30 : vector<64x64xf32> to vector<64x64xbf16>
    %c0_10 = arith.constant 0 : index
    %c0_11 = arith.constant 0 : index
    %32 = vector.load %arg3[%c0_10, %c0_11] : memref<384x384xbf16, #tpu.memory_space<vmem>>, vector<64x384xbf16>
    %cst_12 = arith.constant dense<0.000000e+00> : vector<64x384xf32>
    %33 = tpu.matmul %31, %32, %cst_12 {dimension_numbers = #tpu.dot_dimension_numbers<[1], [0], [0], [1], [0, 0, 1, 1], [], []>} : vector<64x64xbf16>, vector<64x384xbf16>, vector<64x384xf32> -> vector<64x384xf32>
    %34 = arith.addf %12, %33 : vector<64x384xf32>
    %35 = vector.extract_strided_slice %6 {offsets = [0, 64], sizes = [64, 64], strides = [1, 1]} : vector<64x384xbf16> to vector<64x64xbf16>
    %36 = vector.extract_strided_slice %7 {offsets = [0, 64], sizes = [64, 64], strides = [1, 1]} : vector<64x384xbf16> to vector<64x64xbf16>
    %37 = vector.extract_strided_slice %8 {offsets = [0, 64], sizes = [64, 64], strides = [1, 1]} : vector<64x384xbf16> to vector<64x64xbf16>
    %cst_13 = arith.constant dense<0.000000e+00> : vector<64x64xf32>
    %38 = tpu.matmul %35, %36, %cst_13 {dimension_numbers = #tpu.dot_dimension_numbers<[1], [1], [0], [0], [0, 0, 1, 0], [], []>} : vector<64x64xbf16>, vector<64x64xbf16>, vector<64x64xf32> -> vector<64x64xf32>
    %cst_14 = arith.constant -1.000000e+30 : f32
    %39 = vector.broadcast %cst_14 : f32 to vector<64x64xf32>
    %40 = arith.select %11, %38, %39 : vector<64x64xi1>, vector<64x64xf32>
    %cst_15 = arith.constant dense<0xFF800000> : vector<64xf32>
    %41 = vector.multi_reduction <maximumf>, %40, %cst_15 [1] : vector<64x64xf32> to vector<64xf32>
    %42 = vector.shape_cast %41 : vector<64xf32> to vector<64x1xf32>
    %43 = vector.broadcast %42 : vector<64x1xf32> to vector<64x64xf32>
    %44 = arith.subf %40, %43 : vector<64x64xf32>
    %45 = math.exp %44 : vector<64x64xf32>
    %cst_16 = arith.constant dense<0.000000e+00> : vector<64xf32>
    %46 = vector.multi_reduction <add>, %45, %cst_16 [1] : vector<64x64xf32> to vector<64xf32>
    %47 = vector.shape_cast %46 : vector<64xf32> to vector<64x1xf32>
    %48 = arith.truncf %45 : vector<64x64xf32> to vector<64x64xbf16>
    %cst_17 = arith.constant dense<0.000000e+00> : vector<64x64xf32>
    %49 = tpu.matmul %48, %37, %cst_17 {dimension_numbers = #tpu.dot_dimension_numbers<[1], [0], [0], [1], [0, 0, 1, 1], [], []>} : vector<64x64xbf16>, vector<64x64xbf16>, vector<64x64xf32> -> vector<64x64xf32>
    %50 = tpu.reciprocal %47 {approx = true} : vector<64x1xf32> -> vector<64x1xf32>
    %51 = vector.broadcast %50 : vector<64x1xf32> to vector<64x64xf32>
    %52 = arith.mulf %49, %51 : vector<64x64xf32>
    %53 = arith.truncf %52 : vector<64x64xf32> to vector<64x64xbf16>
    %c64 = arith.constant 64 : index
    %c0_18 = arith.constant 0 : index
    %54 = vector.load %arg3[%c64, %c0_18] : memref<384x384xbf16, #tpu.memory_space<vmem>>, vector<64x384xbf16>
    %cst_19 = arith.constant dense<0.000000e+00> : vector<64x384xf32>
    %55 = tpu.matmul %53, %54, %cst_19 {dimension_numbers = #tpu.dot_dimension_numbers<[1], [0], [0], [1], [0, 0, 1, 1], [], []>} : vector<64x64xbf16>, vector<64x384xbf16>, vector<64x384xf32> -> vector<64x384xf32>
    %56 = arith.addf %34, %55 : vector<64x384xf32>
    %57 = vector.extract_strided_slice %6 {offsets = [0, 128], sizes = [64, 64], strides = [1, 1]} : vector<64x384xbf16> to vector<64x64xbf16>
    %58 = vector.extract_strided_slice %7 {offsets = [0, 128], sizes = [64, 64], strides = [1, 1]} : vector<64x384xbf16> to vector<64x64xbf16>
    %59 = vector.extract_strided_slice %8 {offsets = [0, 128], sizes = [64, 64], strides = [1, 1]} : vector<64x384xbf16> to vector<64x64xbf16>
    %cst_20 = arith.constant dense<0.000000e+00> : vector<64x64xf32>
    %60 = tpu.matmul %57, %58, %cst_20 {dimension_numbers = #tpu.dot_dimension_numbers<[1], [1], [0], [0], [0, 0, 1, 0], [], []>} : vector<64x64xbf16>, vector<64x64xbf16>, vector<64x64xf32> -> vector<64x64xf32>
    %cst_21 = arith.constant -1.000000e+30 : f32
    %61 = vector.broadcast %cst_21 : f32 to vector<64x64xf32>
    %62 = arith.select %11, %60, %61 : vector<64x64xi1>, vector<64x64xf32>
    %cst_22 = arith.constant dense<0xFF800000> : vector<64xf32>
    %63 = vector.multi_reduction <maximumf>, %62, %cst_22 [1] : vector<64x64xf32> to vector<64xf32>
    %64 = vector.shape_cast %63 : vector<64xf32> to vector<64x1xf32>
    %65 = vector.broadcast %64 : vector<64x1xf32> to vector<64x64xf32>
    %66 = arith.subf %62, %65 : vector<64x64xf32>
    %67 = math.exp %66 : vector<64x64xf32>
    %cst_23 = arith.constant dense<0.000000e+00> : vector<64xf32>
    %68 = vector.multi_reduction <add>, %67, %cst_23 [1] : vector<64x64xf32> to vector<64xf32>
    %69 = vector.shape_cast %68 : vector<64xf32> to vector<64x1xf32>
    %70 = arith.truncf %67 : vector<64x64xf32> to vector<64x64xbf16>
    %cst_24 = arith.constant dense<0.000000e+00> : vector<64x64xf32>
    %71 = tpu.matmul %70, %59, %cst_24 {dimension_numbers = #tpu.dot_dimension_numbers<[1], [0], [0], [1], [0, 0, 1, 1], [], []>} : vector<64x64xbf16>, vector<64x64xbf16>, vector<64x64xf32> -> vector<64x64xf32>
    %72 = tpu.reciprocal %69 {approx = true} : vector<64x1xf32> -> vector<64x1xf32>
    %73 = vector.broadcast %72 : vector<64x1xf32> to vector<64x64xf32>
    %74 = arith.mulf %71, %73 : vector<64x64xf32>
    %75 = arith.truncf %74 : vector<64x64xf32> to vector<64x64xbf16>
    %c128 = arith.constant 128 : index
    %c0_25 = arith.constant 0 : index
    %76 = vector.load %arg3[%c128, %c0_25] : memref<384x384xbf16, #tpu.memory_space<vmem>>, vector<64x384xbf16>
    %cst_26 = arith.constant dense<0.000000e+00> : vector<64x384xf32>
    %77 = tpu.matmul %75, %76, %cst_26 {dimension_numbers = #tpu.dot_dimension_numbers<[1], [0], [0], [1], [0, 0, 1, 1], [], []>} : vector<64x64xbf16>, vector<64x384xbf16>, vector<64x384xf32> -> vector<64x384xf32>
    %78 = arith.addf %56, %77 : vector<64x384xf32>
    %79 = vector.extract_strided_slice %6 {offsets = [0, 192], sizes = [64, 64], strides = [1, 1]} : vector<64x384xbf16> to vector<64x64xbf16>
    %80 = vector.extract_strided_slice %7 {offsets = [0, 192], sizes = [64, 64], strides = [1, 1]} : vector<64x384xbf16> to vector<64x64xbf16>
    %81 = vector.extract_strided_slice %8 {offsets = [0, 192], sizes = [64, 64], strides = [1, 1]} : vector<64x384xbf16> to vector<64x64xbf16>
    %cst_27 = arith.constant dense<0.000000e+00> : vector<64x64xf32>
    %82 = tpu.matmul %79, %80, %cst_27 {dimension_numbers = #tpu.dot_dimension_numbers<[1], [1], [0], [0], [0, 0, 1, 0], [], []>} : vector<64x64xbf16>, vector<64x64xbf16>, vector<64x64xf32> -> vector<64x64xf32>
    %cst_28 = arith.constant -1.000000e+30 : f32
    %83 = vector.broadcast %cst_28 : f32 to vector<64x64xf32>
    %84 = arith.select %11, %82, %83 : vector<64x64xi1>, vector<64x64xf32>
    %cst_29 = arith.constant dense<0xFF800000> : vector<64xf32>
    %85 = vector.multi_reduction <maximumf>, %84, %cst_29 [1] : vector<64x64xf32> to vector<64xf32>
    %86 = vector.shape_cast %85 : vector<64xf32> to vector<64x1xf32>
    %87 = vector.broadcast %86 : vector<64x1xf32> to vector<64x64xf32>
    %88 = arith.subf %84, %87 : vector<64x64xf32>
    %89 = math.exp %88 : vector<64x64xf32>
    %cst_30 = arith.constant dense<0.000000e+00> : vector<64xf32>
    %90 = vector.multi_reduction <add>, %89, %cst_30 [1] : vector<64x64xf32> to vector<64xf32>
    %91 = vector.shape_cast %90 : vector<64xf32> to vector<64x1xf32>
    %92 = arith.truncf %89 : vector<64x64xf32> to vector<64x64xbf16>
    %cst_31 = arith.constant dense<0.000000e+00> : vector<64x64xf32>
    %93 = tpu.matmul %92, %81, %cst_31 {dimension_numbers = #tpu.dot_dimension_numbers<[1], [0], [0], [1], [0, 0, 1, 1], [], []>} : vector<64x64xbf16>, vector<64x64xbf16>, vector<64x64xf32> -> vector<64x64xf32>
    %94 = tpu.reciprocal %91 {approx = true} : vector<64x1xf32> -> vector<64x1xf32>
    %95 = vector.broadcast %94 : vector<64x1xf32> to vector<64x64xf32>
    %96 = arith.mulf %93, %95 : vector<64x64xf32>
    %97 = arith.truncf %96 : vector<64x64xf32> to vector<64x64xbf16>
    %c192 = arith.constant 192 : index
    %c0_32 = arith.constant 0 : index
    %98 = vector.load %arg3[%c192, %c0_32] : memref<384x384xbf16, #tpu.memory_space<vmem>>, vector<64x384xbf16>
    %cst_33 = arith.constant dense<0.000000e+00> : vector<64x384xf32>
    %99 = tpu.matmul %97, %98, %cst_33 {dimension_numbers = #tpu.dot_dimension_numbers<[1], [0], [0], [1], [0, 0, 1, 1], [], []>} : vector<64x64xbf16>, vector<64x384xbf16>, vector<64x384xf32> -> vector<64x384xf32>
    %100 = arith.addf %78, %99 : vector<64x384xf32>
    %101 = vector.extract_strided_slice %6 {offsets = [0, 256], sizes = [64, 64], strides = [1, 1]} : vector<64x384xbf16> to vector<64x64xbf16>
    %102 = vector.extract_strided_slice %7 {offsets = [0, 256], sizes = [64, 64], strides = [1, 1]} : vector<64x384xbf16> to vector<64x64xbf16>
    %103 = vector.extract_strided_slice %8 {offsets = [0, 256], sizes = [64, 64], strides = [1, 1]} : vector<64x384xbf16> to vector<64x64xbf16>
    %cst_34 = arith.constant dense<0.000000e+00> : vector<64x64xf32>
    %104 = tpu.matmul %101, %102, %cst_34 {dimension_numbers = #tpu.dot_dimension_numbers<[1], [1], [0], [0], [0, 0, 1, 0], [], []>} : vector<64x64xbf16>, vector<64x64xbf16>, vector<64x64xf32> -> vector<64x64xf32>
    %cst_35 = arith.constant -1.000000e+30 : f32
    %105 = vector.broadcast %cst_35 : f32 to vector<64x64xf32>
    %106 = arith.select %11, %104, %105 : vector<64x64xi1>, vector<64x64xf32>
    %cst_36 = arith.constant dense<0xFF800000> : vector<64xf32>
    %107 = vector.multi_reduction <maximumf>, %106, %cst_36 [1] : vector<64x64xf32> to vector<64xf32>
    %108 = vector.shape_cast %107 : vector<64xf32> to vector<64x1xf32>
    %109 = vector.broadcast %108 : vector<64x1xf32> to vector<64x64xf32>
    %110 = arith.subf %106, %109 : vector<64x64xf32>
    %111 = math.exp %110 : vector<64x64xf32>
    %cst_37 = arith.constant dense<0.000000e+00> : vector<64xf32>
    %112 = vector.multi_reduction <add>, %111, %cst_37 [1] : vector<64x64xf32> to vector<64xf32>
    %113 = vector.shape_cast %112 : vector<64xf32> to vector<64x1xf32>
    %114 = arith.truncf %111 : vector<64x64xf32> to vector<64x64xbf16>
    %cst_38 = arith.constant dense<0.000000e+00> : vector<64x64xf32>
    %115 = tpu.matmul %114, %103, %cst_38 {dimension_numbers = #tpu.dot_dimension_numbers<[1], [0], [0], [1], [0, 0, 1, 1], [], []>} : vector<64x64xbf16>, vector<64x64xbf16>, vector<64x64xf32> -> vector<64x64xf32>
    %116 = tpu.reciprocal %113 {approx = true} : vector<64x1xf32> -> vector<64x1xf32>
    %117 = vector.broadcast %116 : vector<64x1xf32> to vector<64x64xf32>
    %118 = arith.mulf %115, %117 : vector<64x64xf32>
    %119 = arith.truncf %118 : vector<64x64xf32> to vector<64x64xbf16>
    %c256 = arith.constant 256 : index
    %c0_39 = arith.constant 0 : index
    %120 = vector.load %arg3[%c256, %c0_39] : memref<384x384xbf16, #tpu.memory_space<vmem>>, vector<64x384xbf16>
    %cst_40 = arith.constant dense<0.000000e+00> : vector<64x384xf32>
    %121 = tpu.matmul %119, %120, %cst_40 {dimension_numbers = #tpu.dot_dimension_numbers<[1], [0], [0], [1], [0, 0, 1, 1], [], []>} : vector<64x64xbf16>, vector<64x384xbf16>, vector<64x384xf32> -> vector<64x384xf32>
    %122 = arith.addf %100, %121 : vector<64x384xf32>
    %123 = vector.extract_strided_slice %6 {offsets = [0, 320], sizes = [64, 64], strides = [1, 1]} : vector<64x384xbf16> to vector<64x64xbf16>
    %124 = vector.extract_strided_slice %7 {offsets = [0, 320], sizes = [64, 64], strides = [1, 1]} : vector<64x384xbf16> to vector<64x64xbf16>
    %125 = vector.extract_strided_slice %8 {offsets = [0, 320], sizes = [64, 64], strides = [1, 1]} : vector<64x384xbf16> to vector<64x64xbf16>
    %cst_41 = arith.constant dense<0.000000e+00> : vector<64x64xf32>
    %126 = tpu.matmul %123, %124, %cst_41 {dimension_numbers = #tpu.dot_dimension_numbers<[1], [1], [0], [0], [0, 0, 1, 0], [], []>} : vector<64x64xbf16>, vector<64x64xbf16>, vector<64x64xf32> -> vector<64x64xf32>
    %cst_42 = arith.constant -1.000000e+30 : f32
    %127 = vector.broadcast %cst_42 : f32 to vector<64x64xf32>
    %128 = arith.select %11, %126, %127 : vector<64x64xi1>, vector<64x64xf32>
    %cst_43 = arith.constant dense<0xFF800000> : vector<64xf32>
    %129 = vector.multi_reduction <maximumf>, %128, %cst_43 [1] : vector<64x64xf32> to vector<64xf32>
    %130 = vector.shape_cast %129 : vector<64xf32> to vector<64x1xf32>
    %131 = vector.broadcast %130 : vector<64x1xf32> to vector<64x64xf32>
    %132 = arith.subf %128, %131 : vector<64x64xf32>
    %133 = math.exp %132 : vector<64x64xf32>
    %cst_44 = arith.constant dense<0.000000e+00> : vector<64xf32>
    %134 = vector.multi_reduction <add>, %133, %cst_44 [1] : vector<64x64xf32> to vector<64xf32>
    %135 = vector.shape_cast %134 : vector<64xf32> to vector<64x1xf32>
    %136 = arith.truncf %133 : vector<64x64xf32> to vector<64x64xbf16>
    %cst_45 = arith.constant dense<0.000000e+00> : vector<64x64xf32>
    %137 = tpu.matmul %136, %125, %cst_45 {dimension_numbers = #tpu.dot_dimension_numbers<[1], [0], [0], [1], [0, 0, 1, 1], [], []>} : vector<64x64xbf16>, vector<64x64xbf16>, vector<64x64xf32> -> vector<64x64xf32>
    %138 = tpu.reciprocal %135 {approx = true} : vector<64x1xf32> -> vector<64x1xf32>
    %139 = vector.broadcast %138 : vector<64x1xf32> to vector<64x64xf32>
    %140 = arith.mulf %137, %139 : vector<64x64xf32>
    %141 = arith.truncf %140 : vector<64x64xf32> to vector<64x64xbf16>
    %c320 = arith.constant 320 : index
    %c0_46 = arith.constant 0 : index
    %142 = vector.load %arg3[%c320, %c0_46] : memref<384x384xbf16, #tpu.memory_space<vmem>>, vector<64x384xbf16>
    %cst_47 = arith.constant dense<0.000000e+00> : vector<64x384xf32>
    %143 = tpu.matmul %141, %142, %cst_47 {dimension_numbers = #tpu.dot_dimension_numbers<[1], [0], [0], [1], [0, 0, 1, 1], [], []>} : vector<64x64xbf16>, vector<64x384xbf16>, vector<64x384xf32> -> vector<64x384xf32>
    %144 = arith.addf %122, %143 : vector<64x384xf32>
    %c0_48 = arith.constant 0 : index
    %c0_49 = arith.constant 0 : index
    %145 = vector.load %arg4[%c0_48, %c0_49] : memref<1x384xf32, #tpu.memory_space<vmem>>, vector<1x384xf32>
    %146 = vector.broadcast %145 : vector<1x384xf32> to vector<64x384xf32>
    %147 = arith.addf %144, %146 : vector<64x384xf32>
    %c0_50 = arith.constant 0 : index
    %c0_51 = arith.constant 0 : index
    %c0_52 = arith.constant 0 : index
    %148 = vector.load %arg5[%c0_50, %c0_51, %c0_52] : memref<1x64x384xf32, #tpu.memory_space<vmem>>, vector<1x64x384xf32>
    %149 = vector.shape_cast %148 : vector<1x64x384xf32> to vector<64x384xf32>
    %150 = vector.shape_cast %147 : vector<64x384xf32> to vector<1x64x384xf32>
    tpu.vector_store %arg5[%c0_50, %c0_51, %c0_52], %150 {strides = array<i32>} : memref<1x64x384xf32, #tpu.memory_space<vmem>>, vector<1x64x384xf32>,
    return
  }
  func.func @transform_0(%arg0: i32) -> (i32, i32, i32) {
    %c0_i32 = arith.constant 0 : i32
    %c0_i32_0 = arith.constant 0 : i32
    %c0_i32_1 = arith.constant 0 : i32
    return %arg0, %c0_i32, %c0_i32_0 : i32, i32, i32
  }
  func.func @transform_1(%arg0: i32) -> (i32, i32) {
    %c0_i32 = arith.constant 0 : i32
    %c0_i32_0 = arith.constant 0 : i32
    %c0_i32_1 = arith.constant 0 : i32
    return %c0_i32, %c0_i32_0 : i32, i32
  }
  func.func @transform_2(%arg0: i32) -> (i32, i32) {
    %c0_i32 = arith.constant 0 : i32
    %c0_i32_0 = arith.constant 0 : i32
    %c0_i32_1 = arith.constant 0 : i32
    return %c0_i32, %c0_i32_0 : i32, i32
  }
  func.func @transform_3(%arg0: i32) -> (i32, i32) {
    %c0_i32 = arith.constant 0 : i32
    %c0_i32_0 = arith.constant 0 : i32
    %c0_i32_1 = arith.constant 0 : i32
    return %c0_i32, %c0_i32_0 : i32, i32
  }
  func.func @transform_4(%arg0: i32) -> (i32, i32, i32) {
    %c0_i32 = arith.constant 0 : i32
    %c0_i32_0 = arith.constant 0 : i32
    %c0_i32_1 = arith.constant 0 : i32
    return %arg0, %c0_i32, %c0_i32_0 : i32, i32, i32
  }
}

</mosaic_0001>

<bundles_post_ra>
// kernel: tpu_custom_call.1
= control target key start
LH: loop header
LB: loop body
LE: loop exit
PB: predicated region body
PF: predicated region fallthrough
CT: control target
= control target key end

     0   :  { %9 = vsyncpa [#allocation3], 0  ;;  %s8900_s0 = inlined_call_operand.hbm [shape: f32[2,64,384], index: 0, kind: input, shape index: {}]   ;;  %s8901_s1 = inlined_call_operand.hbm [shape: bf16[384,1152], index: 1, kind: input, shape index: {}]   ;;  %s8902_s2 = inlined_call_operand.hbm [shape: bf16[384,384], index: 2, kind: input, shape index: {}]   ;;  %s8903_s3 = inlined_call_operand.vmem [shape: f32[1,384], index: 3, kind: input, shape index: {}]   ;;  %s8904_s4 = inlined_call_operand.hbm [shape: f32[2,64,384], index: 4, kind: output, shape index: {}]  }
   0x1   :  { %11 = vsyncpa [#allocation3 + $0x1], 0 }
   0x2   :  { %12 = vsyncpa [#allocation6], 0 }
   0x3   :  { %13 = vsyncpa [#allocation4], 0 }
   0x4   :  { %15 = vsyncpa [#allocation4 + $0x1], 0  ;;  %s7773_s15 = smov 0   ;;  %s7775_s16 = smov 0  }
   0x5   :  { %s7777_s17 = smov 0   ;;  %s7779_s18 = smov 0  }
   0x6 LB: > { %s7794_s19 = sadd.s32 4294967295, %s7732_s18   ;;  %s5783_s20 = sadd.s32 4294967294, %s7732_s18   ;;  %s7732_s18 = sphi %s7779_s18, %s8974_s18   ;;  %s7728_s17 = sphi %s7777_s17, %s8973_s17   ;;  %s7724_s16 = sphi %s7775_s16, %s8972_s16   ;;  %s7720_s15 = sphi %s7773_s15, %s8971_s15  }
   0x7   : > { %p41_p0 = scmp.ne.s32.totalorder %s7724_s16, %s7720_s15  ;;  %p8905_p1 = scmp.eq.s32.totalorder %s7794_s19, 0 }
   0x8   : > { %p134_p3 = scmp.eq.s32.totalorder %s5783_s20, 1  ;;  %p5784_p5 = scmp.ge.s32.totalorder %s7732_s18, 1 }
   0x9   : > { %p7803_p4 = por %p8905_p1, %p41_p0  ;;  %p141_p7 = scmp.lt.s32.totalorder %s7732_s18, 3 }
   0xa   : > { %p7808_p6 = por %p134_p3, %p41_p0  ;;  %s7734_s24 = smov [#allocation5]  }
   0xb   : > { %s8921_s21 = scalar_select %p7803_p4, 1, 0 }
   0xc   : > { %s8922_s22 = scalar_select %p7808_p6, 1, 0 }
   0xd   : > { %p7813_p8 = pnand %p5784_p5, %p141_p7  ;;  %s153_s25 = sshll.u32 %s7734_s24, 4  ;;  %s7817_s25 = int_to_ptr.vmem [resolvable:$true] %s153_s25 }
   0xe   : > { %s7735_s27 = smov [#allocation7]   ;;  %s7576_s5 = scalar_lea.hbm %s8901_s1, 27648 }
   0xf   : > { %p6911_p9 = pneg %p7813_p8  ;;  %s166_s28 = sshll.u32 %s7735_s27, 4  ;;  %s7828_s28 = int_to_ptr.vmem [resolvable:$true] %s166_s28 }
  0x10   : > { %p7577_p12 = scmp.ne.s32.totalorder %s8901_s1, %s7576_s5  ;;  %p7583_p5 = scmp.lt.u32.totalorder %s7576_s5, %s8901_s1 }
  0x11   : > { %p7824_p11 = pnand %p6911_p9, %p8905_p1 }
  0x13   : > { %p7578_p13 = pneg %p7824_p11 }
  0x15   : > { %p7579_p0 = pnand %p7578_p13, %p7577_p12 }
  0x17   : > { %p7580_p3 = pneg %p7579_p0 }
  0x19   : > { %p7585_p7 = pnand %p7583_p5, %p7580_p3 }
  0x1b   : > { %7588 = shalt.err (!%p7585_p7)
}
  0x1c   : > { %s7589_s10 = scalar_lea.vmem %s7817_s25, 27648  ;;  %p7597_p2 = scmp.lt.s32.totalorder %s7817_s25, %s7817_s25 }
  0x1d   : > { %p7590_p9 = scmp.ne.s32.totalorder %s7817_s25, %s7589_s10  ;;  %p7598_p12 = scmp.lt.s32.totalorder %s7589_s10, %s7589_s10 }
  0x1f   : > { %p7592_p10 = pnand %p7590_p9, %p7578_p13  ;;  %p7599_p0 = por %p7598_p12, %p7597_p2 }
  0x21   : > { %p7593_p1 = pneg %p7592_p10 }
  0x23   : > { %p7600_p6 = pnand %p7599_p0, %p7593_p1 }
  0x25   : > { %7603 = shalt.err (!%p7600_p6)
}
  0x26   : > { %s7736_s11 = smov 576   ;;  %s7737_s12 = smov 36  }
  0x27   : > { %6914 = dma.hbm_to_vmem [thread:$0]  (!%p7824_p11), %s8901_s1, 27648, %s7817_s25, [#allocation6], %s7736_s11, %s7736_s11, %s7737_s12  }
  0x28   : > { %s7604_s27 = scalar_lea.hbm %s8902_s2, 9216 }
  0x29   : > { %p7605_p2 = scmp.ne.s32.totalorder %s8902_s2, %s7604_s27  ;;  %p7611_p10 = scmp.lt.u32.totalorder %s7604_s27, %s8902_s2 }
  0x2b   : > { %p7607_p1 = pnand %p7605_p2, %p7578_p13 }
  0x2d   : > { %p7608_p6 = pneg %p7607_p1 }
  0x2f   : > { %p7613_p3 = pnand %p7611_p10, %p7608_p6 }
  0x31   : > { %7616 = shalt.err (!%p7613_p3)
}
  0x32   : > { %s7617_s25 = scalar_lea.vmem %s7828_s28, 9216  ;;  %p7625_p12 = scmp.lt.s32.totalorder %s7828_s28, %s7828_s28 }
  0x33   : > { %p7618_p5 = scmp.ne.s32.totalorder %s7828_s28, %s7617_s25  ;;  %p7626_p0 = scmp.lt.s32.totalorder %s7617_s25, %s7617_s25 }
  0x35   : > { %p7620_p7 = pnand %p7618_p5, %p7578_p13  ;;  %p7627_p2 = por %p7626_p0, %p7625_p12 }
  0x37   : > { %p7621_p9 = pneg %p7620_p7 }
  0x39   : > { %p7628_p1 = pnand %p7627_p2, %p7621_p9 }
  0x3b   : > { %7631 = shalt.err (!%p7628_p1)
}
  0x3c   : > { %s7738_s7 = smov 192   ;;  %s7739_s8 = smov 12  }
  0x3d   : > { %6917 = dma.hbm_to_vmem [thread:$0]  (!%p7824_p11), %s8902_s2, 9216, %s7828_s28, [#allocation6], %s7738_s7, %s7738_s7, %s7739_s8  }
  0x3e   : > { %s7883_s11 = sadd.s32 1, %s7732_s18   ;;  %s28_s13 = sadd.s32 1, %s7728_s17 }
  0x3f   : > { %s25_s12 = ssub.s32 %s7732_s18, %s7883_s11  ;;  %p35_p6 = scmp.ne.s32.totalorder %s7728_s17, %s7724_s16 }
  0x40   : > { %p26_p13 = scmp.eq.s32.totalorder %s25_s12, 0  ;;  %p36_p10 = scmp.eq.s32.totalorder %s7732_s18, 0 }
  0x41   : > { %p8925_p5 = scmp.eq.s32.totalorder %s7794_s19, 1  ;;  %p6928_p9 = scmp.lt.s32.totalorder %s7732_s18, 2 }
  0x42   : > { %s7892_s14 = scalar_select %p26_p13, %s7728_s17, %s28_s13  }
  0x43   : > { %p37_p3 = por %p36_p10, %p35_p6  ;;  %p7896_p7 = por %p8925_p5, %p35_p6 }
  0x44   : > { %s183_s26 = sand.u32 1, %s7728_s17   ;;  %s6896_s28 = smul.u32 3072, %s7732_s18 }
  0x45   : > { %s8926_s20 = scalar_select %p7896_p7, 1, 0 }
  0x46   : > { %s6895_s24 = smul.u32 192, %s183_s26  ;;  %p7903_p11 = pnand %p6928_p9, %p37_p3 }
  0x47   : > { %s7910_s5 = scalar_lea.hbm %s8900_s0, %s6896_s28  ;;  %s7914_s7 = scalar_lea.sflag [#allocation3], %s183_s26 }
  0x48   : > { %s187_s6 = scalar_lea.vmem [#allocation2], %s6895_s24  ;;  %s7632_s8 = scalar_lea.hbm %s7910_s5, 3072 }
  0x49   : > { %s194_s25 = sshll.u32 %s187_s6, 4  ;;  %p7633_p12 = scmp.ne.s32.totalorder %s7910_s5, %s7632_s8  ;;  %s7912_s25 = int_to_ptr.vmem [resolvable:$true] %s194_s25 }
  0x4a   : > { %p7634_p0 = pneg %p7903_p11  ;;  %s7637_s12 = scalar_lea.hbm %s8900_s0, 6144 }
  0x4b   : > { %p7638_p13 = scmp.lt.u32.totalorder %s7910_s5, %s8900_s0  ;;  %p7639_p6 = scmp.lt.u32.totalorder %s7637_s12, %s7632_s8 }
  0x4c   : > { %p7635_p2 = pnand %p7634_p0, %p7633_p12  ;;  %p7641_p3 = scmp.lt.u32.totalorder %s7632_s8, %s7910_s5 }
  0x4d   : > { %p7640_p10 = por %p7639_p6, %p7638_p13 }
  0x4e   : > { %p7636_p1 = pneg %p7635_p2 }
  0x4f   : > { %p7642_p5 = por %p7641_p3, %p7640_p10 }
  0x51   : > { %p7643_p9 = pnand %p7642_p5, %p7636_p1 }
  0x53   : > { %7646 = shalt.err (!%p7643_p9)
}
  0x54   : > { %s7647_s26 = scalar_lea.vmem %s7912_s25, 3072  ;;  %s7740_s24 = smov [#allocation2]  }
  0x55   : > { %p7648_p12 = scmp.ne.s32.totalorder %s7912_s25, %s7647_s26  ;;  %s7652_s29 = sshll.u32 %s7740_s24, 4  ;;  %s7653_s29 = int_to_ptr.vmem [resolvable:$false] %s7652_s29 }
  0x56   : > { %s7654_s30 = scalar_lea.vmem %s7653_s29, 6144  ;;  %p7655_p4 = scmp.lt.s32.totalorder %s7912_s25, %s7653_s29 }
  0x57   : > { %p7650_p2 = pnand %p7648_p12, %p7634_p0  ;;  %p7656_p13 = scmp.lt.s32.totalorder %s7654_s30, %s7647_s26 }
  0x59   : > { %p7651_p7 = pneg %p7650_p2  ;;  %p7657_p6 = por %p7656_p13, %p7655_p4 }
  0x5b   : > { %p7658_p10 = pnand %p7657_p6, %p7651_p7 }
  0x5d   : > { %7661 = shalt.err (!%p7658_p10)
}
  0x5e   : > { %s7741_s6 = smov 384   ;;  %s7742_s8 = smov 24  }
  0x5f   : > { %6921 = dma.hbm_to_vmem [thread:$0]  (!%p7903_p11), %s7910_s5, 3072, %s7912_s25, %s7914_s7, %s7741_s6, %s7741_s6, %s7742_s8  }
  0x60   : > { %206 = sbr.rel (%p7813_p8) target bundleno = 4361 (0x1109), region = 36 }
  0x67   : > { %s7945_s9 = sand.u32 1, %s7724_s16   ;;  %p8928_p4 = scmp.ne.s32.totalorder %s8921_s21, 0 }
  0x68   : > { %s6897_s10 = smul.u32 192, %s7945_s9  ;;  %s209_s12 = scalar_lea.sflag [#allocation3], %s7945_s9 }
  0x6a   : > { %s7951_s13 = scalar_lea.vmem [#allocation2], %s6897_s10 }
  0x6b   : > { %7707 = dma.done.wait (%p8928_p4), %s209_s12, 3072  }
  0x6c   : > { %7709 = vsyncadd (%p8928_p4), %s209_s12, 4294964224  ;;  %p8929_p7 = scmp.eq.s32.totalorder %s7794_s19, 0 }
  0x6e   : > { %7711 = dma.done.wait (%p8929_p7), [#allocation6], 36864   ;;  %p8930_p8 = pmov %p8929_p7 }
  0x6f   : > { %v6976_v0 = vld [vmem:[#allocation5 + $0x4] ss:$36 sps:$4 sm:$0xff]   ;;  %v6978_v1 = vld [vmem:[#allocation5 + $0xc] ss:$36 sps:$4 sm:$0xff]   ;;  %v6984_v5 = vld [vmem:[#allocation5 + $0x54] ss:$36 sps:$4 sm:$0xff]  }
  0x70   : > { %7713 = vsyncadd (%p8930_p8), [#allocation6], 4294930432  ;;  %1626 = vmatprep.subr.bf16.mxu0 %v6976_v0  ;;  %v6980_v2 = vld [vmem:[#allocation5] ss:$36 sps:$4 sm:$0xff]   ;;  %v6981_v3 = vld [vmem:[#allocation5 + $0x8] ss:$36 sps:$4 sm:$0xff]   ;;  %1772 = vmatprep.subr.bf16.mxu1 %v6978_v1 }
  0x71   : > { %v6982_v4 = vld [vmem:[#allocation5 + $0x4c] ss:$36 sps:$4 sm:$0xff]   ;;  %1627 = vmatpush1.bf16.msra.mxu0 %v6980_v2  ;;  %1773 = vmatpush1.bf16.msra.mxu1 %v6981_v3  ;;  %v6988_v8 = vld [vmem:[#allocation5 + $0x94] ss:$36 sps:$4 sm:$0xff]   ;;  %v6990_v9 = vld [vmem:[#allocation5 + $0x9c] ss:$36 sps:$4 sm:$0xff]  }
  0x72   : > { %v6986_v6 = vld [vmem:[#allocation5 + $0x48] ss:$36 sps:$4 sm:$0xff]   ;;  %1628 = vmatprep.subr.bf16.mxu0 %v6982_v4  ;;  %v6987_v7 = vld [vmem:[#allocation5 + $0x50] ss:$36 sps:$4 sm:$0xff]   ;;  %1774 = vmatprep.subr.bf16.mxu1 %v6984_v5  ;;  %v6993_v11 = vld [vmem:[#allocation5 + $0x98] ss:$36 sps:$4 sm:$0xff]  }
  0x73   : > { %v6992_v10 = vld [vmem:[#allocation5 + $0x90] ss:$36 sps:$4 sm:$0xff]   ;;  %v6994_v12 = vld [vmem:[#allocation5 + $0xdc] ss:$36 sps:$4 sm:$0xff]   ;;  %v6996_v13 = vld [vmem:[#allocation5 + $0xe4] ss:$36 sps:$4 sm:$0xff]  }
  0x74   : > { %v6998_v14 = vld [vmem:[#allocation5 + $0xd8] ss:$36 sps:$4 sm:$0xff]   ;;  %v6999_v15 = vld [vmem:[#allocation5 + $0xe0] ss:$36 sps:$4 sm:$0xff]   ;;  %v7002_v17 = vld [vmem:[#allocation5 + $0x12c] ss:$36 sps:$4 sm:$0xff]  }
  0x75   : > { %1629 = vmatpush1.bf16.msra.mxu0 %v6986_v6  ;;  %1775 = vmatpush1.bf16.msra.mxu1 %v6987_v7  ;;  %v7000_v16 = vld [vmem:[#allocation5 + $0x124] ss:$36 sps:$4 sm:$0xff]   ;;  %v7006_v20 = vld [vmem:[#allocation5 + $0x16c] ss:$36 sps:$4 sm:$0xff]   ;;  %v7008_v21 = vld [vmem:[#allocation5 + $0x174] ss:$36 sps:$4 sm:$0xff]  }
  0x76   : > { %1630 = vmatprep.subr.bf16.mxu0 %v6988_v8  ;;  %1776 = vmatprep.subr.bf16.mxu1 %v6990_v9  ;;  %v7004_v18 = vld [vmem:[#allocation5 + $0x120] ss:$36 sps:$4 sm:$0xff]   ;;  %v7005_v19 = vld [vmem:[#allocation5 + $0x128] ss:$36 sps:$4 sm:$0xff]   ;;  %v7011_v23 = vld [vmem:[#allocation5 + $0x170] ss:$36 sps:$4 sm:$0xff]  }
  0x77   : > { %v7010_v22 = vld [vmem:[#allocation5 + $0x168] ss:$36 sps:$4 sm:$0xff]   ;;  %v7012_v24 = vld [vmem:[#allocation5 + $0x1b4] ss:$36 sps:$4 sm:$0xff]   ;;  %v7014_v25 = vld [vmem:[#allocation5 + $0x1bc] ss:$36 sps:$4 sm:$0xff]  }
  0x78   : > { %v7016_v26 = vld [vmem:[#allocation5 + $0x1b0] ss:$36 sps:$4 sm:$0xff]   ;;  %v7017_v27 = vld [vmem:[#allocation5 + $0x1b8] ss:$36 sps:$4 sm:$0xff]   ;;  %v7020_v29 = vld [vmem:[#allocation5 + $0x204] ss:$36 sps:$4 sm:$0xff]  }
  0x79   : > { %1631 = vmatpush1.bf16.msra.mxu0 %v6992_v10  ;;  %1777 = vmatpush1.bf16.msra.mxu1 %v6993_v11  ;;  %v7018_v28 = vld [vmem:[#allocation5 + $0x1fc] ss:$36 sps:$4 sm:$0xff]   ;;  %v7024_v32 = vld [vmem:[#allocation5 + $0x244] ss:$36 sps:$4 sm:$0xff]   ;;  %v7026_v33 = vld [vmem:[#allocation5 + $0x24c] ss:$36 sps:$4 sm:$0xff]  }
  0x7a   : > { %1632 = vmatprep.subr.bf16.mxu0 %v6994_v12  ;;  %1778 = vmatprep.subr.bf16.mxu1 %v6996_v13  ;;  %v7022_v30 = vld [vmem:[#allocation5 + $0x1f8] ss:$36 sps:$4 sm:$0xff]   ;;  %v7023_v31 = vld [vmem:[#allocation5 + $0x200] ss:$36 sps:$4 sm:$0xff]   ;;  %v7029_v35 = vld [vmem:[#allocation5 + $0x248] ss:$36 sps:$4 sm:$0xff]  }
  0x7b   : > { %v7028_v34 = vld [vmem:[#allocation5 + $0x240] ss:$36 sps:$4 sm:$0xff]   ;;  %v7030_v36 = vld [vmem:[#allocation5 + $0x28c] ss:$36 sps:$4 sm:$0xff]   ;;  %v7032_v37 = vld [vmem:[#allocation5 + $0x294] ss:$36 sps:$4 sm:$0xff]  }
  0x7c   : > { %v7034_v38 = vld [vmem:[#allocation5 + $0x288] ss:$36 sps:$4 sm:$0xff]   ;;  %v7035_v39 = vld [vmem:[#allocation5 + $0x290] ss:$36 sps:$4 sm:$0xff]   ;;  %v7038_v41 = vld [vmem:[#allocation5 + $0x2dc] ss:$36 sps:$4 sm:$0xff]  }
  0x7d   : > { %1633 = vmatpush1.bf16.msra.mxu0 %v6998_v14  ;;  %1779 = vmatpush1.bf16.msra.mxu1 %v6999_v15  ;;  %v7036_v40 = vld [vmem:[#allocation5 + $0x2d4] ss:$36 sps:$4 sm:$0xff]   ;;  %v7042_v44 = vld [vmem:[#allocation5 + $0x31c] ss:$36 sps:$4 sm:$0xff]   ;;  %v7044_v45 = vld [vmem:[#allocation5 + $0x324] ss:$36 sps:$4 sm:$0xff]  }
  0x7e   : > { %1634 = vmatprep.subr.bf16.mxu0 %v7000_v16  ;;  %1780 = vmatprep.subr.bf16.mxu1 %v7002_v17  ;;  %v7040_v42 = vld [vmem:[#allocation5 + $0x2d0] ss:$36 sps:$4 sm:$0xff]   ;;  %v7041_v43 = vld [vmem:[#allocation5 + $0x2d8] ss:$36 sps:$4 sm:$0xff]   ;;  %v247_v46 = vld [vmem:[%s7951_s13 + $0x8] sm:$0xff]  ;;  %vm2395_vm0 = vcmask 523264  }
  0x7f   : > { %v7046_v47 = vld [vmem:[#allocation5 + $0x318] ss:$36 sps:$4 sm:$0xff]   ;;  %v7047_v48 = vld [vmem:[#allocation5 + $0x320] ss:$36 sps:$4 sm:$0xff]   ;;  %v7050_v52 = vld [vmem:[#allocation5 + $0x36c] ss:$36 sps:$4 sm:$0xff]  }
  0x80   : > { %v250_v49 = vld [vmem:[%s7951_s13 + $0x20] sm:$0xff]  ;;  %v7053_v54 = vld [vmem:[#allocation5 + $0x368] ss:$36 sps:$4 sm:$0xff]   ;;  %v7056_v56 = vld [vmem:[#allocation5 + $0x3b4] ss:$36 sps:$4 sm:$0xff]   ;;  %s7744_s21 = smov 64  }
  0x81   : > { %1635 = vmatpush1.bf16.msra.mxu0 %v7004_v18  ;;  %1781 = vmatpush1.bf16.msra.mxu1 %v7005_v19  ;;  %v7048_v50 = vld [vmem:[#allocation5 + $0x364] ss:$36 sps:$4 sm:$0xff]   ;;  %v7963_v51 = vpack.c.bf16 %v250_v49, %v247_v46  ;;  %v7054_v55 = vld [vmem:[#allocation5 + $0x3ac] ss:$36 sps:$4 sm:$0xff]   ;;  %v7060_v59 = vld [vmem:[#allocation5 + $0x3f4] ss:$36 sps:$4 sm:$0xff]  }
  0x82   : > { %1636 = vmatprep.subr.bf16.mxu0 %v7006_v20  ;;  %1782 = vmatprep.subr.bf16.mxu1 %v7008_v21  ;;  %v7052_v53 = vld [vmem:[#allocation5 + $0x360] ss:$36 sps:$4 sm:$0xff]   ;;  %v7058_v57 = vld [vmem:[#allocation5 + $0x3a8] ss:$36 sps:$4 sm:$0xff]   ;;  %v7059_v58 = vld [vmem:[#allocation5 + $0x3b0] ss:$36 sps:$4 sm:$0xff]  }
  0x83   : > { %1658 = vmatprep.mubr.bf16.mxu0 %v7963_v51  ;;  %1804 = vmatprep.mubr.bf16.mxu1 %v7963_v51  ;;  %v7062_v60 = vld [vmem:[#allocation5 + $0x3fc] ss:$36 sps:$4 sm:$0xff]   ;;  %v7064_v61 = vld [vmem:[#allocation5 + $0x3f0] ss:$36 sps:$4 sm:$0xff]   ;;  %v7068_v0 = vld [vmem:[#allocation5 + $0x444] ss:$36 sps:$4 sm:$0xff]  }
  0x84   : > { %v7065_v62 = vld [vmem:[#allocation5 + $0x3f8] ss:$36 sps:$4 sm:$0xff]   ;;  %v7071_v2 = vld [vmem:[#allocation5 + $0x440] ss:$36 sps:$4 sm:$0xff]   ;;  %v7077_v6 = vld [vmem:[#allocation5 + $0x48c] ss:$36 sps:$4 sm:$0xff]  }
  0x85   : > { %1637 = vmatpush1.bf16.msra.mxu0 %v7010_v22  ;;  %1783 = vmatpush1.bf16.msra.mxu1 %v7011_v23  ;;  %v7066_v63 = vld [vmem:[#allocation5 + $0x43c] ss:$36 sps:$4 sm:$0xff]   ;;  %v7074_v5 = vld [vmem:[#allocation5 + $0x484] ss:$36 sps:$4 sm:$0xff]   ;;  %v256_v11 = vld [vmem:[%s7951_s13 + $0x50] sm:$0xff]  ;;  %s8809_s5 = scalar_lea.vmem [#allocation8], %s6897_s10 }
  0x86   : > { %1638 = vmatprep.subr.bf16.mxu0 %v7012_v24  ;;  %1784 = vmatprep.subr.bf16.mxu1 %v7014_v25  ;;  %v7070_v1 = vld [vmem:[#allocation5 + $0x438] ss:$36 sps:$4 sm:$0xff]   ;;  %v246_v3 = vld [vmem:[%s7951_s13] sm:$0xff]  ;;  %v7075_v9 = vld [vmem:[#allocation5 + $0x488] ss:$36 sps:$4 sm:$0xff]   ;;  %s6898_s25 = smul.u32 3072, %s7794_s19 }
  0x87   : > { %v249_v4 = vld [vmem:[%s7951_s13 + $0x18] sm:$0xff]  ;;  %v7072_v7 = vld [vmem:[#allocation5 + $0x480] ss:$36 sps:$4 sm:$0xff]   ;;  %v7080_v12 = vld [vmem:[#allocation5 + $0x4cc] ss:$36 sps:$4 sm:$0xff]   ;;  %s5691_s7 = sshll.u32 %s8809_s5, 4  ;;  %s8852_s7 = int_to_ptr.vmem [resolvable:$true] %s5691_s7 }
  0x88   : > { %v7969_v8 = vpack.c.bf16 %v249_v4, %v246_v3  ;;  %v253_v10 = vld [vmem:[%s7951_s13 + $0x38] sm:$0xff]  ;;  %v7078_v14 = vld [vmem:[#allocation5 + $0x4c8] ss:$36 sps:$4 sm:$0xff]   ;;  %v7081_v16 = vld [vmem:[#allocation5 + $0x4d0] ss:$36 sps:$4 sm:$0xff]   ;;  %s8850_s24 = scalar_lea.hbm %s8904_s4, %s6898_s25  ;;  %s5678_s19 = scalar_lea.sflag [#allocation4], %s7945_s9 }
  0x89   : > { %1639 = vmatpush1.bf16.msra.mxu0 %v7016_v26  ;;  %1785 = vmatpush1.bf16.msra.mxu1 %v7017_v27  ;;  %v7083_v13 = vld [vmem:[#allocation5 + $0x4d4] ss:$36 sps:$4 sm:$0xff]   ;;  %v7973_v15 = vpack.c.bf16 %v256_v11, %v253_v10  ;;  %v255_v18 = vld [vmem:[%s7951_s13 + $0x48] sm:$0xff]  ;;  %v7089_v20 = vld [vmem:[#allocation5 + $0x51c] ss:$36 sps:$4 sm:$0xff]   ;;  %s7662_s29 = scalar_lea.vmem %s8852_s7, 3072 }
  0x8a   : > { %1640 = vmatprep.subr.bf16.mxu0 %v7018_v28  ;;  %1786 = vmatprep.subr.bf16.mxu1 %v7020_v29  ;;  %v252_v17 = vld [vmem:[%s7951_s13 + $0x30] sm:$0xff]  ;;  %v7087_v23 = vld [vmem:[#allocation5 + $0x518] ss:$36 sps:$4 sm:$0xff]   ;;  %v259_v24 = vld [vmem:[%s7951_s13 + $0x68] sm:$0xff]  ;;  %p7663_p11 = scmp.ne.s32.totalorder %s8852_s7, %s7662_s29  ;;  %p8968_p0 = scmp.ne.s32.totalorder %s8926_s20, 0 }
  0x8b   : > { %v7086_v19 = vld [vmem:[#allocation5 + $0x514] ss:$36 sps:$4 sm:$0xff]   ;;  %v7981_v22 = vpack.c.bf16 %v255_v18, %v252_v17  ;;  %v262_v25 = vld [vmem:[%s7951_s13 + $0x80] sm:$0xff]  ;;  %v267_v46 = vld [vmem:[%s7951_s13 + $0xa8] sm:$0xff]  ;;  %s7745_s30 = smov [#allocation8]  }
  0x8c   : > { %v7084_v21 = vld [vmem:[#allocation5 + $0x510] ss:$36 sps:$4 sm:$0xff]   ;;  %v7092_v26 = vld [vmem:[#allocation5 + $0x55c] ss:$36 sps:$4 sm:$0xff]   ;;  %v7095_v27 = vld [vmem:[#allocation5 + $0x564] ss:$36 sps:$4 sm:$0xff]   ;;  %p7664_p1 = pnand %p7663_p11, %p8968_p0 }
  0x8d   : > { %1641 = vmatpush1.bf16.msra.mxu0 %v7022_v30  ;;  %1787 = vmatpush1.bf16.msra.mxu1 %v7023_v31  ;;  %v7090_v28 = vld [vmem:[#allocation5 + $0x558] ss:$36 sps:$4 sm:$0xff]   ;;  %v7093_v29 = vld [vmem:[#allocation5 + $0x560] ss:$36 sps:$4 sm:$0xff]   ;;  %v7985_v30 = vpack.c.bf16 %v262_v25, %v259_v24  ;;  %v263_v17 = vld [vmem:[%s7951_s13 + $0x88] sm:$0xff]  ;;  %s7666_s6 = sshll.u32 %s7745_s30, 4  ;;  %s7667_s6 = int_to_ptr.vmem [resolvable:$false] %s7666_s6 }
  0x8e   : > { %1642 = vmatprep.subr.bf16.mxu0 %v7024_v32  ;;  %1788 = vmatprep.subr.bf16.mxu1 %v7026_v33  ;;  %v258_v31 = vld [vmem:[%s7951_s13 + $0x60] sm:$0xff]  ;;  %v261_v32 = vld [vmem:[%s7951_s13 + $0x78] sm:$0xff]  ;;  %v7129_v18 = vld [vmem:[#allocation5 + $0xe8] ss:$36 sps:$4 sm:$0xff]   ;;  %p7665_p3 = pneg %p7664_p1  ;;  %s7668_s8 = scalar_lea.vmem %s7667_s6, 6144 }
  0x8f   : > { %v7098_v33 = vld [vmem:[#allocation5 + $0x5a4] ss:$36 sps:$4 sm:$0xff]   ;;  %v257_v4 = vld [vmem:[%s7951_s13 + $0x58] sm:$0xff]  ;;  %v7132_v24 = vld [vmem:[#allocation5 + $0x130] ss:$36 sps:$4 sm:$0xff]   ;;  %p7669_p5 = scmp.lt.s32.totalorder %s8852_s7, %s7667_s6  ;;  %p7670_p9 = scmp.lt.s32.totalorder %s7668_s8, %s7662_s29 }
  0x90   : > { %v254_v3 = vld [vmem:[%s7951_s13 + $0x40] sm:$0xff]  ;;  %v7174_v25 = vld [vmem:[#allocation5 + $0x138] ss:$36 sps:$4 sm:$0xff]  }
  0x91   : > { %1643 = vmatpush1.bf16.msra.mxu0 %v7028_v34  ;;  %1789 = vmatpush1.bf16.msra.mxu1 %v7029_v35  ;;  %v7101_v34 = vld [vmem:[#allocation5 + $0x5ac] ss:$36 sps:$4 sm:$0xff]   ;;  %v7096_v35 = vld [vmem:[#allocation5 + $0x5a0] ss:$36 sps:$4 sm:$0xff]   ;;  %v8021_v10 = vpack.c.bf16 %v257_v4, %v254_v3  ;;  %v7222_v3 = vld [vmem:[#allocation5 + $0x378] ss:$36 sps:$4 sm:$0xff]   ;;  %p7671_p12 = por %p7670_p9, %p7669_p5 }
  0x92   : > { %1644 = vmatprep.subr.bf16.mxu0 %v7030_v36  ;;  %1790 = vmatprep.subr.bf16.mxu1 %v7032_v37  ;;  %v7099_v36 = vld [vmem:[#allocation5 + $0x5a8] ss:$36 sps:$4 sm:$0xff]   ;;  %v7993_v37 = vpack.c.bf16 %v261_v32, %v258_v31  ;;  %v7126_v11 = vld [vmem:[#allocation5 + $0xa0] ss:$36 sps:$4 sm:$0xff]   ;;  %v7135_v31 = vld [vmem:[#allocation5 + $0x178] ss:$36 sps:$4 sm:$0xff]  }
  0x93   : > { %v7180_v32 = vld [vmem:[#allocation5 + $0x180] ss:$36 sps:$4 sm:$0xff]   ;;  %p7672_p2 = pnand %p7671_p12, %p7665_p3 }
  0x94   : > { %v7173_v4 = vld [vmem:[#allocation5 + $0x3bc] ss:$36 sps:$4 sm:$0xff]  }
  0x95   : > { %1645 = vmatpush1.bf16.msra.mxu0 %v7034_v38  ;;  %1791 = vmatpush1.bf16.msra.mxu1 %v7035_v39  ;;  %v265_v38 = vld [vmem:[%s7951_s13 + $0x98] sm:$0xff]  ;;  %v268_v39 = vld [vmem:[%s7951_s13 + $0xb0] sm:$0xff] }
  0x96   : > { %1646 = vmatprep.subr.bf16.mxu0 %v7036_v40  ;;  %1792 = vmatprep.subr.bf16.mxu1 %v7038_v41  ;;  %v7104_v40 = vld [vmem:[#allocation5 + $0x5ec] ss:$36 sps:$4 sm:$0xff]   ;;  %v7107_v41 = vld [vmem:[#allocation5 + $0x5f4] ss:$36 sps:$4 sm:$0xff]  }
  0x99   : > { %1647 = vmatpush1.bf16.msra.mxu0 %v7040_v42  ;;  %1793 = vmatpush1.bf16.msra.mxu1 %v7041_v43  ;;  %v7102_v42 = vld [vmem:[#allocation5 + $0x5e8] ss:$36 sps:$4 sm:$0xff]   ;;  %v7105_v43 = vld [vmem:[#allocation5 + $0x5f0] ss:$36 sps:$4 sm:$0xff]  }
  0x9a   : > { %1648 = vmatprep.subr.bf16.mxu0 %v7042_v44  ;;  %1794 = vmatprep.subr.bf16.mxu1 %v7044_v45  ;;  %v7997_v44 = vpack.c.bf16 %v268_v39, %v265_v38  ;;  %v264_v45 = vld [vmem:[%s7951_s13 + $0x90] sm:$0xff]  ;;  %v7186_v38 = vld [vmem:[#allocation5 + $0x1c8] ss:$36 sps:$4 sm:$0xff]  }
  0x9b   : > { %v8005_v49 = vpack.c.bf16 %v267_v46, %v264_v45  ;;  %v7143_v39 = vld [vmem:[#allocation5 + $0x20c] ss:$36 sps:$4 sm:$0xff]   ;;  %v7200_v45 = vld [vmem:[#allocation5 + $0x25c] ss:$36 sps:$4 sm:$0xff]  }
  0x9c   : > { %v7144_v46 = vld [vmem:[#allocation5 + $0x250] ss:$36 sps:$4 sm:$0xff]  }
  0x9d   : > { %1649 = vmatpush1.bf16.msra.mxu0 %v7046_v47  ;;  %1795 = vmatpush1.bf16.msra.mxu1 %v7047_v48  ;;  %v7110_v47 = vld [vmem:[#allocation5 + $0x634] ss:$36 sps:$4 sm:$0xff]   ;;  %v7113_v48 = vld [vmem:[#allocation5 + $0x63c] ss:$36 sps:$4 sm:$0xff]  }
  0x9e   : > { %1650 = vmatprep.subr.bf16.mxu0 %v7048_v50  ;;  %1796 = vmatprep.subr.bf16.mxu1 %v7050_v52  ;;  %v7108_v50 = vld [vmem:[#allocation5 + $0x630] ss:$36 sps:$4 sm:$0xff]   ;;  %v7111_v52 = vld [vmem:[#allocation5 + $0x638] ss:$36 sps:$4 sm:$0xff]  }
  0xa1   : > { %1651 = vmatpush1.bf16.msra.mxu0 %v7052_v53  ;;  %1797 = vmatpush1.bf16.msra.mxu1 %v7053_v54  ;;  %v7116_v53 = vld [vmem:[#allocation5 + $0x67c] ss:$36 sps:$4 sm:$0xff]   ;;  %v7119_v54 = vld [vmem:[#allocation5 + $0x684] ss:$36 sps:$4 sm:$0xff]  }
  0xa2   : > { %1652 = vmatprep.subr.bf16.mxu0 %v7054_v55  ;;  %1798 = vmatprep.subr.bf16.mxu1 %v7056_v56  ;;  %v7114_v55 = vld [vmem:[#allocation5 + $0x678] ss:$36 sps:$4 sm:$0xff]   ;;  %v7117_v56 = vld [vmem:[#allocation5 + $0x680] ss:$36 sps:$4 sm:$0xff]  }
  0xa5   : > { %1653 = vmatpush1.bf16.msra.mxu0 %v7058_v57  ;;  %1799 = vmatpush1.bf16.msra.mxu1 %v7059_v58  ;;  %v248_v57 = vld [vmem:[%s7951_s13 + $0x10] sm:$0xff]  ;;  %v251_v58 = vld [vmem:[%s7951_s13 + $0x28] sm:$0xff] }
  0xa6   : > { %1654 = vmatprep.subr.bf16.mxu0 %v7060_v59  ;;  %1800 = vmatprep.subr.bf16.mxu1 %v7062_v60  ;;  %v7122_v59 = vld [vmem:[#allocation5 + $0x14] ss:$36 sps:$4 sm:$0xff]   ;;  %v7152_v60 = vld [vmem:[#allocation5 + $0x1c] ss:$36 sps:$4 sm:$0xff]  }
  0xa9   : > { %1655 = vmatpush1.bf16.msra.mxu0 %v7064_v61  ;;  %1801 = vmatpush1.bf16.msra.mxu1 %v7065_v62  ;;  %v8908_v61 = vmov 0   ;;  %v8013_v62 = vpack.c.bf16 %v251_v58, %v248_v57  ;;  %v7161_v57 = vld [vmem:[#allocation5 + $0x32c] ss:$36 sps:$4 sm:$0xff]  }
  0xaa   : > { %1656 = vmatprep.subr.bf16.mxu0 %v7066_v63  ;;  %1802 = vmatprep.subr.bf16.mxu1 %v7068_v0  ;;  %v7120_v63 = vld [vmem:[#allocation5 + $0x10] ss:$36 sps:$4 sm:$0xff]   ;;  %v7150_v0 = vld [vmem:[#allocation5 + $0x18] ss:$36 sps:$4 sm:$0xff]   ;;  %v7210_v58 = vld [vmem:[#allocation5 + $0x2e8] ss:$36 sps:$4 sm:$0xff]  }
  0xad   : > { %1657 = vmatpush1.bf16.msra.mxu0 %v7070_v1  ;;  %1803 = vmatpush1.bf16.msra.mxu1 %v7071_v2  ;;  %v7125_v1 = vld [vmem:[#allocation5 + $0x5c] ss:$36 sps:$4 sm:$0xff]   ;;  %v7158_v2 = vld [vmem:[#allocation5 + $0x64] ss:$36 sps:$4 sm:$0xff]  }
  0xae   : > { %1699 = vmatprep.subr.bf16.mxu0 %v7074_v5  ;;  %1845 = vmatprep.subr.bf16.mxu1 %v7077_v6  ;;  %v7123_v5 = vld [vmem:[#allocation5 + $0x58] ss:$36 sps:$4 sm:$0xff]   ;;  %v7156_v6 = vld [vmem:[#allocation5 + $0x60] ss:$36 sps:$4 sm:$0xff]  }
  0xb0   : > { %1659 = vmatmul.mubr.bf16.vlgmr.msra.gmra.mrb[0].mxu0 %v7969_v8  ;;  %1805 = vmatmul.mubr.bf16.vlgmr.msra.gmra.mrb[0].mxu1 %v7969_v8 }
  0xb1   : > { %1700 = vmatpush1.bf16.msra.mxu0 %v7072_v7  ;;  %1846 = vmatpush1.bf16.msra.mxu1 %v7075_v9  ;;  %v7128_v7 = vld [vmem:[#allocation5 + $0xa4] ss:$36 sps:$4 sm:$0xff]   ;;  %v7164_v9 = vld [vmem:[#allocation5 + $0xac] ss:$36 sps:$4 sm:$0xff]  }
  0xb2   : > { %1701 = vmatprep.subr.bf16.mxu0 %v7080_v12  ;;  %1847 = vmatprep.subr.bf16.mxu1 %v7083_v13  ;;  %v7162_v12 = vld [vmem:[#allocation5 + $0xa8] ss:$36 sps:$4 sm:$0xff]  }
  0xb3   : > { %1668 = vmatprep.mubr.bf16.mxu0 %v7973_v15  ;;  %1814 = vmatprep.mubr.bf16.mxu1 %v7973_v15  ;;  %v7131_v13 = vld [vmem:[#allocation5 + $0xec] ss:$36 sps:$4 sm:$0xff]  }
  0xb5   : > { %1702 = vmatpush1.bf16.msra.mxu0 %v7078_v14  ;;  %1848 = vmatpush1.bf16.msra.mxu1 %v7081_v16  ;;  %v7170_v14 = vld [vmem:[#allocation5 + $0xf4] ss:$36 sps:$4 sm:$0xff]  }
  0xb6   : > { %1703 = vmatprep.subr.bf16.mxu0 %v7086_v19  ;;  %1849 = vmatprep.subr.bf16.mxu1 %v7089_v20  ;;  %v260_v16 = vld [vmem:[%s7951_s13 + $0x70] sm:$0xff] }
  0xb7   : > { %v7168_v19 = vld [vmem:[#allocation5 + $0xf0] ss:$36 sps:$4 sm:$0xff]  }
  0xb8   : > { %1669 = vmatmul.mubr.bf16.gmra.mrb[4].mxu0 %v7981_v22  ;;  %1815 = vmatmul.mubr.bf16.gmra.mrb[4].mxu1 %v7981_v22  ;;  %v7134_v20 = vld [vmem:[#allocation5 + $0x134] ss:$36 sps:$4 sm:$0xff]  }
  0xb9   : > { %1704 = vmatpush1.bf16.msra.mxu0 %v7084_v21  ;;  %1850 = vmatpush1.bf16.msra.mxu1 %v7087_v23  ;;  %v7176_v21 = vld [vmem:[#allocation5 + $0x13c] ss:$36 sps:$4 sm:$0xff]   ;;  %v8029_v23 = vpack.c.bf16 %v263_v17, %v260_v16  ;;  %v7239_v16 = vld [vmem:[#allocation5 + $0x454] ss:$36 sps:$4 sm:$0xff]   ;;  %v7183_v17 = vld [vmem:[#allocation5 + $0x448] ss:$36 sps:$4 sm:$0xff]  }
  0xba   : > { %1705 = vmatprep.subr.bf16.mxu0 %v7092_v26  ;;  %1851 = vmatprep.subr.bf16.mxu1 %v7095_v27  ;;  %v7137_v26 = vld [vmem:[#allocation5 + $0x17c] ss:$36 sps:$4 sm:$0xff]   ;;  %v7182_v27 = vld [vmem:[#allocation5 + $0x184] ss:$36 sps:$4 sm:$0xff]  }
  0xbb   : > { %1678 = vmatprep.mubr.bf16.mxu0 %v7985_v30  ;;  %1824 = vmatprep.mubr.bf16.mxu1 %v7985_v30 }
  0xbd   : > { %1706 = vmatpush1.bf16.msra.mxu0 %v7090_v28  ;;  %1852 = vmatpush1.bf16.msra.mxu1 %v7093_v29  ;;  %v266_v28 = vld [vmem:[%s7951_s13 + $0xa0] sm:$0xff]  ;;  %v269_v29 = vld [vmem:[%s7951_s13 + $0xb8] sm:$0xff] }
  0xbe   : > { %1707 = vmatprep.subr.bf16.mxu0 %v7098_v33  ;;  %1853 = vmatprep.subr.bf16.mxu1 %v7101_v34  ;;  %v7140_v33 = vld [vmem:[#allocation5 + $0x1c4] ss:$36 sps:$4 sm:$0xff]   ;;  %v7188_v34 = vld [vmem:[#allocation5 + $0x1cc] ss:$36 sps:$4 sm:$0xff]  }
  0xc0   : > { %1679 = vmatmul.mubr.bf16.gmra.mrb[8].mxu0 %v7993_v37  ;;  %1825 = vmatmul.mubr.bf16.gmra.mrb[8].mxu1 %v7993_v37 }
  0xc1   : > { %1708 = vmatpush1.bf16.msra.mxu0 %v7096_v35  ;;  %1854 = vmatpush1.bf16.msra.mxu1 %v7099_v36  ;;  %v8037_v35 = vpack.c.bf16 %v269_v29, %v266_v28  ;;  %v7138_v36 = vld [vmem:[#allocation5 + $0x1c0] ss:$36 sps:$4 sm:$0xff]  }
  0xc2   : > { %1709 = vmatprep.subr.bf16.mxu0 %v7104_v40  ;;  %1855 = vmatprep.subr.bf16.mxu1 %v7107_v41  ;;  %v7194_v40 = vld [vmem:[#allocation5 + $0x214] ss:$36 sps:$4 sm:$0xff]   ;;  %v7141_v41 = vld [vmem:[#allocation5 + $0x208] ss:$36 sps:$4 sm:$0xff]   ;;  %v7243_v29 = vld [vmem:[#allocation5 + $0x4e0] ss:$36 sps:$4 sm:$0xff]  }
  0xc3   : > { %1688 = vmatprep.mubr.bf16.mxu0 %v7997_v44  ;;  %1834 = vmatprep.mubr.bf16.mxu1 %v7997_v44  ;;  %v7203_v28 = vld [vmem:[#allocation5 + $0x524] ss:$36 sps:$4 sm:$0xff]  }
  0xc5   : > { %1710 = vmatpush1.bf16.msra.mxu0 %v7102_v42  ;;  %1856 = vmatpush1.bf16.msra.mxu1 %v7105_v43  ;;  %v7192_v42 = vld [vmem:[#allocation5 + $0x210] ss:$36 sps:$4 sm:$0xff]  }
  0xc6   : > { %1711 = vmatprep.subr.bf16.mxu0 %v7110_v47  ;;  %1857 = vmatprep.subr.bf16.mxu1 %v7113_v48  ;;  %v7146_v43 = vld [vmem:[#allocation5 + $0x254] ss:$36 sps:$4 sm:$0xff]   ;;  %v7149_v47 = vld [vmem:[#allocation5 + $0x29c] ss:$36 sps:$4 sm:$0xff]  }
  0xc7   : > { %v7198_v48 = vld [vmem:[#allocation5 + $0x258] ss:$36 sps:$4 sm:$0xff]  }
  0xc8   : > { %1689 = vmatmul.mubr.bf16.gmra.mrb[12].mxu0 %v8005_v49  ;;  %1835 = vmatmul.mubr.bf16.gmra.mrb[12].mxu1 %v8005_v49 }
  0xc9   : > { %1712 = vmatpush1.bf16.msra.mxu0 %v7108_v50  ;;  %1858 = vmatpush1.bf16.msra.mxu1 %v7111_v52  ;;  %v7206_v50 = vld [vmem:[#allocation5 + $0x2a4] ss:$36 sps:$4 sm:$0xff]   ;;  %v7147_v52 = vld [vmem:[#allocation5 + $0x298] ss:$36 sps:$4 sm:$0xff]  }
  0xca   : > { %1713 = vmatprep.subr.bf16.mxu0 %v7116_v53  ;;  %1859 = vmatprep.subr.bf16.mxu1 %v7119_v54  ;;  %v7155_v53 = vld [vmem:[#allocation5 + $0x2e4] ss:$36 sps:$4 sm:$0xff]  }
  0xcb   : > { %1731 = vmatprep.mubr.bf16.mxu0 %v8908_v61  ;;  %1877 = vmatprep.mubr.bf16.mxu1 %v8908_v61  ;;  %v7204_v54 = vld [vmem:[#allocation5 + $0x2a0] ss:$36 sps:$4 sm:$0xff]  }
  0xcd   : > { %1714 = vmatpush1.bf16.msra.mxu0 %v7114_v55  ;;  %1860 = vmatpush1.bf16.msra.mxu1 %v7117_v56  ;;  %v7212_v55 = vld [vmem:[#allocation5 + $0x2ec] ss:$36 sps:$4 sm:$0xff]   ;;  %v7153_v56 = vld [vmem:[#allocation5 + $0x2e0] ss:$36 sps:$4 sm:$0xff]  }
  0xce   : > { %1918 = vmatprep.subr.bf16.mxu0 %v7122_v59  ;;  %2064 = vmatprep.subr.bf16.mxu1 %v7152_v60  ;;  %v7218_v59 = vld [vmem:[#allocation5 + $0x334] ss:$36 sps:$4 sm:$0xff]   ;;  %v7159_v60 = vld [vmem:[#allocation5 + $0x328] ss:$36 sps:$4 sm:$0xff]  }
  0xd0   : > { %1732 = vmatmul.mubr.bf16.vlgmr.msra.gmra.mrb[0].mxu0 %v8013_v62  ;;  %1878 = vmatmul.mubr.bf16.vlgmr.msra.gmra.mrb[0].mxu1 %v8013_v62 }
  0xd1   : > { %1741 = vmatprep.mubr.bf16.mxu0 %v8908_v61  ;;  %1887 = vmatprep.mubr.bf16.mxu1 %v8908_v61 }
  0xd2   : > { %1919 = vmatpush1.bf16.msra.mxu0 %v7120_v63  ;;  %2065 = vmatpush1.bf16.msra.mxu1 %v7150_v0  ;;  %v7167_v63 = vld [vmem:[#allocation5 + $0x374] ss:$36 sps:$4 sm:$0xff]  }
  0xd3   : > { %1920 = vmatprep.subr.bf16.mxu0 %v7125_v1  ;;  %2066 = vmatprep.subr.bf16.mxu1 %v7158_v2  ;;  %v7216_v0 = vld [vmem:[#allocation5 + $0x330] ss:$36 sps:$4 sm:$0xff]   ;;  %v7224_v1 = vld [vmem:[#allocation5 + $0x37c] ss:$36 sps:$4 sm:$0xff]  }
  0xd4   : > { %v7165_v2 = vld [vmem:[#allocation5 + $0x370] ss:$36 sps:$4 sm:$0xff]  }
  0xd6   : > { %1921 = vmatpush1.bf16.msra.mxu0 %v7123_v5  ;;  %2067 = vmatpush1.bf16.msra.mxu1 %v7156_v6  ;;  %v7230_v5 = vld [vmem:[#allocation5 + $0x3c4] ss:$36 sps:$4 sm:$0xff]   ;;  %v7171_v6 = vld [vmem:[#allocation5 + $0x3b8] ss:$36 sps:$4 sm:$0xff]  }
  0xd7   : > { %1922 = vmatprep.subr.bf16.mxu0 %v7128_v7  ;;  %2068 = vmatprep.subr.bf16.mxu1 %v7164_v9  ;;  %v7179_v7 = vld [vmem:[#allocation5 + $0x404] ss:$36 sps:$4 sm:$0xff]  }
  0xd8   : > { %1742 = vmatmul.mubr.bf16.gmra.mrb[4].mxu0 %v8021_v10  ;;  %1888 = vmatmul.mubr.bf16.gmra.mrb[4].mxu1 %v8021_v10  ;;  %v7228_v9 = vld [vmem:[#allocation5 + $0x3c0] ss:$36 sps:$4 sm:$0xff]  }
  0xd9   : > { %1751 = vmatprep.mubr.bf16.mxu0 %v8908_v61  ;;  %1897 = vmatprep.mubr.bf16.mxu1 %v8908_v61 }
  0xda   : > { %1923 = vmatpush1.bf16.msra.mxu0 %v7126_v11  ;;  %2069 = vmatpush1.bf16.msra.mxu1 %v7162_v12  ;;  %v7236_v11 = vld [vmem:[#allocation5 + $0x40c] ss:$36 sps:$4 sm:$0xff]   ;;  %v7177_v12 = vld [vmem:[#allocation5 + $0x400] ss:$36 sps:$4 sm:$0xff]  }
  0xdb   : > { %1924 = vmatprep.subr.bf16.mxu0 %v7131_v13  ;;  %2070 = vmatprep.subr.bf16.mxu1 %v7170_v14  ;;  %v7185_v13 = vld [vmem:[#allocation5 + $0x44c] ss:$36 sps:$4 sm:$0xff]  }
  0xdc   : > { %v7234_v14 = vld [vmem:[#allocation5 + $0x408] ss:$36 sps:$4 sm:$0xff]  }
  0xde   : > { %1925 = vmatpush1.bf16.msra.mxu0 %v7129_v18  ;;  %2071 = vmatpush1.bf16.msra.mxu1 %v7168_v19  ;;  %v7191_v18 = vld [vmem:[#allocation5 + $0x494] ss:$36 sps:$4 sm:$0xff]  }
  0xdf   : > { %1926 = vmatprep.subr.bf16.mxu0 %v7134_v20  ;;  %2072 = vmatprep.subr.bf16.mxu1 %v7176_v21  ;;  %v7237_v19 = vld [vmem:[#allocation5 + $0x450] ss:$36 sps:$4 sm:$0xff]   ;;  %v7242_v20 = vld [vmem:[#allocation5 + $0x49c] ss:$36 sps:$4 sm:$0xff]  }
  0xe0   : > { %1752 = vmatmul.mubr.bf16.gmra.mrb[8].mxu0 %v8029_v23  ;;  %1898 = vmatmul.mubr.bf16.gmra.mrb[8].mxu1 %v8029_v23  ;;  %v7189_v21 = vld [vmem:[#allocation5 + $0x490] ss:$36 sps:$4 sm:$0xff]  }
  0xe1   : > { %1761 = vmatprep.mubr.bf16.mxu0 %v8908_v61  ;;  %1907 = vmatprep.mubr.bf16.mxu1 %v8908_v61 }
  0xe2   : > { %1927 = vmatpush1.bf16.msra.mxu0 %v7132_v24  ;;  %2073 = vmatpush1.bf16.msra.mxu1 %v7174_v25  ;;  %v7197_v24 = vld [vmem:[#allocation5 + $0x4dc] ss:$36 sps:$4 sm:$0xff]  }
  0xe3   : > { %1928 = vmatprep.subr.bf16.mxu0 %v7137_v26  ;;  %2074 = vmatprep.subr.bf16.mxu1 %v7182_v27  ;;  %v7240_v25 = vld [vmem:[#allocation5 + $0x498] ss:$36 sps:$4 sm:$0xff]   ;;  %v7245_v26 = vld [vmem:[#allocation5 + $0x4e4] ss:$36 sps:$4 sm:$0xff]  }
  0xe4   : > { %v7195_v27 = vld [vmem:[#allocation5 + $0x4d8] ss:$36 sps:$4 sm:$0xff]  }
  0xe6   : > { %1929 = vmatpush1.bf16.msra.mxu0 %v7135_v31  ;;  %2075 = vmatpush1.bf16.msra.mxu1 %v7180_v32  ;;  %v7249_v31 = vld [vmem:[#allocation5 + $0x52c] ss:$36 sps:$4 sm:$0xff]   ;;  %v7201_v32 = vld [vmem:[#allocation5 + $0x520] ss:$36 sps:$4 sm:$0xff]  }
  0xe7   : > { %1930 = vmatprep.subr.bf16.mxu0 %v7140_v33  ;;  %2076 = vmatprep.subr.bf16.mxu1 %v7188_v34  ;;  %v7209_v33 = vld [vmem:[#allocation5 + $0x56c] ss:$36 sps:$4 sm:$0xff]  }
  0xe8   : > { %1762 = vmatmul.mubr.bf16.gmra.mrb[12].mxu0 %v8037_v35  ;;  %1908 = vmatmul.mubr.bf16.gmra.mrb[12].mxu1 %v8037_v35  ;;  %v7247_v34 = vld [vmem:[#allocation5 + $0x528] ss:$36 sps:$4 sm:$0xff]  }
  0xe9   : > { %1950 = vmatprep.mubr.bf16.mxu0 %v7963_v51  ;;  %2096 = vmatprep.mubr.bf16.mxu1 %v7963_v51 }
  0xea   : > { %1931 = vmatpush1.bf16.msra.mxu0 %v7138_v36  ;;  %2077 = vmatpush1.bf16.msra.mxu1 %v7186_v38  ;;  %v7254_v36 = vld [vmem:[#allocation5 + $0x574] ss:$36 sps:$4 sm:$0xff]   ;;  %v7207_v38 = vld [vmem:[#allocation5 + $0x568] ss:$36 sps:$4 sm:$0xff]  }
  0xeb   : > { %1932 = vmatprep.subr.bf16.mxu0 %v7143_v39  ;;  %2078 = vmatprep.subr.bf16.mxu1 %v7194_v40  ;;  %v7215_v39 = vld [vmem:[#allocation5 + $0x5b4] ss:$36 sps:$4 sm:$0xff]  }
  0xec   : > { %v7252_v40 = vld [vmem:[#allocation5 + $0x570] ss:$36 sps:$4 sm:$0xff]  }
  0xee   : > { %1933 = vmatpush1.bf16.msra.mxu0 %v7141_v41  ;;  %2079 = vmatpush1.bf16.msra.mxu1 %v7192_v42  ;;  %v7259_v41 = vld [vmem:[#allocation5 + $0x5bc] ss:$36 sps:$4 sm:$0xff]   ;;  %v7213_v42 = vld [vmem:[#allocation5 + $0x5b0] ss:$36 sps:$4 sm:$0xff]  }
  0xef   : > { %1934 = vmatprep.subr.bf16.mxu0 %v7146_v43  ;;  %2080 = vmatprep.subr.bf16.mxu1 %v7200_v45  ;;  %v7221_v43 = vld [vmem:[#allocation5 + $0x5fc] ss:$36 sps:$4 sm:$0xff]  }
  0xf0   : > { %v7257_v45 = vld [vmem:[#allocation5 + $0x5b8] ss:$36 sps:$4 sm:$0xff]  }
  0xf2   : > { %1935 = vmatpush1.bf16.msra.mxu0 %v7144_v46  ;;  %2081 = vmatpush1.bf16.msra.mxu1 %v7198_v48  ;;  %v7264_v46 = vld [vmem:[#allocation5 + $0x604] ss:$36 sps:$4 sm:$0xff]  }
  0xf3   : > { %1936 = vmatprep.subr.bf16.mxu0 %v7149_v47  ;;  %2082 = vmatprep.subr.bf16.mxu1 %v7206_v50  ;;  %v7219_v47 = vld [vmem:[#allocation5 + $0x5f8] ss:$36 sps:$4 sm:$0xff]   ;;  %v7227_v48 = vld [vmem:[#allocation5 + $0x644] ss:$36 sps:$4 sm:$0xff]  }
  0xf4   : > { %v7262_v50 = vld [vmem:[#allocation5 + $0x600] ss:$36 sps:$4 sm:$0xff]  }
  0xf6   : > { %1937 = vmatpush1.bf16.msra.mxu0 %v7147_v52  ;;  %2083 = vmatpush1.bf16.msra.mxu1 %v7204_v54  ;;  %v7269_v52 = vld [vmem:[#allocation5 + $0x64c] ss:$36 sps:$4 sm:$0xff]  }
  0xf7   : > { %1938 = vmatprep.subr.bf16.mxu0 %v7155_v53  ;;  %2084 = vmatprep.subr.bf16.mxu1 %v7212_v55  ;;  %v7225_v53 = vld [vmem:[#allocation5 + $0x640] ss:$36 sps:$4 sm:$0xff]   ;;  %v7233_v54 = vld [vmem:[#allocation5 + $0x68c] ss:$36 sps:$4 sm:$0xff]  }
  0xf8   : > { %v7267_v55 = vld [vmem:[#allocation5 + $0x648] ss:$36 sps:$4 sm:$0xff]  }
  0xfa   : > { %1939 = vmatpush1.bf16.msra.mxu0 %v7153_v56  ;;  %2085 = vmatpush1.bf16.msra.mxu1 %v7210_v58  ;;  %v7274_v56 = vld [vmem:[#allocation5 + $0x694] ss:$36 sps:$4 sm:$0xff]   ;;  %v7246_v58 = vld [vmem:[#allocation5 + $0x260] ss:$36 sps:$4 sm:$0xff]  }
  0xfb   : > { %1940 = vmatprep.subr.bf16.mxu0 %v7161_v57  ;;  %2086 = vmatprep.subr.bf16.mxu1 %v7218_v59  ;;  %v7231_v57 = vld [vmem:[#allocation5 + $0x688] ss:$36 sps:$4 sm:$0xff]   ;;  %v7272_v59 = vld [vmem:[#allocation5 + $0x690] ss:$36 sps:$4 sm:$0xff]  }
  0xfe   : > { %1941 = vmatpush1.bf16.msra.mxu0 %v7159_v60  ;;  %2087 = vmatpush1.bf16.msra.mxu1 %v7216_v0  ;;  %v7278_v60 = vld [vmem:[#allocation5 + $0x4a0] ss:$36 sps:$4 sm:$0xff]   ;;  %v7251_v0 = vld [vmem:[#allocation5 + $0x2a8] ss:$36 sps:$4 sm:$0xff]  }
  0xff   : > { %1942 = vmatprep.subr.bf16.mxu0 %v7167_v63  ;;  %2088 = vmatprep.subr.bf16.mxu1 %v7224_v1  ;;  %v7250_v63 = vld [vmem:[#allocation5 + $0x20] ss:$36 sps:$4 sm:$0xff]   ;;  %v7281_v1 = vld [vmem:[#allocation5 + $0x4e8] ss:$36 sps:$4 sm:$0xff]  }
 0x102   : > { %1943 = vmatpush1.bf16.msra.mxu0 %v7165_v2  ;;  %2089 = vmatpush1.bf16.msra.mxu1 %v7222_v3  ;;  %v7255_v2 = vld [vmem:[#allocation5 + $0x68] ss:$36 sps:$4 sm:$0xff]   ;;  %v7256_v3 = vld [vmem:[#allocation5 + $0x2f0] ss:$36 sps:$4 sm:$0xff]  }
 0x103   : > { %1944 = vmatprep.subr.bf16.mxu0 %v7173_v4  ;;  %2090 = vmatprep.subr.bf16.mxu1 %v7230_v5  ;;  %v7282_v4 = vld [vmem:[#allocation5 + $0x530] ss:$36 sps:$4 sm:$0xff]  }
 0x104   : > { %v7260_v5 = vld [vmem:[#allocation5 + $0xb0] ss:$36 sps:$4 sm:$0xff]  }
 0x106   : > { %1945 = vmatpush1.bf16.msra.mxu0 %v7171_v6  ;;  %2091 = vmatpush1.bf16.msra.mxu1 %v7228_v9  ;;  %v7261_v6 = vld [vmem:[#allocation5 + $0x338] ss:$36 sps:$4 sm:$0xff]  }
 0x107   : > { %1946 = vmatprep.subr.bf16.mxu0 %v7179_v7  ;;  %2092 = vmatprep.subr.bf16.mxu1 %v7236_v11  ;;  %v7283_v7 = vld [vmem:[#allocation5 + $0x578] ss:$36 sps:$4 sm:$0xff]   ;;  %v7266_v11 = vld [vmem:[#allocation5 + $0x380] ss:$36 sps:$4 sm:$0xff]  }
 0x108   : > { %v7265_v9 = vld [vmem:[#allocation5 + $0xf8] ss:$36 sps:$4 sm:$0xff]  }
 0x10a   : > { %1947 = vmatpush1.bf16.msra.mxu0 %v7177_v12  ;;  %2093 = vmatpush1.bf16.msra.mxu1 %v7234_v14  ;;  %v7284_v12 = vld [vmem:[#allocation5 + $0x5c0] ss:$36 sps:$4 sm:$0xff]   ;;  %v7271_v14 = vld [vmem:[#allocation5 + $0x3c8] ss:$36 sps:$4 sm:$0xff]  }
 0x10b   : > { %1948 = vmatprep.subr.bf16.mxu0 %v7185_v13  ;;  %2094 = vmatprep.subr.bf16.mxu1 %v7239_v16  ;;  %v7270_v13 = vld [vmem:[#allocation5 + $0x140] ss:$36 sps:$4 sm:$0xff]   ;;  %v7285_v16 = vld [vmem:[#allocation5 + $0x608] ss:$36 sps:$4 sm:$0xff]  }
 0x10e   : > { %1949 = vmatpush1.bf16.msra.mxu0 %v7183_v17  ;;  %2095 = vmatpush1.bf16.msra.mxu1 %v7237_v19  ;;  %v7275_v17 = vld [vmem:[#allocation5 + $0x188] ss:$36 sps:$4 sm:$0xff]   ;;  %v7286_v19 = vld [vmem:[#allocation5 + $0x650] ss:$36 sps:$4 sm:$0xff]  }
 0x10f   : > { %1991 = vmatprep.subr.bf16.mxu0 %v7191_v18  ;;  %2137 = vmatprep.subr.bf16.mxu1 %v7242_v20  ;;  %v7276_v18 = vld [vmem:[#allocation5 + $0x410] ss:$36 sps:$4 sm:$0xff]  }
 0x110   : > { %v7277_v20 = vld [vmem:[#allocation5 + $0x1d0] ss:$36 sps:$4 sm:$0xff]  }
 0x111   : > { %1951 = vmatmul.mubr.bf16.vlgmr.msra.gmra.mrb[16].mxu0 %v7969_v8  ;;  %2097 = vmatmul.mubr.bf16.vlgmr.msra.gmra.mrb[16].mxu1 %v7969_v8 }
 0x112   : > { %1992 = vmatpush1.bf16.msra.mxu0 %v7189_v21  ;;  %1960 = vmatprep.mubr.bf16.mxu0 %v7973_v15  ;;  %v7279_v21 = vld [vmem:[#allocation5 + $0x458] ss:$36 sps:$4 sm:$0xff]  }
 0x113   : > { %1993 = vmatprep.subr.bf16.mxu0 %v7197_v24  ;;  %2138 = vmatpush1.bf16.msra.mxu1 %v7240_v25  ;;  %v7287_v24 = vld [vmem:[#allocation5 + $0x698] ss:$36 sps:$4 sm:$0xff]  }
 0x114   : > { %2139 = vmatprep.subr.bf16.mxu1 %v7245_v26  ;;  %2106 = vmatprep.mubr.bf16.mxu1 %v7973_v15  ;;  %v7280_v25 = vld [vmem:[#allocation5 + $0x218] ss:$36 sps:$4 sm:$0xff]  }
 0x116   : > { %1994 = vmatpush1.bf16.msra.mxu0 %v7195_v27 }
 0x117   : > { %1995 = vmatprep.subr.bf16.mxu0 %v7203_v28  ;;  %2140 = vmatpush1.bf16.msra.mxu1 %v7243_v29 }
 0x118   : > { %2141 = vmatprep.subr.bf16.mxu1 %v7249_v31 }
 0x119   : > { %1961 = vmatmul.mubr.bf16.gmra.mrb[20].mxu0 %v7981_v22  ;;  %2107 = vmatmul.mubr.bf16.gmra.mrb[20].mxu1 %v7981_v22 }
 0x11a   : > { %1996 = vmatpush1.bf16.msra.mxu0 %v7201_v32  ;;  %1970 = vmatprep.mubr.bf16.mxu0 %v7985_v30 }
 0x11b   : > { %1997 = vmatprep.subr.bf16.mxu0 %v7209_v33  ;;  %2142 = vmatpush1.bf16.msra.mxu1 %v7247_v34 }
 0x11c   : > { %2143 = vmatprep.subr.bf16.mxu1 %v7254_v36  ;;  %2116 = vmatprep.mubr.bf16.mxu1 %v7985_v30 }
 0x11e   : > { %1998 = vmatpush1.bf16.msra.mxu0 %v7207_v38 }
 0x11f   : > { %1999 = vmatprep.subr.bf16.mxu0 %v7215_v39  ;;  %2144 = vmatpush1.bf16.msra.mxu1 %v7252_v40 }
 0x120   : > { %2145 = vmatprep.subr.bf16.mxu1 %v7259_v41 }
 0x121   : > { %1971 = vmatmul.mubr.bf16.gmra.mrb[24].mxu0 %v7993_v37  ;;  %2117 = vmatmul.mubr.bf16.gmra.mrb[24].mxu1 %v7993_v37 }
 0x122   : > { %2000 = vmatpush1.bf16.msra.mxu0 %v7213_v42  ;;  %1980 = vmatprep.mubr.bf16.mxu0 %v7997_v44 }
 0x123   : > { %2001 = vmatprep.subr.bf16.mxu0 %v7221_v43  ;;  %2146 = vmatpush1.bf16.msra.mxu1 %v7257_v45 }
 0x124   : > { %2147 = vmatprep.subr.bf16.mxu1 %v7264_v46  ;;  %2126 = vmatprep.mubr.bf16.mxu1 %v7997_v44 }
 0x126   : > { %2002 = vmatpush1.bf16.msra.mxu0 %v7219_v47 }
 0x127   : > { %2003 = vmatprep.subr.bf16.mxu0 %v7227_v48  ;;  %2148 = vmatpush1.bf16.msra.mxu1 %v7262_v50 }
 0x128   : > { %2149 = vmatprep.subr.bf16.mxu1 %v7269_v52 }
 0x129   : > { %1981 = vmatmul.mubr.bf16.gmra.mrb[28].mxu0 %v8005_v49  ;;  %2127 = vmatmul.mubr.bf16.gmra.mrb[28].mxu1 %v8005_v49 }
 0x12a   : > { %2004 = vmatpush1.bf16.msra.mxu0 %v7225_v53  ;;  %2023 = vmatprep.mubr.bf16.mxu0 %v8908_v61 }
 0x12b   : > { %2005 = vmatprep.subr.bf16.mxu0 %v7233_v54  ;;  %2150 = vmatpush1.bf16.msra.mxu1 %v7267_v55 }
 0x12c   : > { %2151 = vmatprep.subr.bf16.mxu1 %v7274_v56  ;;  %2169 = vmatprep.mubr.bf16.mxu1 %v8908_v61 }
 0x12e   : > { %2006 = vmatpush1.bf16.msra.mxu0 %v7231_v57 }
 0x12f   : > { %6179 = vmatprep.subr.bf16.mxu0 %v7246_v58  ;;  %2152 = vmatpush1.bf16.msra.mxu1 %v7272_v59 }
 0x130   : > { %6375 = vmatprep.subr.bf16.mxu1 %v7278_v60 }
 0x131   : > { %2024 = vmatmul.mubr.bf16.vlgmr.msra.gmra.mrb[16].mxu0 %v8013_v62 }
 0x132   : > { %2033 = vmatprep.mubr.bf16.mxu0 %v8908_v61  ;;  %6180 = vmatpush3.bf16.msra.mxu0 %v7250_v63 }
 0x133   : > { %6181 = vmatprep.subr.bf16.mxu0 %v7251_v0  ;;  %2170 = vmatmul.mubr.bf16.vlgmr.msra.gmra.mrb[16].mxu1 %v8013_v62 }
 0x134   : > { %6376 = vmatpush3.bf16.msra.mxu1 %v7278_v60  ;;  %2179 = vmatprep.mubr.bf16.mxu1 %v8908_v61 }
 0x135   : > { %6377 = vmatprep.subr.bf16.mxu1 %v7281_v1 }
 0x136   : > { %6182 = vmatpush3.bf16.msra.mxu0 %v7255_v2 }
 0x137   : > { %6183 = vmatprep.subr.bf16.mxu0 %v7256_v3 }
 0x138   : > { %6378 = vmatpush3.bf16.msra.mxu1 %v7281_v1 }
 0x139   : > { %2034 = vmatmul.mubr.bf16.gmra.mrb[20].mxu0 %v8021_v10  ;;  %6379 = vmatprep.subr.bf16.mxu1 %v7282_v4 }
 0x13a   : > { %2043 = vmatprep.mubr.bf16.mxu0 %v8908_v61  ;;  %6184 = vmatpush3.bf16.msra.mxu0 %v7260_v5 }
 0x13b   : > { %6185 = vmatprep.subr.bf16.mxu0 %v7261_v6  ;;  %2180 = vmatmul.mubr.bf16.gmra.mrb[20].mxu1 %v8021_v10 }
 0x13c   : > { %6380 = vmatpush3.bf16.msra.mxu1 %v7282_v4  ;;  %2189 = vmatprep.mubr.bf16.mxu1 %v8908_v61 }
 0x13d   : > { %6381 = vmatprep.subr.bf16.mxu1 %v7283_v7 }
 0x13e   : > { %6186 = vmatpush3.bf16.msra.mxu0 %v7265_v9 }
 0x13f   : > { %6187 = vmatprep.subr.bf16.mxu0 %v7266_v11 }
 0x140   : > { %6382 = vmatpush3.bf16.msra.mxu1 %v7283_v7 }
 0x141   : > { %2044 = vmatmul.mubr.bf16.gmra.mrb[24].mxu0 %v8029_v23  ;;  %6383 = vmatprep.subr.bf16.mxu1 %v7284_v12 }
 0x142   : > { %2053 = vmatprep.mubr.bf16.mxu0 %v8908_v61  ;;  %6188 = vmatpush3.bf16.msra.mxu0 %v7270_v13 }
 0x143   : > { %6189 = vmatprep.subr.bf16.mxu0 %v7271_v14  ;;  %2190 = vmatmul.mubr.bf16.gmra.mrb[24].mxu1 %v8029_v23 }
 0x144   : > { %6384 = vmatpush3.bf16.msra.mxu1 %v7284_v12  ;;  %2199 = vmatprep.mubr.bf16.mxu1 %v8908_v61 }
 0x145   : > { %6385 = vmatprep.subr.bf16.mxu1 %v7285_v16 }
 0x146   : > { %6190 = vmatpush3.bf16.msra.mxu0 %v7275_v17 }
 0x147   : > { %6191 = vmatprep.subr.bf16.mxu0 %v7276_v18 }
 0x148   : > { %6386 = vmatpush3.bf16.msra.mxu1 %v7285_v16 }
 0x149   : > { %2054 = vmatmul.mubr.bf16.gmra.mrb[28].mxu0 %v8037_v35  ;;  %6387 = vmatprep.subr.bf16.mxu1 %v7286_v19 }
 0x14a   : > { %6192 = vmatpush3.bf16.msra.mxu0 %v7277_v20  ;;  %2242 = vmatprep.mubr.bf16.mxu0 %v7963_v51 }
 0x14b   : > { %6193 = vmatprep.subr.bf16.mxu0 %v7279_v21  ;;  %2200 = vmatmul.mubr.bf16.gmra.mrb[28].mxu1 %v8037_v35 }
 0x14c   : > { %6388 = vmatpush3.bf16.msra.mxu1 %v7286_v19  ;;  %6391 = vmatprep.mubr.bf16.mxu1 %v8013_v62 }
 0x14d   : > { %6389 = vmatprep.subr.bf16.mxu1 %v7287_v24 }
 0x14e   : > { %6194 = vmatpush3.bf16.msra.mxu0 %v7280_v25 }
 0x150   : > { %6390 = vmatpush3.bf16.msra.mxu1 %v7287_v24 }
 0x151   : > { %2243 = vmatmul.mubr.bf16.vlgmr.msra.gmra.mrb[32].mxu0 %v7969_v8 }
 0x152   : > { %2250 = vmatprep.mubr.bf16.mxu0 %v7973_v15 }
 0x153   : > { %6392 = vmatmul.mubr.bf16.vlgmr.msra.gmra.mrb[32].mxu1 %v8021_v10 }
 0x154   : > { %6395 = vmatprep.mubr.bf16.mxu1 %v8029_v23 }
 0x159   : > { %2251 = vmatmul.mubr.bf16.gmra.mrb[36].mxu0 %v7981_v22 }
 0x15a   : > { %2258 = vmatprep.mubr.bf16.mxu0 %v7985_v30 }
 0x15b   : > { %6396 = vmatmul.mubr.bf16.gmra.mrb[36].mxu1 %v8037_v35 }
 0x161   : > { %2259 = vmatmul.mubr.bf16.gmra.mrb[40].mxu0 %v7993_v37 }
 0x162   : > { %2266 = vmatprep.mubr.bf16.mxu0 %v7997_v44 }
 0x169   : > { %2267 = vmatmul.mubr.bf16.gmra.mrb[44].mxu0 %v8005_v49 }
 0x1a3   : > { %v1733_v51 = vpop.f32.mrb[0].mxu0  ;;  %v1879_v8 = vpop.f32.mrb[0].mxu1 }
 0x1a4   : > { %v1735_v62 = vpop.f32.mrb[1].mxu0  ;;  %v1881_v15 = vpop.f32.mrb[1].mxu1 }
 0x1a5   : > { %v1737_v26 = vpop.f32.mrb[2].mxu0  ;;  %v1883_v10 = vpop.f32.mrb[2].mxu1 }
 0x1a6   : > { %v8085_v23 = vpack.c.bf16 %v1737_v26, %v1733_v51  ;;  %v8087_v22 = vpack.c.bf16 %v1883_v10, %v1879_v8  ;;  %v1739_v30 = vpop.f32.mrb[3].mxu0  ;;  %v1885_v27 = vpop.f32.mrb[3].mxu1 }
 0x1a7   : > { %v8089_v35 = vpack.c.bf16 %v1739_v30, %v1735_v62  ;;  %v8091_v37 = vpack.c.bf16 %v1885_v27, %v1881_v15 }
 0x1a8   : > { %8931 = vst [vmem:[#allocation12_spill] sm:$0xff] %v8087_v22  ;;  %6407 = vmatprep.mubr.msk.bf16.mxu0 %vm2395_vm0, %v8085_v23 }
 0x1a9   : > { %6871 = vmatprep.subr.msk.bf16.mxu0 %vm2395_vm0, %v8091_v37  ;;  %v2409_v44 = vsel %vm2395_vm0, %v8091_v37, 0 }
 0x1aa   : > { %6400 = vmatpush3.bf16.xpose.msra.mxu0 %v2409_v44 }
 0x1ab   : > { %v1743_v49 = vpop.f32.mrb[4].mxu0  ;;  %v1889_v28 = vpop.f32.mrb[4].mxu1 }
 0x1ac   : > { %v1745_v29 = vpop.f32.mrb[5].mxu0  ;;  %v1891_v31 = vpop.f32.mrb[5].mxu1 }
 0x1ad   : > { %v1747_v32 = vpop.f32.mrb[6].mxu0  ;;  %v1893_v33 = vpop.f32.mrb[6].mxu1 }
 0x1ae   : > { %v8099_v34 = vpack.c.bf16 %v1747_v32, %v1743_v49  ;;  %v8101_v36 = vpack.c.bf16 %v1893_v33, %v1889_v28  ;;  %v1749_v38 = vpop.f32.mrb[7].mxu0  ;;  %v1895_v39 = vpop.f32.mrb[7].mxu1 }
 0x1af   : > { %v8103_v40 = vpack.c.bf16 %v1749_v38, %v1745_v29  ;;  %v8105_v41 = vpack.c.bf16 %v1895_v39, %v1891_v31 }
 0x1b0   : > { %8932 = vst [vmem:[#allocation13_spill] sm:$0xff] %v8101_v36 }
 0x1b1   : > { %6872 = vmatprep.subr.msk.bf16.mxu0 %vm2395_vm0, %v8105_v41  ;;  %v2412_v42 = vsel %vm2395_vm0, %v8105_v41, 0 }
 0x1b2   : > { %6402 = vmatpush3.bf16.xpose.msra.mxu0 %v2412_v42 }
 0x1b3   : > { %v1753_v43 = vpop.f32.mrb[8].mxu0  ;;  %v1899_v45 = vpop.f32.mrb[8].mxu1 }
 0x1b4   : > { %v1755_v46 = vpop.f32.mrb[9].mxu0  ;;  %v1901_v47 = vpop.f32.mrb[9].mxu1 }
 0x1b5   : > { %v1757_v48 = vpop.f32.mrb[10].mxu0  ;;  %v1903_v50 = vpop.f32.mrb[10].mxu1 }
 0x1b6   : > { %v8111_v52 = vpack.c.bf16 %v1757_v48, %v1753_v43  ;;  %v8113_v53 = vpack.c.bf16 %v1903_v50, %v1899_v45  ;;  %v1759_v54 = vpop.f32.mrb[11].mxu0  ;;  %v1905_v55 = vpop.f32.mrb[11].mxu1 }
 0x1b7   : > { %v8115_v56 = vpack.c.bf16 %v1759_v54, %v1755_v46  ;;  %v8117_v57 = vpack.c.bf16 %v1905_v55, %v1901_v47 }
 0x1b8   : > { %8933 = vst [vmem:[#allocation14_spill] sm:$0xff] %v8113_v53 }
 0x1b9   : > { %6873 = vmatprep.subr.msk.bf16.mxu0 %vm2395_vm0, %v8117_v57  ;;  %v2415_v58 = vsel %vm2395_vm0, %v8117_v57, 0 }
 0x1ba   : > { %6404 = vmatpush3.bf16.xpose.msra.mxu0 %v2415_v58 }
 0x1bb   : > { %v1763_v59 = vpop.f32.mrb[12].mxu0  ;;  %v1909_v60 = vpop.f32.mrb[12].mxu1 }
 0x1bc   : > { %v1765_v63 = vpop.f32.mrb[13].mxu0  ;;  %v1911_v0 = vpop.f32.mrb[13].mxu1 }
 0x1bd   : > { %v1767_v1 = vpop.f32.mrb[14].mxu0  ;;  %v1913_v2 = vpop.f32.mrb[14].mxu1 }
 0x1be   : > { %v8123_v3 = vpack.c.bf16 %v1767_v1, %v1763_v59  ;;  %v8125_v4 = vpack.c.bf16 %v1913_v2, %v1909_v60  ;;  %v1769_v5 = vpop.f32.mrb[15].mxu0  ;;  %v1915_v6 = vpop.f32.mrb[15].mxu1 }
 0x1bf   : > { %v8127_v7 = vpack.c.bf16 %v1769_v5, %v1765_v63  ;;  %v8129_v9 = vpack.c.bf16 %v1915_v6, %v1911_v0 }
 0x1c0   : > { %8934 = vst [vmem:[#allocation15_spill] sm:$0xff] %v8125_v4 }
 0x1c1   : > { %6874 = vmatprep.subr.msk.bf16.mxu0 %vm2395_vm0, %v8129_v9  ;;  %v2418_v11 = vsel %vm2395_vm0, %v8129_v9, 0 }
 0x1c2   : > { %6406 = vmatpush3.bf16.xpose.msra.mxu0 %v2418_v11 }
 0x1c9   : > { %6408 = vmatmul.mubr.msk.bf16.vlgmr.msra.gmra.mrb[48].mxu0 %vm2395_vm0, %v8099_v34 }
 0x1ca   : > { %6411 = vmatprep.mubr.msk.bf16.mxu0 %vm2395_vm0, %v8111_v52 }
 0x1d1   : > { %6412 = vmatmul.mubr.msk.bf16.gmra.mrb[52].mxu0 %vm2395_vm0, %v8123_v3 }
 0x1d2   : > { %3116 = vmatprep.mubr.bf16.mxu0 %v8908_v61 }
 0x204   : > { %v2025_v12 = vpop.f32.mrb[16].mxu0 }
 0x205   : > { %v2027_v13 = vpop.f32.mrb[17].mxu0 }
 0x206   : > { %v2029_v14 = vpop.f32.mrb[18].mxu0  ;;  %v2171_v16 = vpop.f32.mrb[16].mxu1 }
 0x207   : > { %v8142_v17 = vpack.c.bf16 %v2029_v14, %v2025_v12  ;;  %v2031_v18 = vpop.f32.mrb[19].mxu0  ;;  %v2173_v19 = vpop.f32.mrb[17].mxu1 }
 0x208   : > { %v8144_v20 = vpack.c.bf16 %v2031_v18, %v2027_v13  ;;  %v2175_v21 = vpop.f32.mrb[18].mxu1 }
 0x209   : > { %v8146_v24 = vpack.c.bf16 %v2175_v21, %v2171_v16  ;;  %v2177_v25 = vpop.f32.mrb[19].mxu1 }
 0x20a   : > { %v8148_v51 = vpack.c.bf16 %v2177_v25, %v2173_v19 }
 0x20b   : > { %6415 = vmatprep.subr.bf16.mxu1 %v8146_v24 }
 0x20c   : > { %v2035_v8 = vpop.f32.mrb[20].mxu0  ;;  %6416 = vmatpush3.bf16.msra.mxu1 %v8146_v24 }
 0x20d   : > { %v2037_v62 = vpop.f32.mrb[21].mxu0 }
 0x20e   : > { %v2039_v15 = vpop.f32.mrb[22].mxu0  ;;  %v2181_v26 = vpop.f32.mrb[20].mxu1 }
 0x20f   : > { %v8152_v10 = vpack.c.bf16 %v2039_v15, %v2035_v8  ;;  %v2041_v30 = vpop.f32.mrb[23].mxu0  ;;  %v2183_v27 = vpop.f32.mrb[21].mxu1 }
 0x210   : > { %v8154_v44 = vpack.c.bf16 %v2041_v30, %v2037_v62  ;;  %v2185_v49 = vpop.f32.mrb[22].mxu1 }
 0x211   : > { %v8156_v28 = vpack.c.bf16 %v2185_v49, %v2181_v26  ;;  %v2187_v29 = vpop.f32.mrb[23].mxu1 }
 0x212   : > { %8935 = vst [vmem:[#allocation16_spill] sm:$0xff] %v8154_v44  ;;  %v8158_v31 = vpack.c.bf16 %v2187_v29, %v2183_v27 }
 0x213   : > { %6417 = vmatprep.subr.bf16.mxu1 %v8156_v28 }
 0x214   : > { %v2045_v32 = vpop.f32.mrb[24].mxu0  ;;  %6418 = vmatpush3.bf16.msra.mxu1 %v8156_v28 }
 0x215   : > { %v2047_v33 = vpop.f32.mrb[25].mxu0 }
 0x216   : > { %v2049_v38 = vpop.f32.mrb[26].mxu0  ;;  %v2191_v39 = vpop.f32.mrb[24].mxu1 }
 0x217   : > { %v8162_v42 = vpack.c.bf16 %v2049_v38, %v2045_v32  ;;  %v2051_v43 = vpop.f32.mrb[27].mxu0  ;;  %v2193_v45 = vpop.f32.mrb[25].mxu1 }
 0x218   : > { %v8164_v46 = vpack.c.bf16 %v2051_v43, %v2047_v33  ;;  %v2195_v47 = vpop.f32.mrb[26].mxu1 }
 0x219   : > { %v8166_v48 = vpack.c.bf16 %v2195_v47, %v2191_v39  ;;  %v2197_v50 = vpop.f32.mrb[27].mxu1 }
 0x21a   : > { %8936 = vst [vmem:[#allocation17_spill] sm:$0xff] %v8164_v46  ;;  %v8168_v54 = vpack.c.bf16 %v2197_v50, %v2193_v45 }
 0x21b   : > { %6419 = vmatprep.subr.bf16.mxu1 %v8166_v48 }
 0x21c   : > { %v2055_v55 = vpop.f32.mrb[28].mxu0  ;;  %6420 = vmatpush3.bf16.msra.mxu1 %v8166_v48 }
 0x21d   : > { %v2057_v58 = vpop.f32.mrb[29].mxu0 }
 0x21e   : > { %v2059_v59 = vpop.f32.mrb[30].mxu0  ;;  %v2201_v60 = vpop.f32.mrb[28].mxu1 }
 0x21f   : > { %v8172_v63 = vpack.c.bf16 %v2059_v59, %v2055_v55  ;;  %v2061_v0 = vpop.f32.mrb[31].mxu0  ;;  %v2203_v1 = vpop.f32.mrb[29].mxu1 }
 0x220   : > { %v8174_v2 = vpack.c.bf16 %v2061_v0, %v2057_v58  ;;  %v2205_v5 = vpop.f32.mrb[30].mxu1 }
 0x221   : > { %v8176_v6 = vpack.c.bf16 %v2205_v5, %v2201_v60  ;;  %v2207_v11 = vpop.f32.mrb[31].mxu1 }
 0x222   : > { %8937 = vst [vmem:[#allocation18_spill] sm:$0xff] %v8174_v2  ;;  %v8178_v12 = vpack.c.bf16 %v2207_v11, %v2203_v1 }
 0x223   : > { %6421 = vmatprep.subr.bf16.mxu1 %v8176_v6 }
 0x224   : > { %v6195_v13 = vpop.f32.mrb[32].mxu0  ;;  %6422 = vmatpush3.bf16.msra.mxu1 %v8176_v6 }
 0x225   : > { %v6196_v14 = vpop.f32.mrb[33].mxu0 }
 0x226   : > { %v6197_v16 = vadd.f32 %v6196_v14, %v6195_v13  ;;  %v6198_v18 = vpop.f32.mrb[34].mxu0  ;;  %v6393_v19 = vpop.f32.mrb[32].mxu1 }
 0x227   : > { %v6199_v21 = vpop.f32.mrb[35].mxu0  ;;  %v2309_v25 = vpop.f32.mrb[33].mxu1 }
 0x228   : > { %v6200_v8 = vadd.f32 %v6199_v21, %v6198_v18  ;;  %v2310_v62 = vadd.f32 %v6197_v16, %v2309_v25  ;;  %v6394_v15 = vpop.f32.mrb[34].mxu1 }
 0x229   : > { %v2312_v26 = vpop.f32.mrb[35].mxu1 }
 0x22a   : > { %v2313_v30 = vadd.f32 %v6200_v8, %v2312_v26 }
 0x22c   : > { %v8182_v27 = vpack.c.bf16 %v2313_v30, %v2310_v62  ;;  %v6201_v49 = vpop.f32.mrb[36].mxu0 }
 0x22d   : > { %v6202_v29 = vpop.f32.mrb[37].mxu0 }
 0x22e   : > { %v6203_v32 = vadd.f32 %v6202_v29, %v6201_v49  ;;  %v6204_v33 = vpop.f32.mrb[38].mxu0  ;;  %v6397_v38 = vpop.f32.mrb[36].mxu1  ;;  %v2376_v29 = vlaneseq }
 0x22f   : > { %v6205_v39 = vpop.f32.mrb[39].mxu0  ;;  %v2325_v43 = vpop.f32.mrb[37].mxu1 }
 0x230   : > { %v2318_v45 = vadd.f32 %v6393_v19, %v6203_v32  ;;  %v6206_v47 = vadd.f32 %v6205_v39, %v6204_v33  ;;  %v6398_v50 = vpop.f32.mrb[38].mxu1  ;;  %v8190_v32 = vshrl.u32 %v2376_v29, 7  ;;  %v2386_v39 = vand.u32 127, %v2376_v29 }
 0x231   : > { %v2328_v55 = vpop.f32.mrb[39].mxu1 }
 0x232   : > { %v2321_v58 = vadd.f32 %v6394_v15, %v6206_v47  ;;  %8940 = vst [vmem:[#allocation21_spill] sm:$0xff] %v8190_v32  ;;  %v2379_v33 = vadd.s32 16, %v8190_v32  ;;  %vm8200_vm2 = vcmp.ge.s32.totalorder %v8190_v32, %v2386_v39 }
 0x234   : > { %v6207_v59 = vpop.f32.mrb[40].mxu0  ;;  %v8184_v60 = vpack.c.bf16 %v2321_v58, %v2318_v45  ;;  %v2378_v45 = vadd.s32 8, %v8190_v32  ;;  %vm8195_vm1 = vcmp.ge.s32.totalorder %v2379_v33, %v2386_v39 }
 0x235   : > { %v6208_v0 = vpop.f32.mrb[41].mxu0 }
 0x236   : > { %v6209_v1 = vadd.f32 %v6208_v0, %v6207_v59  ;;  %v6210_v5 = vpop.f32.mrb[42].mxu0  ;;  %vm8210_vm4 = vcmp.ge.s32.totalorder %v2378_v45, %v2386_v39 }
 0x237   : > { %v6211_v11 = vpop.f32.mrb[43].mxu0 }
 0x238   : > { %v6212_v13 = vadd.f32 %v6211_v11, %v6210_v5  ;;  %v2326_v14 = vadd.f32 %v6209_v1, %v2325_v43  ;;  %v2380_v43 = vadd.s32 24, %v8190_v32 }
 0x23a   : > { %v2329_v16 = vadd.f32 %v6212_v13, %v2328_v55  ;;  %vm8204_vm3 = vcmp.ge.s32.totalorder %v2380_v43, %v2386_v39  ;;  %v2383_v13 = vadd.s32 48, %v8190_v32 }
 0x23c   : > { %v8186_v18 = vpack.c.bf16 %v2329_v16, %v2326_v14  ;;  %v6213_v21 = vpop.f32.mrb[44].mxu0  ;;  %vm8225_vm5 = vcmp.ge.s32.totalorder %v2383_v13, %v2386_v39 }
 0x23d   : > { %v6214_v25 = vpop.f32.mrb[45].mxu0 }
 0x23e   : > { %8938 = vst [vmem:[#allocation19_spill] sm:$0xff] %v8186_v18  ;;  %v6215_v8 = vadd.f32 %v6214_v25, %v6213_v21  ;;  %v6216_v19 = vpop.f32.mrb[46].mxu0 }
 0x23f   : > { %v6217_v62 = vpop.f32.mrb[47].mxu0 }
 0x240   : > { %v2334_v26 = vadd.f32 %v6397_v38, %v6215_v8  ;;  %v6218_v30 = vadd.f32 %v6217_v62, %v6216_v19  ;;  %v2381_v8 = vadd.s32 32, %v8190_v32 }
 0x242   : > { %v2337_v15 = vadd.f32 %v6398_v50, %v6218_v30  ;;  %vm8234_vm6 = vcmp.ge.s32.totalorder %v2381_v8, %v2386_v39 }
 0x244   : > { %v8188_v49 = vpack.c.bf16 %v2337_v15, %v2334_v26 }
 0x246   : > { %8939 = vst [vmem:[#allocation20_spill] sm:$0xff] %v8188_v49 }
 0x29c   : > { %v6409_v50 = vpop.f32.mrb[48].mxu0 }
 0x29d   : > { %v2487_v58 = vsel %vm8195_vm1, %v6409_v50, -1e+30  ;;  %v2454_v59 = vpop.f32.mrb[49].mxu0 }
 0x29e   : > { %v2485_v1 = vsel %vm8200_vm2, %v2454_v59, -1e+30  ;;  %v6410_v5 = vpop.f32.mrb[50].mxu0  ;;  %v2499_v11 = vsel %vm2395_vm0, %v2487_v58, -inf }
 0x29f   : > { %v2488_v14 = vsel %vm8204_vm3, %v6410_v5, -1e+30  ;;  %2500 = vmax.xlane.f32.xlu1 %v2499_v11  ;;  %v2457_v16 = vpop.f32.mrb[51].mxu0  ;;  %v2493_v21 = vsel %vm2395_vm0, %v2485_v1, -inf  ;;  %v2384_v11 = vadd.s32 56, %v8190_v32 }
 0x2a0   : > { %v2486_v25 = vsel %vm8210_vm4, %v2457_v16, -1e+30  ;;  %2494 = vmax.xlane.f32.xlu0 %v2493_v21  ;;  %v2502_v19 = vsel %vm2395_vm0, %v2488_v14, -inf }
 0x2a1   : > { %v2496_v26 = vsel %vm2395_vm0, %v2486_v25, -inf  ;;  %vm8257_vm7 = vcmp.ge.s32.totalorder %v2384_v11, %v2386_v39 }
 0x2a3   : > { %2503 = vmax.xlane.f32.xlu1 %v2502_v19 }
 0x2a4   : > { %2497 = vmax.xlane.f32.xlu0 %v2496_v26  ;;  %v6413_v30 = vpop.f32.mrb[52].mxu0 }
 0x2a5   : > { %v8232_v15 = vsel %vm8225_vm5, %v6413_v30, -1e+30  ;;  %v2470_v33 = vpop.f32.mrb[53].mxu0 }
 0x2a6   : > { %v6414_v43 = vpop.f32.mrb[54].mxu0  ;;  %v2511_v45 = vsel %vm2395_vm0, %v8232_v15, -inf  ;;  %v8242_v59 = vsel %vm8234_vm6, %v2470_v33, -1e+30 }
 0x2a7   : > { %v2473_v50 = vpop.f32.mrb[55].mxu0  ;;  %v2505_v5 = vsel %vm2395_vm0, %v8242_v59, -inf }
 0x2a8   : > { %2512 = vmax.xlane.f32.xlu0 %v2511_v45 }
 0x2ac   : > { %2506 = vmax.xlane.f32.xlu0 %v2505_v5 }
 0x2b4   : > { %2700 = vrot.lane.b32.xlu1 %v8105_v41, %s7744_s21  ;;  %v2382_v41 = vadd.s32 40, %v8190_v32 }
 0x2b6   : > { %vm8264_vm8 = vcmp.ge.s32.totalorder %v2382_v41, %v2386_v39 }
 0x2b8   : > { %2702 = vrot.lane.b32.xlu1 %v8117_v57, %s7744_s21  ;;  %v2492_v57 = vsel %vm8257_vm7, %v6414_v43, -1e+30 }
 0x2c2   : > { %2698 = vrot.lane.b32.xlu0 %v8091_v37, %s7744_s21  ;;  %v2490_v37 = vsel %vm8264_vm8, %v2473_v50, -1e+30 }
 0x2c6   : > { %2686 = vrot.lane.b32.xlu0 %v8085_v23, %s7744_s21  ;;  %v2514_v23 = vsel %vm2395_vm0, %v2492_v57, -inf }
 0x2ca   : > { %2690 = vrot.lane.b32.xlu0 %v8111_v52, %s7744_s21  ;;  %v2508_v52 = vsel %vm2395_vm0, %v2490_v37, -inf }
 0x2dc   : > { %2515 = vmax.xlane.f32.xlu1 %v2514_v23 }
 0x2e0   : > { %2509 = vmax.xlane.f32.xlu1 %v2508_v52 }
 0x2f1   : > { %2704 = vrot.lane.b32.xlu1 %v8129_v9, %s7744_s21 }
 0x2f5   : > { %2688 = vrot.lane.b32.xlu1 %v8099_v34, %s7744_s21 }
 0x2f9   : > { %2692 = vrot.lane.b32.xlu1 %v8123_v3, %s7744_s21 }
 0x32c   : > { %v2501_v39 = vpop.xlane.xlu1 %2500 }
 0x32d   : > { %v2495_v21 = vpop.xlane.xlu0 %2494  ;;  %v2519_v19 = vsub.f32 %v2487_v58, %v2501_v39 }
 0x32e   : > { %v2517_v8 = vsub.f32 %v2485_v1, %v2495_v21 }
 0x32f   : > { %v2529_v50 = vmul.f32 1.442695, %v2519_v19 }
 0x330   : > { %v2525_v26 = vmul.f32 1.442695, %v2517_v8  ;;  %v2504_v30 = vpop.xlane.xlu1 %2503 }
 0x331   : > { %v2520_v33 = vsub.f32 %v2488_v14, %v2504_v30  ;;  %v2498_v43 = vpop.xlane.xlu0 %2497 }
 0x332   : > { %v2518_v45 = vsub.f32 %v2486_v25, %v2498_v43  ;;  %7384 = vpow2.f32 %v2525_v26 }
 0x333   : > { %v2531_v5 = vmul.f32 1.442695, %v2520_v33 }
 0x334   : > { %v2527_v11 = vmul.f32 1.442695, %v2518_v45  ;;  %v2701_v39 = vpop.permute.xlu1 %2700 }
 0x335   : > { %7386 = vpow2.f32 %v2531_v5  ;;  %v2513_v9 = vpop.xlane.xlu0 %2512  ;;  %v2722_v21 = vsel %vm2395_vm0, %v2701_v39, 0 }
 0x336   : > { %7388 = vpow2.f32 %v2527_v11  ;;  %v2523_v43 = vsub.f32 %v8232_v15, %v2513_v9 }
 0x337   : > { %7390 = vpow2.f32 %v2529_v50 }
 0x338   : > { %v2703_v8 = vpop.permute.xlu1 %2702 }
 0x339   : > { %v2507_v34 = vpop.xlane.xlu0 %2506  ;;  %v2725_v19 = vsel %vm2395_vm0, %v2703_v8, 0 }
 0x33a   : > { %v2521_v26 = vsub.f32 %v8242_v59, %v2507_v34 }
 0x33c   : > { %v8278_v3 = vpop.eup %7384  ;;  %v2533_v45 = vmul.f32 1.442695, %v2521_v26 }
 0x33d   : > { %v2699_v41 = vpop.permute.xlu0 %2698 }
 0x33e   : > { %6875 = vmatprep.subr.msk.bf16.mxu1 %vm2395_vm0, %v2699_v41  ;;  %v2719_v52 = vsel %vm2395_vm0, %v2699_v41, 0  ;;  %v2537_v41 = vmul.f32 1.442695, %v2523_v43  ;;  %7392 = vpow2.f32 %v2533_v45 }
 0x33f   : > { %v8281_v58 = vpop.eup %7386 }
 0x340   : > { %v8283_v1 = vpop.eup %7388 }
 0x341   : > { %v8285_v14 = vpop.eup %7390  ;;  %v2565_v25 = vpack.c.bf16 %v8283_v1, %v8278_v3 }
 0x342   : > { %v2566_v23 = vpack.c.bf16 %v8281_v58, %v8285_v14 }
 0x343   : > { %6423 = vmatprep.mubr.msk.bf16.mxu1 %vm2395_vm0, %v2565_v25 }
 0x344   : > { %6424 = vmatmul.mubr.msk.bf16.vlgmr.msra.gmra.mrb[40].mxu1 %vm2395_vm0, %v2566_v23 }
 0x345   : > { %6432 = vmatpush3.bf16.xpose.msra.mxu1 %v2719_v52 }
 0x346   : > { %6876 = vmatprep.subr.msk.bf16.mxu1 %vm2395_vm0, %v2701_v39  ;;  %v2687_v39 = vpop.permute.xlu0 %2686 }
 0x348   : > { %v8302_v59 = vpop.eup %7392 }
 0x34d   : > { %6434 = vmatpush3.bf16.xpose.msra.mxu1 %v2722_v21 }
 0x34e   : > { %6877 = vmatprep.subr.msk.bf16.mxu1 %vm2395_vm0, %v2703_v8  ;;  %v2691_v8 = vpop.permute.xlu0 %2690 }
 0x355   : > { %6436 = vmatpush3.bf16.xpose.msra.mxu1 %v2725_v19 }
 0x369   : > { %v2516_v30 = vpop.xlane.xlu1 %2515 }
 0x36a   : > { %v2524_v33 = vsub.f32 %v2492_v57, %v2516_v30 }
 0x36c   : > { %v2539_v50 = vmul.f32 1.442695, %v2524_v33 }
 0x36d   : > { %v2510_v5 = vpop.xlane.xlu1 %2509 }
 0x36e   : > { %v2522_v11 = vsub.f32 %v2490_v37, %v2510_v5  ;;  %7394 = vpow2.f32 %v2539_v50 }
 0x370   : > { %v2535_v25 = vmul.f32 1.442695, %v2522_v11 }
 0x371   : > { %v2705_v23 = vpop.permute.xlu1 %2704 }
 0x372   : > { %7396 = vpow2.f32 %v2535_v25  ;;  %6878 = vmatprep.subr.msk.bf16.mxu1 %vm2395_vm0, %v2705_v23  ;;  %v2728_v52 = vsel %vm2395_vm0, %v2705_v23, 0 }
 0x373   : > { %7398 = vpow2.f32 %v2537_v41  ;;  %6438 = vmatpush3.bf16.xpose.msra.mxu1 %v2728_v52 }
 0x375   : > { %v2689_v21 = vpop.permute.xlu1 %2688 }
 0x378   : > { %v8304_v57 = vpop.eup %7394 }
 0x379   : > { %v2693_v19 = vpop.permute.xlu1 %2692 }
 0x37c   : > { %v8306_v15 = vpop.eup %7396 }
 0x37d   : > { %v8308_v9 = vpop.eup %7398  ;;  %v2567_v37 = vpack.c.bf16 %v8306_v15, %v8302_v59 }
 0x37e   : > { %v2568_v34 = vpack.c.bf16 %v8304_v57, %v8308_v9 }
 0x37f   : > { %6427 = vmatprep.mubr.msk.bf16.mxu1 %vm2395_vm0, %v2567_v37 }
 0x380   : > { %6428 = vmatmul.mubr.msk.bf16.gmra.mrb[44].mxu1 %vm2395_vm0, %v2568_v34 }
 0x381   : > { %6439 = vmatprep.mubr.msk.bf16.mxu1 %vm2395_vm0, %v2687_v39 }
 0x388   : > { %6440 = vmatmul.mubr.msk.bf16.vlgmr.msra.gmra.mrb[48].mxu1 %vm2395_vm0, %v2689_v21 }
 0x389   : > { %6443 = vmatprep.mubr.msk.bf16.mxu1 %vm2395_vm0, %v2691_v8 }
 0x390   : > { %6444 = vmatmul.mubr.msk.bf16.gmra.mrb[52].mxu1 %vm2395_vm0, %v2693_v19 }
 0x417   : > { %v8320_v26 = vpop.f32.mrb[40].mxu1 }
 0x418   : > { %v8322_v30 = vpop.f32.mrb[41].mxu1 }
 0x419   : > { %v8324_v33 = vpop.f32.mrb[42].mxu1 }
 0x41a   : > { %v8326_v43 = vpop.f32.mrb[43].mxu1 }
 0x453   : > { %v8328_v45 = vpop.f32.mrb[44].mxu1 }
 0x454   : > { %v8330_v50 = vpop.f32.mrb[45].mxu1 }
 0x455   : > { %v8332_v5 = vpop.f32.mrb[46].mxu1 }
 0x456   : > { %v8334_v11 = vpop.f32.mrb[47].mxu1 }
 0x45b   : > { %v6441_v41 = vpop.f32.mrb[48].mxu1 }
 0x45c   : > { %v2797_v25 = vsel %vm8195_vm1, %v6441_v41, -1e+30  ;;  %v2764_v23 = vpop.f32.mrb[49].mxu1 }
 0x45d   : > { %v6442_v52 = vpop.f32.mrb[50].mxu1  ;;  %v2809_v37 = vsel %vm2395_vm0, %v2797_v25, -inf  ;;  %v2795_v34 = vsel %vm8200_vm2, %v2764_v23, -1e+30 }
 0x45e   : > { %2810 = vmax.xlane.f32.xlu0 %v2809_v37  ;;  %v2767_v39 = vpop.f32.mrb[51].mxu1  ;;  %v2803_v19 = vsel %vm2395_vm0, %v2795_v34, -inf  ;;  %v2798_v41 = vsel %vm8204_vm3, %v6442_v52, -1e+30 }
 0x45f   : > { %v2796_v21 = vsel %vm8210_vm4, %v2767_v39, -1e+30  ;;  %v2812_v53 = vsel %vm2395_vm0, %v2798_v41, -inf }
 0x460   : > { %v2806_v8 = vsel %vm2395_vm0, %v2796_v21, -inf }
 0x461   : > { %2807 = vmax.xlane.f32.xlu1 %v2806_v8 }
 0x462   : > { %2804 = vmax.xlane.f32.xlu0 %v2803_v19 }
 0x463   : > { %v6445_v61 = vpop.f32.mrb[52].mxu1 }
 0x464   : > { %v2780_v32 = vpop.f32.mrb[53].mxu1  ;;  %v2801_v23 = vsel %vm8225_vm5, %v6445_v61, -1e+30 }
 0x465   : > { %v6446_v4 = vpop.f32.mrb[54].mxu1  ;;  %v2821_v39 = vsel %vm2395_vm0, %v2801_v23, -inf  ;;  %v2799_v8 = vsel %vm8234_vm6, %v2780_v32, -1e+30 }
 0x466   : > { %2813 = vmax.xlane.f32.xlu0 %v2812_v53  ;;  %v2783_v37 = vpop.f32.mrb[55].mxu1  ;;  %v2815_v36 = vsel %vm2395_vm0, %v2799_v8, -inf  ;;  %v8362_v61 = vsel %vm8257_vm7, %v6446_v4, -1e+30 }
 0x467   : > { %v2824_v53 = vsel %vm2395_vm0, %v8362_v61, -inf  ;;  %v8368_v32 = vsel %vm8264_vm8, %v2783_v37, -1e+30 }
 0x46a   : > { %2822 = vmax.xlane.f32.xlu0 %v2821_v39 }
 0x46e   : > { %2816 = vmax.xlane.f32.xlu0 %v2815_v36  ;;  %v2818_v36 = vsel %vm2395_vm0, %v8368_v32, -inf }
 0x472   : > { %2885 = vrot.lane.b32.xlu1 %v8156_v28, %s7744_s21 }
 0x476   : > { %2887 = vrot.lane.b32.xlu1 %v8166_v48, %s7744_s21 }
 0x484   : > { %2883 = vrot.lane.b32.xlu0 %v8146_v24, %s7744_s21 }
 0x49a   : > { %2825 = vmax.xlane.f32.xlu1 %v2824_v53 }
 0x49e   : > { %2819 = vmax.xlane.f32.xlu1 %v2818_v36 }
 0x4af   : > { %2889 = vrot.lane.b32.xlu1 %v8176_v6, %s7744_s21 }
 0x4eb   : > { %v2811_v24 = vpop.xlane.xlu0 %2810 }
 0x4ec   : > { %v2829_v28 = vsub.f32 %v2797_v25, %v2811_v24 }
 0x4ee   : > { %v2808_v48 = vpop.xlane.xlu1 %2807  ;;  %v2839_v2 = vmul.f32 1.442695, %v2829_v28 }
 0x4ef   : > { %v2828_v4 = vsub.f32 %v2796_v21, %v2808_v48  ;;  %v2805_v52 = vpop.xlane.xlu0 %2804 }
 0x4f0   : > { %v2827_v19 = vsub.f32 %v2795_v34, %v2805_v52 }
 0x4f1   : > { %v2837_v39 = vmul.f32 1.442695, %v2828_v4 }
 0x4f2   : > { %v2835_v22 = vmul.f32 1.442695, %v2827_v19  ;;  %v2886_v48 = vpop.permute.xlu1 %2885  ;;  %v2541_v19 = vsel %vm2395_vm0, %v8278_v3, 0.0 }
 0x4f3   : > { %7400 = vpow2.f32 %v2837_v39  ;;  %v2814_v37 = vpop.xlane.xlu0 %2813  ;;  %v2547_v39 = vsel %vm2395_vm0, %v8285_v14, 0.0 }
 0x4f4   : > { %7402 = vpow2.f32 %v2835_v22  ;;  %v2830_v53 = vsub.f32 %v2798_v41, %v2814_v37  ;;  %v2553_v37 = vsel %vm2395_vm0, %v8302_v59, 0.0 }
 0x4f5   : > { %7404 = vpow2.f32 %v2839_v2 }
 0x4f6   : > { %v2841_v46 = vmul.f32 1.442695, %v2830_v53  ;;  %v2559_v53 = vsel %vm2395_vm0, %v8308_v9, 0.0 }
 0x4f7   : > { %v2823_v49 = vpop.xlane.xlu0 %2822 }
 0x4f8   : > { %7406 = vpow2.f32 %v2841_v46  ;;  %v2833_v36 = vsub.f32 %v2801_v23, %v2823_v49 }
 0x4fa   : > { %v2847_v24 = vmul.f32 1.442695, %v2833_v36 }
 0x4fb   : > { %v2817_v18 = vpop.xlane.xlu0 %2816 }
 0x4fc   : > { %v2831_v6 = vsub.f32 %v2799_v8, %v2817_v18  ;;  %v2888_v18 = vpop.permute.xlu1 %2887 }
 0x4fd   : > { %v7401_v44 = vpop.eup %7400 }
 0x4fe   : > { %v7403_v25 = vpop.eup %7402  ;;  %v2843_v21 = vmul.f32 1.442695, %v2831_v6  ;;  %v2854_v34 = vsel %vm2395_vm0, %v7401_v44, 0.0 }
 0x4ff   : > { %v2884_v28 = vpop.permute.xlu0 %2883  ;;  %2855 = vadd.xlane.f32.xlu1 %v2854_v34  ;;  %v2851_v4 = vsel %vm2395_vm0, %v7403_v25, 0.0  ;;  %v2875_v22 = vpack.c.bf16 %v7401_v44, %v7403_v25  ;;  %v7405_v41 = vpop.eup %7404 }
 0x500   : > { %7408 = vpow2.f32 %v2843_v21  ;;  %2852 = vadd.xlane.f32.xlu0 %v2851_v4  ;;  %6447 = vmatprep.subr.bf16.mxu1 %v2884_v28  ;;  %v2857_v46 = vsel %vm2395_vm0, %v7405_v41, 0.0  ;;  %v2544_v4 = vsel %vm2395_vm0, %v8283_v1, 0.0  ;;  %v7292_v1 = vld [vmem:[#allocation7 + $0x78] ss:$12 sps:$4 sm:$0xff]  }
 0x501   : > { %6448 = vmatpush3.bf16.msra.mxu1 %v2884_v28  ;;  %6455 = vmatprep.mubr.msk.bf16.mxu1 %vm2395_vm0, %v2875_v22  ;;  %7410 = vpow2.f32 %v2847_v24  ;;  %v2550_v22 = vsel %vm2395_vm0, %v8281_v58, 0.0  ;;  %v7298_v58 = vld [vmem:[#allocation7 + $0x94] ss:$12 sps:$4 sm:$0xff]  }
 0x502   : > { %6449 = vmatprep.subr.bf16.mxu1 %v2886_v48  ;;  %v7407_v2 = vpop.eup %7406 }
 0x503   : > { %v2860_v49 = vsel %vm2395_vm0, %v7407_v2, 0.0  ;;  %v2876_v14 = vpack.c.bf16 %v7407_v2, %v7405_v41  ;;  %v2556_v41 = vsel %vm2395_vm0, %v8306_v15, 0.0  ;;  %v7288_v2 = vld [vmem:[#allocation7 + $0x60] ss:$12 sps:$4 sm:$0xff]   ;;  %v7296_v15 = vld [vmem:[#allocation7 + $0x90] ss:$12 sps:$4 sm:$0xff]  }
 0x504   : > { %2858 = vadd.xlane.f32.xlu0 %v2857_v46  ;;  %v2562_v46 = vsel %vm2395_vm0, %v8304_v57, 0.0  ;;  %v7299_v57 = vld [vmem:[#allocation7 + $0x98] ss:$12 sps:$4 sm:$0xff]  }
 0x505   : > { %6450 = vmatpush3.bf16.msra.mxu1 %v2886_v48 }
 0x506   : > { %6451 = vmatprep.subr.bf16.mxu1 %v2888_v18 }
 0x508   : > { %2861 = vadd.xlane.f32.xlu0 %v2860_v49  ;;  %v7291_v49 = vld [vmem:[#allocation7 + $0x68] ss:$12 sps:$4 sm:$0xff]  }
 0x509   : > { %6452 = vmatpush3.bf16.msra.mxu1 %v2888_v18  ;;  %v7290_v18 = vld [vmem:[#allocation7 + $0x64] ss:$12 sps:$4 sm:$0xff]  }
 0x50a   : > { %v7409_v44 = vpop.eup %7408  ;;  %3084 = vmatprep.subr.bf16.mxu0 %v7290_v18 }
 0x50b   : > { %v2863_v23 = vsel %vm2395_vm0, %v7409_v44, 0.0  ;;  %v7411_v8 = vpop.eup %7410  ;;  %3085 = vmatpush1.bf16.msra.mxu0 %v7288_v2 }
 0x50c   : > { %2864 = vadd.xlane.f32.xlu0 %v2863_v23  ;;  %v2869_v52 = vsel %vm2395_vm0, %v7411_v8, 0.0  ;;  %v7295_v23 = vld [vmem:[#allocation7 + $0x80] ss:$12 sps:$4 sm:$0xff]  }
 0x510   : > { %2870 = vadd.xlane.f32.xlu0 %v2869_v52  ;;  %v7300_v52 = vld [vmem:[#allocation7 + $0xa8] ss:$12 sps:$4 sm:$0xff]  }
 0x514   : > { %2542 = vadd.xlane.f32.xlu0 %v2541_v19  ;;  %v7303_v19 = vld [vmem:[#allocation7 + $0xb0] ss:$12 sps:$4 sm:$0xff]  }
 0x518   : > { %2548 = vadd.xlane.f32.xlu0 %v2547_v39  ;;  %v7306_v39 = vld [vmem:[#allocation7 + $0x4] ss:$12 sps:$4 sm:$0xff]  }
 0x51c   : > { %2554 = vadd.xlane.f32.xlu0 %v2553_v37  ;;  %v8404_v37 = vld [vmem:[#allocation7 + $0x8] ss:$12 sps:$4 sm:$0xff]  }
 0x520   : > { %2560 = vadd.xlane.f32.xlu0 %v2559_v53 }
 0x527   : > { %v2826_v36 = vpop.xlane.xlu1 %2825 }
 0x528   : > { %v2834_v6 = vsub.f32 %v8362_v61, %v2826_v36 }
 0x52a   : > { %v2849_v25 = vmul.f32 1.442695, %v2834_v6 }
 0x52b   : > { %v2820_v24 = vpop.xlane.xlu1 %2819 }
 0x52c   : > { %v2832_v3 = vsub.f32 %v8368_v32, %v2820_v24  ;;  %7412 = vpow2.f32 %v2849_v25 }
 0x52e   : > { %v2845_v21 = vmul.f32 1.442695, %v2832_v3 }
 0x52f   : > { %v2890_v34 = vpop.permute.xlu1 %2889 }
 0x530   : > { %7414 = vpow2.f32 %v2845_v21  ;;  %6453 = vmatprep.subr.bf16.mxu1 %v2890_v34 }
 0x531   : > { %6454 = vmatpush3.bf16.msra.mxu1 %v2890_v34 }
 0x532   : > { %6463 = vmatprep.subr.bf16.mxu1 %v7291_v49 }
 0x534   : > { %6456 = vmatmul.mubr.msk.bf16.vlgmr.msra.gmra.mrb[56].mxu1 %vm2395_vm0, %v2876_v14 }
 0x535   : > { %6464 = vmatpush3.bf16.msra.mxu1 %v7291_v49 }
 0x536   : > { %v7413_v59 = vpop.eup %7412  ;;  %6465 = vmatprep.subr.bf16.mxu1 %v7295_v23 }
 0x537   : > { %v2878_v61 = vpack.c.bf16 %v7413_v59, %v7411_v8  ;;  %v2872_v32 = vsel %vm2395_vm0, %v7413_v59, 0.0  ;;  %v7302_v8 = vld [vmem:[#allocation7 + $0xac] ss:$12 sps:$4 sm:$0xff]  }
 0x539   : > { %6466 = vmatpush3.bf16.msra.mxu1 %v7295_v23 }
 0x53a   : > { %v7415_v48 = vpop.eup %7414  ;;  %6467 = vmatprep.subr.bf16.mxu1 %v7299_v57 }
 0x53b   : > { %v2866_v9 = vsel %vm2395_vm0, %v7415_v48, 0.0  ;;  %v2877_v28 = vpack.c.bf16 %v7415_v48, %v7409_v44  ;;  %v7294_v44 = vld [vmem:[#allocation7 + $0x7c] ss:$12 sps:$4 sm:$0xff]  }
 0x53c   : > { %2867 = vadd.xlane.f32.xlu1 %v2866_v9  ;;  %3086 = vmatprep.subr.bf16.mxu0 %v7294_v44 }
 0x53d   : > { %6459 = vmatprep.mubr.msk.bf16.mxu1 %vm2395_vm0, %v2877_v28  ;;  %3087 = vmatpush1.bf16.msra.mxu0 %v7292_v1 }
 0x53e   : > { %6460 = vmatmul.mubr.msk.bf16.gmra.mrb[60].mxu1 %vm2395_vm0, %v2878_v61  ;;  %3088 = vmatprep.subr.bf16.mxu0 %v7298_v58 }
 0x53f   : > { %6468 = vmatpush3.bf16.msra.mxu1 %v7299_v57 }
 0x540   : > { %2873 = vadd.xlane.f32.xlu1 %v2872_v32  ;;  %6469 = vmatprep.subr.bf16.mxu1 %v7303_v19 }
 0x541   : > { %3089 = vmatpush1.bf16.msra.mxu0 %v7296_v15 }
 0x542   : > { %3090 = vmatprep.subr.bf16.mxu0 %v7302_v8 }
 0x543   : > { %6470 = vmatpush3.bf16.msra.mxu1 %v7303_v19 }
 0x544   : > { %2545 = vadd.xlane.f32.xlu1 %v2544_v4  ;;  %6479 = vmatprep.subr.bf16.mxu1 %v8404_v37 }
 0x545   : > { %3091 = vmatpush1.bf16.msra.mxu0 %v7300_v52 }
 0x546   : > { %3298 = vmatprep.subr.bf16.mxu0 %v7306_v39 }
 0x548   : > { %2551 = vadd.xlane.f32.xlu1 %v2550_v22 }
 0x54c   : > { %2557 = vadd.xlane.f32.xlu1 %v2556_v41 }
 0x550   : > { %2563 = vadd.xlane.f32.xlu1 %v2562_v46 }
 0x58c   : > { %v2856_v3 = vpop.xlane.xlu1 %2855 }
 0x58d   : > { %v2853_v53 = vpop.xlane.xlu0 %2852 }
 0x591   : > { %v2859_v36 = vpop.xlane.xlu0 %2858 }
 0x595   : > { %v2862_v6 = vpop.xlane.xlu0 %2861 }
 0x599   : > { %v2865_v25 = vpop.xlane.xlu0 %2864 }
 0x59d   : > { %v2871_v24 = vpop.xlane.xlu0 %2870 }
 0x5a1   : > { %v2543_v21 = vpop.xlane.xlu0 %2542 }
 0x5a2   : > { %7416 = vrcp.f32 %v2543_v21 }
 0x5a5   : > { %v2549_v14 = vpop.xlane.xlu0 %2548 }
 0x5a9   : > { %v2555_v9 = vpop.xlane.xlu0 %2554 }
 0x5ac   : > { %v7417_v4 = vpop.eup %7416 }
 0x5ad   : > { %v2561_v61 = vpop.xlane.xlu0 %2560  ;;  %v2654_v46 = vmul.f32 %v7417_v4, %v8322_v30 }
 0x5c9   : > { %v2868_v34 = vpop.xlane.xlu1 %2867 }
 0x5cd   : > { %v2874_v59 = vpop.xlane.xlu1 %2873 }
 0x5d1   : > { %v2546_v48 = vpop.xlane.xlu1 %2545 }
 0x5d2   : > { %7418 = vrcp.f32 %v2546_v48 }
 0x5d3   : > { %7420 = vrcp.f32 %v2549_v14 }
 0x5d5   : > { %v2552_v28 = vpop.xlane.xlu1 %2551 }
 0x5d6   : > { %7422 = vrcp.f32 %v2552_v28 }
 0x5d7   : > { %7424 = vrcp.f32 %v2555_v9 }
 0x5d9   : > { %v2558_v32 = vpop.xlane.xlu1 %2557 }
 0x5da   : > { %7426 = vrcp.f32 %v2558_v32 }
 0x5db   : > { %7428 = vrcp.f32 %v2561_v61 }
 0x5dc   : > { %v7419_v22 = vpop.eup %7418 }
 0x5dd   : > { %v2564_v41 = vpop.xlane.xlu1 %2563  ;;  %v2655_v2 = vmul.f32 %v7419_v22, %v8326_v43  ;;  %v7421_v18 = vpop.eup %7420  ;;  %v7311_v22 = vld [vmem:[#allocation7 + $0x20] ss:$12 sps:$4 sm:$0xff]  }
 0x5de   : > { %7430 = vrcp.f32 %v2564_v41  ;;  %v2656_v23 = vmul.f32 %v7421_v18, %v8320_v26  ;;  %v7315_v18 = vld [vmem:[#allocation7 + $0x38] ss:$12 sps:$4 sm:$0xff]  }
 0x5df   : > { %v8409_v49 = vpack.c.bf16 %v2655_v2, %v2654_v46  ;;  %7432 = vrcp.f32 %v2856_v3  ;;  %v8957_v2 = vmov 0  }
 0x5e0   : > { %v7423_v44 = vpop.eup %7422  ;;  %7434 = vrcp.f32 %v2859_v36  ;;  %v7304_v36 = vld [vmem:[#allocation7] ss:$12 sps:$4 sm:$0xff]  }
 0x5e1   : > { %v2657_v1 = vmul.f32 %v7423_v44, %v8324_v33  ;;  %v7425_v58 = vpop.eup %7424  ;;  %7436 = vrcp.f32 %v2862_v6 }
 0x5e2   : > { %v2658_v8 = vmul.f32 %v7425_v58, %v8330_v50  ;;  %7438 = vrcp.f32 %v2853_v53  ;;  %v7310_v53 = vld [vmem:[#allocation7 + $0x1c] ss:$12 sps:$4 sm:$0xff]  }
 0x5e3   : > { %v8413_v15 = vpack.c.bf16 %v2657_v1, %v2656_v23  ;;  %7440 = vrcp.f32 %v2865_v25  ;;  %v7308_v25 = vld [vmem:[#allocation7 + $0x18] ss:$12 sps:$4 sm:$0xff]  }
 0x5e4   : > { %v7427_v57 = vpop.eup %7426  ;;  %7442 = vrcp.f32 %v2871_v24 }
 0x5e5   : > { %v2659_v52 = vmul.f32 %v7427_v57, %v8334_v11  ;;  %v7429_v30 = vpop.eup %7428  ;;  %7444 = vrcp.f32 %v2874_v59  ;;  %v7314_v59 = vld [vmem:[#allocation7 + $0x34] ss:$12 sps:$4 sm:$0xff]  }
 0x5e6   : > { %v2660_v39 = vmul.f32 %v7429_v30, %v8328_v45  ;;  %7446 = vrcp.f32 %v2868_v34 }
 0x5e7   : > { %v8417_v19 = vpack.c.bf16 %v2659_v52, %v2658_v8  ;;  %v7312_v52 = vld [vmem:[#allocation7 + $0x30] ss:$12 sps:$4 sm:$0xff]  }
 0x5e8   : > { %v7431_v43 = vpop.eup %7430 }
 0x5e9   : > { %v2661_v21 = vmul.f32 %v7431_v43, %v8332_v5  ;;  %v7433_v26 = vpop.eup %7432 }
 0x5ea   : > { %v7435_v50 = vpop.eup %7434 }
 0x5eb   : > { %v8421_v14 = vpack.c.bf16 %v2661_v21, %v2660_v39  ;;  %v7437_v48 = vpop.eup %7436  ;;  %v7318_v39 = vld [vmem:[#allocation7 + $0x4c] ss:$12 sps:$4 sm:$0xff]  }
 0x5ec   : > { %v7439_v28 = vpop.eup %7438 }
 0x5ed   : > { %v7441_v24 = vpop.eup %7440 }
 0x5ee   : > { %v7443_v41 = vpop.eup %7442 }
 0x5ef   : > { %v7445_v44 = vpop.eup %7444 }
 0x5f0   : > { %v7447_v1 = vpop.eup %7446 }
 0x607   : > { %v6457_v33 = vpop.f32.mrb[56].mxu1 }
 0x608   : > { %v2941_v11 = vpop.f32.mrb[57].mxu1  ;;  %v2982_v45 = vmul.f32 %v7435_v50, %v6457_v33  ;;  %v7316_v33 = vld [vmem:[#allocation7 + $0x48] ss:$12 sps:$4 sm:$0xff]   ;;  %v3449_v50 = vsel %vm2395_vm0, %v8142_v17, 0 }
 0x609   : > { %v6458_v9 = vpop.f32.mrb[58].mxu1  ;;  %v2980_v32 = vmul.f32 %v7439_v28, %v2941_v11  ;;  %v3452_v11 = vsel %vm2395_vm0, %v8152_v10, 0 }
 0x60a   : > { %v2983_v61 = vmul.f32 %v7437_v48, %v6458_v9  ;;  %v2944_v5 = vpop.f32.mrb[59].mxu1  ;;  %v3455_v48 = vsel %vm2395_vm0, %v8162_v42, 0 }
 0x60b   : > { %v2981_v4 = vmul.f32 %v7433_v26, %v2944_v5  ;;  %v7319_v26 = vld [vmem:[#allocation7 + $0x50] ss:$12 sps:$4 sm:$0xff]  }
 0x60c   : > { %v2989_v3 = vpack.c.bf16 %v2983_v61, %v2982_v45 }
 0x60d   : > { %v2988_v6 = vpack.c.bf16 %v2981_v4, %v2980_v32 }
 0x60f   : > { %6036 = vmatmul.mubr.msk.bf16.vlgmr.msra.gmra.mrb[56].mxu0 %vm2395_vm0, %v2988_v6  ;;  %6471 = vmatprep.mubr.msk.bf16.mxu1 %vm2395_vm0, %v2988_v6 }
 0x610   : > { %3299 = vmatpush1.bf16.msra.mxu0 %v7304_v36  ;;  %6472 = vmatmul.mubr.msk.bf16.vlgmr.msra.gmra.mrb[64].mxu1 %vm2395_vm0, %v2989_v3 }
 0x611   : > { %6480 = vmatpush3.bf16.msra.mxu1 %v8404_v37  ;;  %v6461_v34 = vpop.f32.mrb[60].mxu1  ;;  %3300 = vmatprep.subr.bf16.mxu0 %v7310_v53 }
 0x612   : > { %v2957_v46 = vpop.f32.mrb[61].mxu1  ;;  %6481 = vmatprep.subr.bf16.mxu1 %v7311_v22  ;;  %3126 = vmatprep.mubr.bf16.mxu0 %v8957_v2  ;;  %v2986_v58 = vmul.f32 %v7443_v41, %v6461_v34 }
 0x613   : > { %v6462_v23 = vpop.f32.mrb[62].mxu1  ;;  %v2984_v30 = vmul.f32 %v7441_v24, %v2957_v46 }
 0x614   : > { %v2987_v57 = vmul.f32 %v7445_v44, %v6462_v23  ;;  %3301 = vmatpush1.bf16.msra.mxu0 %v7308_v25  ;;  %v2960_v8 = vpop.f32.mrb[63].mxu1 }
 0x615   : > { %v2985_v43 = vmul.f32 %v7447_v1, %v2960_v8  ;;  %6482 = vmatpush3.bf16.msra.mxu1 %v7311_v22  ;;  %3302 = vmatprep.subr.bf16.mxu0 %v7314_v59 }
 0x616   : > { %v2991_v37 = vpack.c.bf16 %v2987_v57, %v2986_v58  ;;  %6483 = vmatprep.subr.bf16.mxu1 %v7315_v18 }
 0x617   : > { %v2990_v21 = vpack.c.bf16 %v2985_v43, %v2984_v30  ;;  %6037 = vmatmul.mubr.msk.bf16.gmra.mrb[60].mxu0 %vm2395_vm0, %v2989_v3 }
 0x618   : > { %3303 = vmatpush1.bf16.msra.mxu0 %v7312_v52  ;;  %3136 = vmatprep.mubr.bf16.mxu0 %v8957_v2 }
 0x619   : > { %6484 = vmatpush3.bf16.msra.mxu1 %v7315_v18  ;;  %6475 = vmatprep.mubr.msk.bf16.mxu1 %vm2395_vm0, %v2990_v21 }
 0x61a   : > { %6476 = vmatmul.mubr.msk.bf16.gmra.mrb[68].mxu1 %vm2395_vm0, %v2991_v37  ;;  %3304 = vmatprep.subr.bf16.mxu0 %v7318_v39 }
 0x61b   : > { %6485 = vmatprep.subr.bf16.mxu1 %v7319_v26  ;;  %6487 = vmatprep.mubr.msk.bf16.mxu1 %vm2395_vm0, %v8409_v49 }
 0x61c   : > { %3305 = vmatpush1.bf16.msra.mxu0 %v7316_v33 }
 0x61d   : > { %6486 = vmatpush3.bf16.msra.mxu1 %v7319_v26  ;;  %6511 = vmatprep.subr.bf16.mxu0 %v8148_v51 }
 0x61e   : > { %6879 = vmatprep.subr.msk.bf16.mxu1 %vm2395_vm0, %v8142_v17 }
 0x61f   : > { %6038 = vmatmul.mubr.msk.bf16.gmra.mrb[64].mxu0 %vm2395_vm0, %v2990_v21 }
 0x620   : > { %3146 = vmatprep.mubr.bf16.mxu0 %v8957_v2 }
 0x622   : > { %6488 = vmatmul.mubr.msk.bf16.vlgmr.msra.gmra.mrb[64].mxu1 %vm2395_vm0, %v8413_v15 }
 0x623   : > { %6491 = vmatprep.mubr.msk.bf16.mxu1 %vm2395_vm0, %v8417_v19 }
 0x626   : > { %6496 = vmatpush3.bf16.xpose.msra.mxu1 %v3449_v50 }
 0x627   : > { %6880 = vmatprep.subr.msk.bf16.mxu1 %vm2395_vm0, %v8152_v10  ;;  %6039 = vmatmul.mubr.msk.bf16.gmra.mrb[68].mxu0 %vm2395_vm0, %v2991_v37 }
 0x628   : > { %3330 = vmatprep.mubr.bf16.mxu0 %v8957_v2 }
 0x62a   : > { %6492 = vmatmul.mubr.msk.bf16.gmra.mrb[68].mxu1 %vm2395_vm0, %v8421_v14 }
 0x62b   : > { %6503 = vmatprep.mubr.msk.bf16.mxu1 %vm2395_vm0, %v8089_v35 }
 0x62e   : > { %6498 = vmatpush3.bf16.xpose.msra.mxu1 %v3452_v11 }
 0x62f   : > { %6881 = vmatprep.subr.msk.bf16.mxu1 %vm2395_vm0, %v8162_v42  ;;  %6056 = vmatmul.mubr.msk.bf16.vlgmr.msra.gmra.mrb[56].mxu0 %vm2395_vm0, %v8409_v49  ;;  %v3458_v49 = vsel %vm2395_vm0, %v8172_v63, 0 }
 0x630   : > { %6512 = vmatpush3.bf16.msra.mxu0 %v8148_v51  ;;  %3340 = vmatprep.mubr.bf16.mxu0 %v8957_v2 }
 0x631   : > { %6513 = vmatprep.subr.bf16.mxu0 %v8158_v31 }
 0x634   : > { %6514 = vmatpush3.bf16.msra.mxu0 %v8158_v31 }
 0x635   : > { %6515 = vmatprep.subr.bf16.mxu0 %v8168_v54 }
 0x636   : > { %6500 = vmatpush3.bf16.xpose.msra.mxu1 %v3455_v48 }
 0x637   : > { %6882 = vmatprep.subr.msk.bf16.mxu1 %vm2395_vm0, %v8172_v63  ;;  %6057 = vmatmul.mubr.msk.bf16.gmra.mrb[60].mxu0 %vm2395_vm0, %v8413_v15 }
 0x638   : > { %6516 = vmatpush3.bf16.msra.mxu0 %v8168_v54  ;;  %3350 = vmatprep.mubr.bf16.mxu0 %v8957_v2 }
 0x639   : > { %6517 = vmatprep.subr.bf16.mxu0 %v8178_v12 }
 0x63c   : > { %6518 = vmatpush3.bf16.msra.mxu0 %v8178_v12 }
 0x63e   : > { %6502 = vmatpush3.bf16.xpose.msra.mxu1 %v3458_v49 }
 0x63f   : > { %6058 = vmatmul.mubr.msk.bf16.gmra.mrb[64].mxu0 %vm2395_vm0, %v8417_v19 }
 0x640   : > { %3360 = vmatprep.mubr.bf16.mxu0 %v8957_v2 }
 0x645   : > { %6504 = vmatmul.mubr.msk.bf16.vlgmr.msra.gmra.mrb[72].mxu1 %vm2395_vm0, %v8103_v40 }
 0x646   : > { %6507 = vmatprep.mubr.msk.bf16.mxu1 %vm2395_vm0, %v8115_v56 }
 0x647   : > { %6059 = vmatmul.mubr.msk.bf16.gmra.mrb[68].mxu0 %vm2395_vm0, %v8421_v14 }
 0x64d   : > { %6508 = vmatmul.mubr.msk.bf16.gmra.mrb[76].mxu1 %vm2395_vm0, %v8127_v7 }
 0x718   : > { %v6505_v15 = vpop.f32.mrb[72].mxu1 }
 0x719   : > { %v3494_v9 = vpop.f32.mrb[73].mxu1  ;;  %v3527_v5 = vsel %vm8195_vm1, %v6505_v15, -1e+30 }
 0x71a   : > { %v3525_v28 = vsel %vm8200_vm2, %v3494_v9, -1e+30  ;;  %v6506_v19 = vpop.f32.mrb[74].mxu1  ;;  %v3539_v3 = vsel %vm2395_vm0, %v3527_v5, -inf }
 0x71b   : > { %v3497_v45 = vpop.f32.mrb[75].mxu1  ;;  %v3533_v61 = vsel %vm2395_vm0, %v3525_v28, -inf  ;;  %v3528_v4 = vsel %vm8204_vm3, %v6506_v19, -1e+30 }
 0x71c   : > { %v3526_v32 = vsel %vm8210_vm4, %v3497_v45, -1e+30  ;;  %3534 = vmax.xlane.f32.xlu0 %v3533_v61  ;;  %v3542_v53 = vsel %vm2395_vm0, %v3528_v4, -inf }
 0x71d   : > { %v3536_v14 = vsel %vm2395_vm0, %v3526_v32, -inf }
 0x71e   : > { %3537 = vmax.xlane.f32.xlu1 %v3536_v14 }
 0x720   : > { %3540 = vmax.xlane.f32.xlu0 %v3539_v3  ;;  %v6509_v36 = vpop.f32.mrb[76].mxu1 }
 0x721   : > { %v3510_v6 = vpop.f32.mrb[77].mxu1  ;;  %v3531_v59 = vsel %vm8225_vm5, %v6509_v36, -1e+30 }
 0x722   : > { %v3529_v22 = vsel %vm8234_vm6, %v3510_v6, -1e+30  ;;  %3543 = vmax.xlane.f32.xlu1 %v3542_v53  ;;  %v6510_v25 = vpop.f32.mrb[78].mxu1  ;;  %v3551_v44 = vsel %vm2395_vm0, %v3531_v59, -inf }
 0x723   : > { %v3513_v24 = vpop.f32.mrb[79].mxu1  ;;  %v3545_v34 = vsel %vm2395_vm0, %v3529_v22, -inf  ;;  %v3532_v18 = vsel %vm8257_vm7, %v6510_v25, -1e+30 }
 0x724   : > { %v3530_v41 = vsel %vm8264_vm8, %v3513_v24, -1e+30  ;;  %3546 = vmax.xlane.f32.xlu0 %v3545_v34  ;;  %v3554_v23 = vsel %vm2395_vm0, %v3532_v18, -inf }
 0x725   : > { %v3548_v46 = vsel %vm2395_vm0, %v3530_v41, -inf }
 0x726   : > { %3549 = vmax.xlane.f32.xlu1 %v3548_v46 }
 0x728   : > { %3552 = vmax.xlane.f32.xlu0 %v3551_v44 }
 0x72a   : > { %3555 = vmax.xlane.f32.xlu1 %v3554_v23 }
 0x7a9   : > { %v3535_v1 = vpop.xlane.xlu0 %3534 }
 0x7aa   : > { %v3557_v58 = vsub.f32 %v3525_v28, %v3535_v1 }
 0x7ab   : > { %v3538_v57 = vpop.xlane.xlu1 %3537 }
 0x7ac   : > { %v3565_v8 = vmul.f32 1.442695, %v3557_v58  ;;  %v3558_v52 = vsub.f32 %v3526_v32, %v3538_v57  ;;  %v7320_v57 = vld [vmem:[#allocation7 + $0xc8] ss:$12 sps:$4 sm:$0xff]  }
 0x7ad   : > { %v3541_v30 = vpop.xlane.xlu0 %3540  ;;  %6527 = vmatprep.subr.bf16.mxu1 %v7320_v57 }
 0x7ae   : > { %v3567_v43 = vmul.f32 1.442695, %v3558_v52  ;;  %v3559_v37 = vsub.f32 %v3527_v5, %v3541_v30  ;;  %7448 = vpow2.f32 %v3565_v8  ;;  %6528 = vmatpush3.bf16.msra.mxu1 %v7320_v57  ;;  %v7321_v8 = vld [vmem:[#allocation7 + $0xe0] ss:$12 sps:$4 sm:$0xff]   ;;  %v7322_v52 = vld [vmem:[#allocation7 + $0xf8] ss:$12 sps:$4 sm:$0xff]  }
 0x7af   : > { %v3544_v39 = vpop.xlane.xlu1 %3543  ;;  %6529 = vmatprep.subr.bf16.mxu1 %v7321_v8  ;;  %v7325_v30 = vld [vmem:[#allocation7 + $0xc4] ss:$12 sps:$4 sm:$0xff]  }
 0x7b0   : > { %7450 = vpow2.f32 %v3567_v43  ;;  %v3569_v21 = vmul.f32 1.442695, %v3559_v37  ;;  %v3560_v26 = vsub.f32 %v3528_v4, %v3544_v39  ;;  %v7326_v43 = vld [vmem:[#allocation7 + $0x110] ss:$12 sps:$4 sm:$0xff]   ;;  %v7323_v37 = vld [vmem:[#allocation7 + $0xc0] ss:$12 sps:$4 sm:$0xff]   ;;  %3798 = vmatprep.subr.bf16.mxu0 %v7325_v30 }
 0x7b1   : > { %v3547_v33 = vpop.xlane.xlu0 %3546  ;;  %v7327_v39 = vld [vmem:[#allocation7 + $0xd8] ss:$12 sps:$4 sm:$0xff]  }
 0x7b2   : > { %7452 = vpow2.f32 %v3569_v21  ;;  %v3571_v50 = vmul.f32 1.442695, %v3560_v26  ;;  %v3561_v11 = vsub.f32 %v3529_v22, %v3547_v33  ;;  %6530 = vmatpush3.bf16.msra.mxu1 %v7321_v8  ;;  %v7329_v21 = vld [vmem:[#allocation7 + $0xdc] ss:$12 sps:$4 sm:$0xff]   ;;  %v7332_v33 = vld [vmem:[#allocation7 + $0xf4] ss:$12 sps:$4 sm:$0xff]  }
 0x7b3   : > { %v3550_v48 = vpop.xlane.xlu1 %3549  ;;  %6531 = vmatprep.subr.bf16.mxu1 %v7322_v52  ;;  %v7330_v26 = vld [vmem:[#allocation7 + $0xf0] ss:$12 sps:$4 sm:$0xff]  }
 0x7b4   : > { %7454 = vpow2.f32 %v3571_v50  ;;  %v3573_v49 = vmul.f32 1.442695, %v3561_v11  ;;  %v3562_v15 = vsub.f32 %v3530_v41, %v3550_v48  ;;  %v7335_v50 = vld [vmem:[#allocation7 + $0x10c] ss:$12 sps:$4 sm:$0xff]  }
 0x7b5   : > { %v3553_v9 = vpop.xlane.xlu0 %3552 }
 0x7b6   : > { %v3575_v28 = vmul.f32 1.442695, %v3562_v15  ;;  %v3563_v19 = vsub.f32 %v3531_v59, %v3553_v9  ;;  %7456 = vpow2.f32 %v3573_v49  ;;  %6532 = vmatpush3.bf16.msra.mxu1 %v7322_v52 }
 0x7b7   : > { %v3556_v45 = vpop.xlane.xlu1 %3555  ;;  %6533 = vmatprep.subr.bf16.mxu1 %v7326_v43 }
 0x7b8   : > { %7458 = vpow2.f32 %v3575_v28  ;;  %v3577_v61 = vmul.f32 1.442695, %v3563_v19  ;;  %v3564_v5 = vsub.f32 %v3532_v18, %v3556_v45  ;;  %v7449_v32 = vpop.eup %7448 }
 0x7b9   : > { %v3581_v34 = vsel %vm2395_vm0, %v7449_v32, 0.0 }
 0x7ba   : > { %v7451_v14 = vpop.eup %7450  ;;  %7460 = vpow2.f32 %v3577_v61  ;;  %v3579_v4 = vmul.f32 1.442695, %v3564_v5  ;;  %6534 = vmatpush3.bf16.msra.mxu1 %v7326_v43 }
 0x7bb   : > { %v3605_v3 = vpack.c.bf16 %v7451_v14, %v7449_v32  ;;  %v3584_v41 = vsel %vm2395_vm0, %v7451_v14, 0.0 }
 0x7bc   : > { %v7453_v36 = vpop.eup %7452  ;;  %7462 = vpow2.f32 %v3579_v4 }
 0x7bd   : > { %6519 = vmatprep.mubr.msk.bf16.mxu0 %vm2395_vm0, %v3605_v3  ;;  %v3587_v6 = vsel %vm2395_vm0, %v7453_v36, 0.0 }
 0x7be   : > { %v7455_v53 = vpop.eup %7454  ;;  %3588 = vadd.xlane.f32.xlu0 %v3587_v6 }
 0x7bf   : > { %v3606_v22 = vpack.c.bf16 %v7455_v53, %v7453_v36  ;;  %v3590_v25 = vsel %vm2395_vm0, %v7455_v53, 0.0 }
 0x7c0   : > { %3591 = vadd.xlane.f32.xlu1 %v3590_v25  ;;  %v7457_v24 = vpop.eup %7456 }
 0x7c1   : > { %6520 = vmatmul.mubr.msk.bf16.vlgmr.msra.gmra.mrb[72].mxu0 %vm2395_vm0, %v3606_v22  ;;  %v3593_v58 = vsel %vm2395_vm0, %v7457_v24, 0.0 }
 0x7c2   : > { %v7459_v59 = vpop.eup %7458  ;;  %3582 = vadd.xlane.f32.xlu0 %v3581_v34  ;;  %3799 = vmatpush1.bf16.msra.mxu0 %v7323_v37 }
 0x7c3   : > { %v3607_v46 = vpack.c.bf16 %v7459_v59, %v7457_v24  ;;  %3800 = vmatprep.subr.bf16.mxu0 %v7329_v21 }
 0x7c4   : > { %v7461_v18 = vpop.eup %7460  ;;  %3585 = vadd.xlane.f32.xlu1 %v3584_v41 }
 0x7c5   : > { %6523 = vmatprep.mubr.msk.bf16.mxu0 %vm2395_vm0, %v3607_v46  ;;  %v3599_v44 = vsel %vm2395_vm0, %v7461_v18, 0.0 }
 0x7c6   : > { %v7463_v23 = vpop.eup %7462  ;;  %3600 = vadd.xlane.f32.xlu0 %v3599_v44  ;;  %3801 = vmatpush1.bf16.msra.mxu0 %v7327_v39 }
 0x7c7   : > { %v3608_v1 = vpack.c.bf16 %v7463_v23, %v7461_v18  ;;  %3802 = vmatprep.subr.bf16.mxu0 %v7332_v33 }
 0x7c9   : > { %6524 = vmatmul.mubr.msk.bf16.gmra.mrb[76].mxu0 %vm2395_vm0, %v3608_v1 }
 0x7ca   : > { %3594 = vadd.xlane.f32.xlu0 %v3593_v58  ;;  %3830 = vmatprep.mubr.bf16.mxu0 %v8957_v2 }
 0x7cb   : > { %3803 = vmatpush1.bf16.msra.mxu0 %v7330_v26 }
 0x7cc   : > { %3804 = vmatprep.subr.bf16.mxu0 %v7335_v50 }
 0x7d5   : > { %3978 = vrot.lane.b32.xlu1 %v8152_v10, %s7744_s21  ;;  %v7333_v10 = vld [vmem:[#allocation7 + $0x108] ss:$12 sps:$4 sm:$0xff]  }
 0x7d6   : > { %3805 = vmatpush1.bf16.msra.mxu0 %v7333_v10 }
 0x7d9   : > { %3980 = vrot.lane.b32.xlu1 %v8162_v42, %s7744_s21  ;;  %v3602_v42 = vsel %vm2395_vm0, %v7463_v23, 0.0 }
 0x7e0   : > { %3976 = vrot.lane.b32.xlu0 %v8142_v17, %s7744_s21  ;;  %v3596_v17 = vsel %vm2395_vm0, %v7459_v59, 0.0 }
 0x7e4   : > { %3964 = vrot.lane.b32.xlu0 %v8089_v35, %s7744_s21 }
 0x7e8   : > { %3968 = vrot.lane.b32.xlu0 %v8115_v56, %s7744_s21 }
 0x7ec   : > { %4161 = vrot.lane.b32.xlu0 %v8148_v51, %s7744_s21 }
 0x7fd   : > { %3603 = vadd.xlane.f32.xlu1 %v3602_v42 }
 0x801   : > { %3597 = vadd.xlane.f32.xlu1 %v3596_v17  ;;  %v7336_v17 = vld [vmem:[#allocation7 + $0x128] ss:$12 sps:$4 sm:$0xff]  }
 0x812   : > { %3982 = vrot.lane.b32.xlu1 %v8172_v63, %s7744_s21 }
 0x816   : > { %3966 = vrot.lane.b32.xlu1 %v8103_v40, %s7744_s21 }
 0x81a   : > { %3970 = vrot.lane.b32.xlu1 %v8127_v7, %s7744_s21 }
 0x81e   : > { %4163 = vrot.lane.b32.xlu1 %v8158_v31, %s7744_s21 }
 0x84b   : > { %v3589_v35 = vpop.xlane.xlu0 %3588 }
 0x84c   : > { %7464 = vrcp.f32 %v3589_v35 }
 0x84d   : > { %v3592_v40 = vpop.xlane.xlu1 %3591 }
 0x84e   : > { %7466 = vrcp.f32 %v3592_v40 }
 0x84f   : > { %v3583_v56 = vpop.xlane.xlu0 %3582 }
 0x850   : > { %7468 = vrcp.f32 %v3583_v56  ;;  %v7337_v56 = vld [vmem:[#allocation7 + $0x140] ss:$12 sps:$4 sm:$0xff]  }
 0x851   : > { %v3586_v9 = vpop.xlane.xlu1 %3585 }
 0x852   : > { %7470 = vrcp.f32 %v3586_v9 }
 0x853   : > { %v3601_v51 = vpop.xlane.xlu0 %3600 }
 0x854   : > { %7472 = vrcp.f32 %v3601_v51  ;;  %v7338_v51 = vld [vmem:[#allocation7 + $0x158] ss:$12 sps:$4 sm:$0xff]  }
 0x855   : > { %v3979_v28 = vpop.permute.xlu1 %3978 }
 0x856   : > { %v7465_v61 = vpop.eup %7464  ;;  %v4000_v50 = vsel %vm2395_vm0, %v3979_v28, 0 }
 0x857   : > { %v3595_v11 = vpop.xlane.xlu0 %3594 }
 0x858   : > { %7474 = vrcp.f32 %v3595_v11  ;;  %v7467_v32 = vpop.eup %7466  ;;  %v7339_v11 = vld [vmem:[#allocation7 + $0x170] ss:$12 sps:$4 sm:$0xff]  }
 0x859   : > { %v3981_v7 = vpop.permute.xlu1 %3980 }
 0x85a   : > { %v7469_v3 = vpop.eup %7468  ;;  %v4003_v42 = vsel %vm2395_vm0, %v3981_v7, 0 }
 0x85b   : > { %v3977_v48 = vpop.permute.xlu0 %3976 }
 0x85c   : > { %6883 = vmatprep.subr.msk.bf16.mxu1 %vm2395_vm0, %v3977_v48  ;;  %v7471_v53 = vpop.eup %7470  ;;  %v3997_v1 = vsel %vm2395_vm0, %v3977_v48, 0 }
 0x85e   : > { %v7473_v18 = vpop.eup %7472 }
 0x85f   : > { %v8545_v49 = vpop.permute.xlu0 %3964 }
 0x862   : > { %v7475_v23 = vpop.eup %7474 }
 0x863   : > { %v8547_v15 = vpop.permute.xlu0 %3968 }
 0x867   : > { %v4162_v63 = vpop.permute.xlu0 %4161 }
 0x868   : > { %6559 = vmatprep.subr.bf16.mxu0 %v4162_v63 }
 0x88a   : > { %v3604_v19 = vpop.xlane.xlu1 %3603 }
 0x88b   : > { %7476 = vrcp.f32 %v3604_v19 }
 0x88e   : > { %v3598_v31 = vpop.xlane.xlu1 %3597 }
 0x88f   : > { %7478 = vrcp.f32 %v3598_v31 }
 0x892   : > { %v3983_v45 = vpop.permute.xlu1 %3982 }
 0x893   : > { %v4006_v35 = vsel %vm2395_vm0, %v3983_v45, 0 }
 0x894   : > { %v6521_v5 = vpop.f32.mrb[72].mxu0 }
 0x895   : > { %v3696_v14 = vmul.f32 %v7465_v61, %v6521_v5  ;;  %v3655_v4 = vpop.f32.mrb[73].mxu0  ;;  %v7477_v8 = vpop.eup %7476 }
 0x896   : > { %v3967_v36 = vpop.permute.xlu1 %3966  ;;  %v6522_v6 = vpop.f32.mrb[74].mxu0  ;;  %v3694_v24 = vmul.f32 %v7469_v3, %v3655_v4 }
 0x897   : > { %v3697_v22 = vmul.f32 %v7467_v32, %v6522_v6  ;;  %v3658_v25 = vpop.f32.mrb[75].mxu0 }
 0x898   : > { %v3695_v34 = vmul.f32 %v7471_v53, %v3658_v25 }
 0x899   : > { %v3703_v59 = vpack.c.bf16 %v3697_v22, %v3696_v14  ;;  %v7479_v43 = vpop.eup %7478 }
 0x89a   : > { %v3702_v41 = vpack.c.bf16 %v3695_v34, %v3694_v24  ;;  %v3971_v46 = vpop.permute.xlu1 %3970 }
 0x89c   : > { %v6525_v44 = vpop.f32.mrb[76].mxu0  ;;  %6084 = vmatmul.mubr.msk.bf16.vlgmr.msra.gmra.mrb[56].mxu0 %vm2395_vm0, %v3702_v41  ;;  %6535 = vmatprep.mubr.msk.bf16.mxu1 %vm2395_vm0, %v3702_v41 }
 0x89d   : > { %v3700_v58 = vmul.f32 %v7473_v18, %v6525_v44  ;;  %6560 = vmatpush3.bf16.msra.mxu0 %v4162_v63  ;;  %v3671_v57 = vpop.f32.mrb[77].mxu0  ;;  %6536 = vmatmul.mubr.msk.bf16.vlgmr.msra.gmra.mrb[64].mxu1 %vm2395_vm0, %v3703_v59 }
 0x89e   : > { %6544 = vmatpush3.bf16.xpose.msra.mxu1 %v3997_v1  ;;  %v4164_v52 = vpop.permute.xlu1 %4163  ;;  %v6526_v30 = vpop.f32.mrb[78].mxu0  ;;  %3840 = vmatprep.mubr.bf16.mxu0 %v8957_v2  ;;  %v3698_v21 = vmul.f32 %v7475_v23, %v3671_v57 }
 0x89f   : > { %v3701_v37 = vmul.f32 %v7477_v8, %v6526_v30  ;;  %6884 = vmatprep.subr.msk.bf16.mxu1 %vm2395_vm0, %v3979_v28  ;;  %v3674_v39 = vpop.f32.mrb[79].mxu0  ;;  %6561 = vmatprep.subr.bf16.mxu0 %v4164_v52 }
 0x8a0   : > { %v3699_v26 = vmul.f32 %v7479_v43, %v3674_v39 }
 0x8a1   : > { %v3705_v33 = vpack.c.bf16 %v3701_v37, %v3700_v58  ;;  %6562 = vmatpush3.bf16.msra.mxu0 %v4164_v52 }
 0x8a2   : > { %v3704_v10 = vpack.c.bf16 %v3699_v26, %v3698_v21 }
 0x8a4   : > { %6085 = vmatmul.mubr.msk.bf16.gmra.mrb[60].mxu0 %vm2395_vm0, %v3703_v59  ;;  %6539 = vmatprep.mubr.msk.bf16.mxu1 %vm2395_vm0, %v3704_v10 }
 0x8a5   : > { %6540 = vmatmul.mubr.msk.bf16.gmra.mrb[68].mxu1 %vm2395_vm0, %v3705_v33  ;;  %3850 = vmatprep.mubr.bf16.mxu0 %v8957_v2 }
 0x8a6   : > { %6546 = vmatpush3.bf16.xpose.msra.mxu1 %v4000_v50  ;;  %6551 = vmatprep.mubr.msk.bf16.mxu1 %vm2395_vm0, %v8545_v49 }
 0x8a7   : > { %6885 = vmatprep.subr.msk.bf16.mxu1 %vm2395_vm0, %v3981_v7 }
 0x8ac   : > { %6086 = vmatmul.mubr.msk.bf16.gmra.mrb[64].mxu0 %vm2395_vm0, %v3704_v10 }
 0x8ad   : > { %3860 = vmatprep.mubr.bf16.mxu0 %v8957_v2 }
 0x8ae   : > { %6548 = vmatpush3.bf16.xpose.msra.mxu1 %v4003_v42 }
 0x8af   : > { %6886 = vmatprep.subr.msk.bf16.mxu1 %vm2395_vm0, %v3983_v45 }
 0x8b4   : > { %6087 = vmatmul.mubr.msk.bf16.gmra.mrb[68].mxu0 %vm2395_vm0, %v3705_v33 }
 0x8b6   : > { %6550 = vmatpush3.bf16.xpose.msra.mxu1 %v4006_v35 }
 0x8b7   : > { %6575 = vmatprep.subr.bf16.mxu1 %v7336_v17 }
 0x8bd   : > { %6552 = vmatmul.mubr.msk.bf16.vlgmr.msra.gmra.mrb[80].mxu1 %vm2395_vm0, %v3967_v36 }
 0x8be   : > { %6555 = vmatprep.mubr.msk.bf16.mxu1 %vm2395_vm0, %v8547_v15  ;;  %6576 = vmatpush3.bf16.msra.mxu1 %v7336_v17 }
 0x8bf   : > { %6577 = vmatprep.subr.bf16.mxu1 %v7337_v56 }
 0x8c2   : > { %6578 = vmatpush3.bf16.msra.mxu1 %v7337_v56 }
 0x8c3   : > { %6579 = vmatprep.subr.bf16.mxu1 %v7338_v51 }
 0x8c5   : > { %6556 = vmatmul.mubr.msk.bf16.gmra.mrb[84].mxu1 %vm2395_vm0, %v3971_v46 }
 0x8c6   : > { %6580 = vmatpush3.bf16.msra.mxu1 %v7338_v51 }
 0x8c7   : > { %6581 = vmatprep.subr.bf16.mxu1 %v7339_v11 }
 0x8ca   : > { %6582 = vmatpush3.bf16.msra.mxu1 %v7339_v11 }
 0x8cb   : > { %6887 = vmatprep.subr.msk.bf16.mxu1 %vm2395_vm0, %v8144_v20 }
 0x990   : > { %v6553_v48 = vpop.f32.mrb[80].mxu1 }
 0x991   : > { %v4075_v49 = vsel %vm8195_vm1, %v6553_v48, -1e+30  ;;  %v4042_v63 = vpop.f32.mrb[81].mxu1 }
 0x992   : > { %v6554_v15 = vpop.f32.mrb[82].mxu1  ;;  %v4087_v40 = vsel %vm2395_vm0, %v4075_v49, -inf  ;;  %v4073_v9 = vsel %vm8200_vm2, %v4042_v63, -1e+30 }
 0x993   : > { %4088 = vmax.xlane.f32.xlu0 %v4087_v40  ;;  %v4045_v28 = vpop.f32.mrb[83].mxu1  ;;  %v4081_v31 = vsel %vm2395_vm0, %v4073_v9, -inf  ;;  %v4076_v45 = vsel %vm8204_vm3, %v6554_v15, -1e+30 }
 0x994   : > { %v4074_v7 = vsel %vm8210_vm4, %v4045_v28, -1e+30  ;;  %v4090_v4 = vsel %vm2395_vm0, %v4076_v45, -inf  ;;  %v7342_v28 = vld [vmem:[#allocation7 + $0x124] ss:$12 sps:$4 sm:$0xff]  }
 0x995   : > { %v4084_v19 = vsel %vm2395_vm0, %v4074_v7, -inf }
 0x996   : > { %4085 = vmax.xlane.f32.xlu1 %v4084_v19 }
 0x997   : > { %4082 = vmax.xlane.f32.xlu0 %v4081_v31  ;;  %v7340_v31 = vld [vmem:[#allocation7 + $0x120] ss:$12 sps:$4 sm:$0xff]  }
 0x998   : > { %v6557_v61 = vpop.f32.mrb[84].mxu1 }
 0x999   : > { %v4058_v5 = vpop.f32.mrb[85].mxu1  ;;  %v4079_v3 = vsel %vm8225_vm5, %v6557_v61, -1e+30 }
 0x99a   : > { %v4077_v32 = vsel %vm8234_vm6, %v4058_v5, -1e+30  ;;  %v6558_v14 = vpop.f32.mrb[86].mxu1  ;;  %v4099_v22 = vsel %vm2395_vm0, %v4079_v3, -inf  ;;  %v7345_v5 = vld [vmem:[#allocation7 + $0x13c] ss:$12 sps:$4 sm:$0xff]  }
 0x99b   : > { %4091 = vmax.xlane.f32.xlu0 %v4090_v4  ;;  %v4061_v36 = vpop.f32.mrb[87].mxu1  ;;  %v4093_v6 = vsel %vm2395_vm0, %v4077_v32, -inf  ;;  %v4080_v53 = vsel %vm8257_vm7, %v6558_v14, -1e+30  ;;  %v7343_v14 = vld [vmem:[#allocation7 + $0x138] ss:$12 sps:$4 sm:$0xff]  }
 0x99c   : > { %4094 = vmax.xlane.f32.xlu1 %v4093_v6  ;;  %v4078_v25 = vsel %vm8264_vm8, %v4061_v36, -1e+30  ;;  %v4102_v24 = vsel %vm2395_vm0, %v4080_v53, -inf  ;;  %v7348_v36 = vld [vmem:[#allocation7 + $0x154] ss:$12 sps:$4 sm:$0xff]  }
 0x99d   : > { %v4096_v34 = vsel %vm2395_vm0, %v4078_v25, -inf }
 0x99f   : > { %4100 = vmax.xlane.f32.xlu0 %v4099_v22 }
 0x9a0   : > { %4103 = vmax.xlane.f32.xlu1 %v4102_v24 }
 0x9a3   : > { %4097 = vmax.xlane.f32.xlu0 %v4096_v34  ;;  %v7351_v34 = vld [vmem:[#allocation7 + $0x16c] ss:$12 sps:$4 sm:$0xff]  }
 0x9b1   : > { %4167 = vrot.lane.b32.xlu1 %v8178_v12, %s7744_s21 }
 0x9b9   : > { %4165 = vrot.lane.b32.xlu0 %v8168_v54, %s7744_s21 }
 0xa20   : > { %v4089_v59 = vpop.xlane.xlu0 %4088 }
 0xa21   : > { %v4107_v41 = vsub.f32 %v4075_v49, %v4089_v59 }
 0xa23   : > { %v4086_v46 = vpop.xlane.xlu1 %4085  ;;  %v4117_v1 = vmul.f32 1.442695, %v4107_v41  ;;  %v7349_v41 = vld [vmem:[#allocation7 + $0x168] ss:$12 sps:$4 sm:$0xff]  }
 0xa24   : > { %v4106_v18 = vsub.f32 %v4074_v7, %v4086_v46  ;;  %v4083_v44 = vpop.xlane.xlu0 %4082 }
 0xa25   : > { %v4105_v23 = vsub.f32 %v4073_v9, %v4083_v44 }
 0xa26   : > { %v4115_v58 = vmul.f32 1.442695, %v4106_v18 }
 0xa27   : > { %v4113_v57 = vmul.f32 1.442695, %v4105_v23 }
 0xa28   : > { %7480 = vpow2.f32 %v4115_v58  ;;  %v4092_v8 = vpop.xlane.xlu0 %4091 }
 0xa29   : > { %7482 = vpow2.f32 %v4113_v57  ;;  %v4108_v52 = vsub.f32 %v4076_v45, %v4092_v8  ;;  %v4095_v30 = vpop.xlane.xlu1 %4094 }
 0xa2a   : > { %7484 = vpow2.f32 %v4117_v1  ;;  %v4109_v43 = vsub.f32 %v4077_v32, %v4095_v30 }
 0xa2b   : > { %v4119_v12 = vmul.f32 1.442695, %v4108_v52 }
 0xa2c   : > { %v4121_v37 = vmul.f32 1.442695, %v4109_v43  ;;  %v4101_v39 = vpop.xlane.xlu0 %4100 }
 0xa2d   : > { %7486 = vpow2.f32 %v4119_v12  ;;  %v4111_v54 = vsub.f32 %v4079_v3, %v4101_v39  ;;  %v4104_v21 = vpop.xlane.xlu1 %4103 }
 0xa2e   : > { %7488 = vpow2.f32 %v4121_v37  ;;  %v4112_v26 = vsub.f32 %v4080_v53, %v4104_v21 }
 0xa2f   : > { %v4125_v33 = vmul.f32 1.442695, %v4111_v54 }
 0xa30   : > { %v4098_v10 = vpop.xlane.xlu0 %4097  ;;  %v4127_v17 = vmul.f32 1.442695, %v4112_v26 }
 0xa31   : > { %v4110_v50 = vsub.f32 %v4078_v25, %v4098_v10  ;;  %7490 = vpow2.f32 %v4125_v33  ;;  %v4168_v15 = vpop.permute.xlu1 %4167  ;;  %v7346_v25 = vld [vmem:[#allocation7 + $0x150] ss:$12 sps:$4 sm:$0xff]  }
 0xa32   : > { %v7481_v42 = vpop.eup %7480 }
 0xa33   : > { %v7483_v35 = vpop.eup %7482  ;;  %v4123_v56 = vmul.f32 1.442695, %v4110_v50  ;;  %v4132_v51 = vsel %vm2395_vm0, %v7481_v42, 0.0 }
 0xa34   : > { %v7485_v11 = vpop.eup %7484  ;;  %4133 = vadd.xlane.f32.xlu0 %v4132_v51  ;;  %v4166_v48 = vpop.permute.xlu0 %4165  ;;  %v4129_v49 = vsel %vm2395_vm0, %v7483_v35, 0.0  ;;  %v4153_v63 = vpack.c.bf16 %v7481_v42, %v7483_v35 }
 0xa35   : > { %7492 = vpow2.f32 %v4123_v56  ;;  %4130 = vadd.xlane.f32.xlu1 %v4129_v49  ;;  %6563 = vmatprep.subr.bf16.mxu0 %v4166_v48  ;;  %v4135_v9 = vsel %vm2395_vm0, %v7485_v11, 0.0 }
 0xa36   : > { %7494 = vpow2.f32 %v4127_v17  ;;  %6564 = vmatpush3.bf16.msra.mxu0 %v4166_v48  ;;  %6567 = vmatprep.mubr.msk.bf16.mxu0 %vm2395_vm0, %v4153_v63  ;;  %v4537_v48 = vsel %vm2395_vm0, %v8144_v20, 0 }
 0xa37   : > { %v7487_v40 = vpop.eup %7486  ;;  %6565 = vmatprep.subr.bf16.mxu0 %v4168_v15 }
 0xa38   : > { %v7489_v7 = vpop.eup %7488  ;;  %4136 = vadd.xlane.f32.xlu0 %v4135_v9  ;;  %v4138_v19 = vsel %vm2395_vm0, %v7487_v40, 0.0  ;;  %v4154_v45 = vpack.c.bf16 %v7487_v40, %v7485_v11 }
 0xa39   : > { %4139 = vadd.xlane.f32.xlu1 %v4138_v19  ;;  %v4141_v61 = vsel %vm2395_vm0, %v7489_v7, 0.0 }
 0xa3a   : > { %6566 = vmatpush3.bf16.msra.mxu0 %v4168_v15 }
 0xa3b   : > { %4362 = vmatprep.subr.bf16.mxu0 %v7342_v28  ;;  %v7491_v32 = vpop.eup %7490  ;;  %v8958_v28 = vld [vmem:[#allocation16_spill] sm:$0xff] }
 0xa3c   : > { %4142 = vadd.xlane.f32.xlu0 %v4141_v61  ;;  %v4147_v3 = vsel %vm2395_vm0, %v7491_v32, 0.0 }
 0xa3d   : > { %6568 = vmatmul.mubr.msk.bf16.vlgmr.msra.gmra.mrb[80].mxu0 %vm2395_vm0, %v4154_v45 }
 0xa3e   : > { %4363 = vmatpush1.bf16.msra.mxu0 %v7340_v31 }
 0xa3f   : > { %v7493_v4 = vpop.eup %7492  ;;  %4364 = vmatprep.subr.bf16.mxu0 %v7345_v5  ;;  %v8959_v5 = vld [vmem:[#allocation19_spill] sm:$0xff] }
 0xa40   : > { %v7495_v6 = vpop.eup %7494  ;;  %4148 = vadd.xlane.f32.xlu0 %v4147_v3  ;;  %v4144_v53 = vsel %vm2395_vm0, %v7493_v4, 0.0  ;;  %v4155_v22 = vpack.c.bf16 %v7493_v4, %v7489_v7  ;;  %v8961_v4 = vld [vmem:[#allocation17_spill] sm:$0xff]  ;;  %v8962_v3 = vld [vmem:[#allocation12_spill] sm:$0xff] }
 0xa41   : > { %4145 = vadd.xlane.f32.xlu1 %v4144_v53  ;;  %v4156_v24 = vpack.c.bf16 %v7495_v6, %v7491_v32  ;;  %v4150_v59 = vsel %vm2395_vm0, %v7495_v6, 0.0  ;;  %v4540_v32 = vsel %vm2395_vm0, %v8958_v28, 0  ;;  %v8963_v6 = vld [vmem:[#allocation18_spill] sm:$0xff] }
 0xa42   : > { %6571 = vmatprep.mubr.msk.bf16.mxu0 %vm2395_vm0, %v4155_v22  ;;  %4365 = vmatpush1.bf16.msra.mxu0 %v7343_v14  ;;  %v8960_v14 = vld [vmem:[#allocation20_spill] sm:$0xff]  ;;  %v4546_v53 = vsel %vm2395_vm0, %v8963_v6, 0  ;;  %v8964_v22 = vld [vmem:[#allocation13_spill] sm:$0xff] }
 0xa43   : > { %4366 = vmatprep.subr.bf16.mxu0 %v7348_v36  ;;  %v4543_v36 = vsel %vm2395_vm0, %v8961_v4, 0 }
 0xa45   : > { %4151 = vadd.xlane.f32.xlu1 %v4150_v59  ;;  %6572 = vmatmul.mubr.msk.bf16.gmra.mrb[84].mxu0 %vm2395_vm0, %v4156_v24  ;;  %v8966_v24 = vld [vmem:[#allocation15_spill] sm:$0xff] }
 0xa46   : > { %4367 = vmatpush1.bf16.msra.mxu0 %v7346_v25  ;;  %4394 = vmatprep.mubr.bf16.mxu0 %v8957_v2  ;;  %v8965_v25 = vld [vmem:[#allocation14_spill] sm:$0xff] }
 0xa47   : > { %4368 = vmatprep.subr.bf16.mxu0 %v7351_v34 }
 0xa4a   : > { %4369 = vmatpush1.bf16.msra.mxu0 %v7349_v41 }
 0xa4b   : > { %6607 = vmatprep.subr.bf16.mxu0 %v8182_v27 }
 0xac1   : > { %v4134_v46 = vpop.xlane.xlu0 %4133 }
 0xac2   : > { %v4131_v18 = vpop.xlane.xlu1 %4130  ;;  %7496 = vrcp.f32 %v4134_v46 }
 0xac5   : > { %v4137_v44 = vpop.xlane.xlu0 %4136 }
 0xac6   : > { %v4140_v23 = vpop.xlane.xlu1 %4139  ;;  %7498 = vrcp.f32 %v4137_v44 }
 0xac7   : > { %7500 = vrcp.f32 %v4140_v23 }
 0xac8   : > { %7502 = vrcp.f32 %v4131_v18 }
 0xac9   : > { %v4143_v1 = vpop.xlane.xlu0 %4142 }
 0xaca   : > { %7504 = vrcp.f32 %v4143_v1 }
 0xacc   : > { %v7497_v52 = vpop.eup %7496 }
 0xacd   : > { %v4149_v57 = vpop.xlane.xlu0 %4148 }
 0xace   : > { %v4146_v58 = vpop.xlane.xlu1 %4145  ;;  %7506 = vrcp.f32 %v4149_v57 }
 0xad0   : > { %v7499_v43 = vpop.eup %7498 }
 0xad1   : > { %v7501_v37 = vpop.eup %7500 }
 0xad2   : > { %v4152_v8 = vpop.xlane.xlu1 %4151  ;;  %v7503_v54 = vpop.eup %7502 }
 0xad3   : > { %7508 = vrcp.f32 %v4152_v8 }
 0xad4   : > { %7510 = vrcp.f32 %v4146_v58  ;;  %v7505_v35 = vpop.eup %7504 }
 0xad8   : > { %v7507_v51 = vpop.eup %7506 }
 0xadd   : > { %v7509_v49 = vpop.eup %7508 }
 0xade   : > { %v7511_v15 = vpop.eup %7510 }
 0xb10   : > { %v6569_v30 = vpop.f32.mrb[80].mxu0 }
 0xb11   : > { %v4219_v12 = vpop.f32.mrb[81].mxu0  ;;  %v4260_v21 = vmul.f32 %v7499_v43, %v6569_v30 }
 0xb12   : > { %v6570_v39 = vpop.f32.mrb[82].mxu0  ;;  %v4258_v10 = vmul.f32 %v7503_v54, %v4219_v12 }
 0xb13   : > { %v4261_v26 = vmul.f32 %v7501_v37, %v6570_v39  ;;  %v4222_v33 = vpop.f32.mrb[83].mxu0 }
 0xb14   : > { %v4259_v50 = vmul.f32 %v7497_v52, %v4222_v33 }
 0xb15   : > { %v4267_v42 = vpack.c.bf16 %v4261_v26, %v4260_v21 }
 0xb16   : > { %v4266_v17 = vpack.c.bf16 %v4259_v50, %v4258_v10 }
 0xb18   : > { %v6573_v56 = vpop.f32.mrb[84].mxu0  ;;  %6112 = vmatmul.mubr.msk.bf16.vlgmr.msra.gmra.mrb[56].mxu0 %vm2395_vm0, %v4266_v17  ;;  %6583 = vmatprep.mubr.msk.bf16.mxu1 %vm2395_vm0, %v4266_v17 }
 0xb19   : > { %6608 = vmatpush3.bf16.msra.mxu0 %v8182_v27  ;;  %v4235_v11 = vpop.f32.mrb[85].mxu0  ;;  %6584 = vmatmul.mubr.msk.bf16.vlgmr.msra.gmra.mrb[64].mxu1 %vm2395_vm0, %v4267_v42  ;;  %v4264_v40 = vmul.f32 %v7507_v51, %v6573_v56 }
 0xb1a   : > { %6592 = vmatpush3.bf16.xpose.msra.mxu1 %v4537_v48  ;;  %6609 = vmatprep.subr.bf16.mxu0 %v8184_v60  ;;  %v6574_v63 = vpop.f32.mrb[86].mxu0  ;;  %v4262_v19 = vmul.f32 %v7505_v35, %v4235_v11 }
 0xb1b   : > { %v4265_v9 = vmul.f32 %v7509_v49, %v6574_v63  ;;  %6888 = vmatprep.subr.msk.bf16.mxu1 %vm2395_vm0, %v8958_v28  ;;  %v4238_v7 = vpop.f32.mrb[87].mxu0  ;;  %4404 = vmatprep.mubr.bf16.mxu0 %v8957_v2 }
 0xb1c   : > { %v4263_v31 = vmul.f32 %v7511_v15, %v4238_v7 }
 0xb1d   : > { %v4269_v45 = vpack.c.bf16 %v4265_v9, %v4264_v40  ;;  %6610 = vmatpush3.bf16.msra.mxu0 %v8184_v60 }
 0xb1e   : > { %v4268_v61 = vpack.c.bf16 %v4263_v31, %v4262_v19  ;;  %6611 = vmatprep.subr.bf16.mxu0 %v8959_v5 }
 0xb20   : > { %6113 = vmatmul.mubr.msk.bf16.gmra.mrb[60].mxu0 %vm2395_vm0, %v4267_v42  ;;  %6587 = vmatprep.mubr.msk.bf16.mxu1 %vm2395_vm0, %v4268_v61 }
 0xb21   : > { %6612 = vmatpush3.bf16.msra.mxu0 %v8959_v5  ;;  %6588 = vmatmul.mubr.msk.bf16.gmra.mrb[68].mxu1 %vm2395_vm0, %v4269_v45 }
 0xb22   : > { %6594 = vmatpush3.bf16.xpose.msra.mxu1 %v4540_v32  ;;  %6613 = vmatprep.subr.bf16.mxu0 %v8960_v14 }
 0xb23   : > { %6889 = vmatprep.subr.msk.bf16.mxu1 %vm2395_vm0, %v8961_v4  ;;  %6599 = vmatprep.mubr.msk.bf16.mxu1 %vm2395_vm0, %v8962_v3 }
 0xb24   : > { %4414 = vmatprep.mubr.bf16.mxu0 %v8957_v2 }
 0xb25   : > { %6614 = vmatpush3.bf16.msra.mxu0 %v8960_v14 }
 0xb28   : > { %6114 = vmatmul.mubr.msk.bf16.gmra.mrb[64].mxu0 %vm2395_vm0, %v4268_v61 }
 0xb29   : > { %4424 = vmatprep.mubr.bf16.mxu0 %v8957_v2 }
 0xb2a   : > { %6596 = vmatpush3.bf16.xpose.msra.mxu1 %v4543_v36 }
 0xb2b   : > { %6890 = vmatprep.subr.msk.bf16.mxu1 %vm2395_vm0, %v8963_v6 }
 0xb30   : > { %6115 = vmatmul.mubr.msk.bf16.gmra.mrb[68].mxu0 %vm2395_vm0, %v4269_v45 }
 0xb32   : > { %6598 = vmatpush3.bf16.xpose.msra.mxu1 %v4546_v53 }
 0xb39   : > { %6600 = vmatmul.mubr.msk.bf16.vlgmr.msra.gmra.mrb[88].mxu1 %vm2395_vm0, %v8964_v22 }
 0xb3a   : > { %6603 = vmatprep.mubr.msk.bf16.mxu1 %vm2395_vm0, %v8965_v25 }
 0xb41   : > { %6604 = vmatmul.mubr.msk.bf16.gmra.mrb[92].mxu1 %vm2395_vm0, %v8966_v24 }
 0xc0c   : > { %v6601_v34 = vpop.f32.mrb[88].mxu1 }
 0xc0d   : > { %v4582_v59 = vpop.f32.mrb[89].mxu1  ;;  %v4615_v23 = vsel %vm8195_vm1, %v6601_v34, -1e+30 }
 0xc0e   : > { %v4613_v41 = vsel %vm8200_vm2, %v4582_v59, -1e+30  ;;  %v6602_v46 = vpop.f32.mrb[90].mxu1  ;;  %v4627_v8 = vsel %vm2395_vm0, %v4615_v23, -inf }
 0xc0f   : > { %v4585_v18 = vpop.f32.mrb[91].mxu1  ;;  %v4621_v44 = vsel %vm2395_vm0, %v4613_v41, -inf  ;;  %v4616_v57 = vsel %vm8204_vm3, %v6602_v46, -1e+30 }
 0xc10   : > { %v4614_v1 = vsel %vm8210_vm4, %v4585_v18, -1e+30  ;;  %4622 = vmax.xlane.f32.xlu0 %v4621_v44  ;;  %v4630_v43 = vsel %vm2395_vm0, %v4616_v57, -inf }
 0xc11   : > { %v4624_v58 = vsel %vm2395_vm0, %v4614_v1, -inf }
 0xc12   : > { %4625 = vmax.xlane.f32.xlu1 %v4624_v58 }
 0xc14   : > { %4628 = vmax.xlane.f32.xlu0 %v4627_v8  ;;  %v6605_v52 = vpop.f32.mrb[92].mxu1 }
 0xc15   : > { %v4598_v30 = vpop.f32.mrb[93].mxu1  ;;  %v4619_v21 = vsel %vm8225_vm5, %v6605_v52, -1e+30 }
 0xc16   : > { %v4617_v12 = vsel %vm8234_vm6, %v4598_v30, -1e+30  ;;  %4631 = vmax.xlane.f32.xlu1 %v4630_v43  ;;  %v6606_v37 = vpop.f32.mrb[94].mxu1  ;;  %v4639_v50 = vsel %vm2395_vm0, %v4619_v21, -inf }
 0xc17   : > { %v4601_v39 = vpop.f32.mrb[95].mxu1  ;;  %v4633_v54 = vsel %vm2395_vm0, %v4617_v12, -inf  ;;  %v4620_v10 = vsel %vm8257_vm7, %v6606_v37, -1e+30 }
 0xc18   : > { %v4618_v26 = vsel %vm8264_vm8, %v4601_v39, -1e+30  ;;  %4634 = vmax.xlane.f32.xlu0 %v4633_v54  ;;  %v4642_v42 = vsel %vm2395_vm0, %v4620_v10, -inf }
 0xc19   : > { %v4636_v33 = vsel %vm2395_vm0, %v4618_v26, -inf }
 0xc1a   : > { %4637 = vmax.xlane.f32.xlu1 %v4636_v33 }
 0xc1c   : > { %4640 = vmax.xlane.f32.xlu0 %v4639_v50 }
 0xc1e   : > { %4643 = vmax.xlane.f32.xlu1 %v4642_v42  ;;  %v7352_v42 = vld [vmem:[#allocation7 + $0x188] ss:$12 sps:$4 sm:$0xff]  }
 0xc1f   : > { %6623 = vmatprep.subr.bf16.mxu1 %v7352_v42 }
 0xc20   : > { %6624 = vmatpush3.bf16.msra.mxu1 %v7352_v42 }
 0xc9d   : > { %v4623_v17 = vpop.xlane.xlu0 %4622 }
 0xc9e   : > { %v4645_v35 = vsub.f32 %v4613_v41, %v4623_v17  ;;  %v7353_v17 = vld [vmem:[#allocation7 + $0x1a0] ss:$12 sps:$4 sm:$0xff]  }
 0xc9f   : > { %v4626_v56 = vpop.xlane.xlu1 %4625  ;;  %6625 = vmatprep.subr.bf16.mxu1 %v7353_v17 }
 0xca0   : > { %v4653_v51 = vmul.f32 1.442695, %v4645_v35  ;;  %v4646_v11 = vsub.f32 %v4614_v1, %v4626_v56  ;;  %6626 = vmatpush3.bf16.msra.mxu1 %v7353_v17  ;;  %v7354_v35 = vld [vmem:[#allocation7 + $0x1b8] ss:$12 sps:$4 sm:$0xff]  }
 0xca1   : > { %v4629_v48 = vpop.xlane.xlu0 %4628  ;;  %6627 = vmatprep.subr.bf16.mxu1 %v7354_v35  ;;  %v7357_v56 = vld [vmem:[#allocation7 + $0x184] ss:$12 sps:$4 sm:$0xff]  }
 0xca2   : > { %v4655_v49 = vmul.f32 1.442695, %v4646_v11  ;;  %v4647_v63 = vsub.f32 %v4615_v23, %v4629_v48  ;;  %7512 = vpow2.f32 %v4653_v51  ;;  %v7358_v51 = vld [vmem:[#allocation7 + $0x1d0] ss:$12 sps:$4 sm:$0xff]   ;;  %v7355_v11 = vld [vmem:[#allocation7 + $0x180] ss:$12 sps:$4 sm:$0xff]   ;;  %4886 = vmatprep.subr.bf16.mxu0 %v7357_v56 }
 0xca3   : > { %v4632_v15 = vpop.xlane.xlu1 %4631  ;;  %v7359_v48 = vld [vmem:[#allocation7 + $0x198] ss:$12 sps:$4 sm:$0xff]  }
 0xca4   : > { %7514 = vpow2.f32 %v4655_v49  ;;  %v4657_v40 = vmul.f32 1.442695, %v4647_v63  ;;  %v4648_v9 = vsub.f32 %v4616_v57, %v4632_v15  ;;  %6628 = vmatpush3.bf16.msra.mxu1 %v7354_v35  ;;  %v7361_v49 = vld [vmem:[#allocation7 + $0x19c] ss:$12 sps:$4 sm:$0xff]   ;;  %v7364_v15 = vld [vmem:[#allocation7 + $0x1b4] ss:$12 sps:$4 sm:$0xff]  }
 0xca5   : > { %v4635_v7 = vpop.xlane.xlu0 %4634  ;;  %6629 = vmatprep.subr.bf16.mxu1 %v7358_v51  ;;  %v7362_v63 = vld [vmem:[#allocation7 + $0x1b0] ss:$12 sps:$4 sm:$0xff]  }
 0xca6   : > { %7516 = vpow2.f32 %v4657_v40  ;;  %v4659_v19 = vmul.f32 1.442695, %v4648_v9  ;;  %v4649_v31 = vsub.f32 %v4617_v12, %v4635_v7  ;;  %v7367_v40 = vld [vmem:[#allocation7 + $0x1cc] ss:$12 sps:$4 sm:$0xff]  }
 0xca7   : > { %v4638_v45 = vpop.xlane.xlu1 %4637 }
 0xca8   : > { %7518 = vpow2.f32 %v4659_v19  ;;  %v4661_v61 = vmul.f32 1.442695, %v4649_v31  ;;  %v4650_v32 = vsub.f32 %v4618_v26, %v4638_v45  ;;  %6630 = vmatpush3.bf16.msra.mxu1 %v7358_v51 }
 0xca9   : > { %v4641_v36 = vpop.xlane.xlu0 %4640 }
 0xcaa   : > { %v4663_v53 = vmul.f32 1.442695, %v4650_v32  ;;  %v4651_v34 = vsub.f32 %v4619_v21, %v4641_v36  ;;  %7520 = vpow2.f32 %v4661_v61 }
 0xcab   : > { %v4644_v59 = vpop.xlane.xlu1 %4643 }
 0xcac   : > { %7522 = vpow2.f32 %v4663_v53  ;;  %v4665_v41 = vmul.f32 1.442695, %v4651_v34  ;;  %v4652_v46 = vsub.f32 %v4620_v10, %v4644_v59  ;;  %v7513_v18 = vpop.eup %7512 }
 0xcad   : > { %v4669_v12 = vsel %vm2395_vm0, %v7513_v18, 0.0 }
 0xcae   : > { %v7515_v44 = vpop.eup %7514  ;;  %7524 = vpow2.f32 %v4665_v41  ;;  %v4667_v23 = vmul.f32 1.442695, %v4652_v46 }
 0xcaf   : > { %v4693_v1 = vpack.c.bf16 %v7515_v44, %v7513_v18  ;;  %v4672_v39 = vsel %vm2395_vm0, %v7515_v44, 0.0 }
 0xcb0   : > { %v7517_v58 = vpop.eup %7516  ;;  %7526 = vpow2.f32 %v4667_v23 }
 0xcb1   : > { %6615 = vmatprep.mubr.msk.bf16.mxu0 %vm2395_vm0, %v4693_v1  ;;  %v4675_v57 = vsel %vm2395_vm0, %v7517_v58, 0.0 }
 0xcb2   : > { %v7519_v8 = vpop.eup %7518  ;;  %4676 = vadd.xlane.f32.xlu0 %v4675_v57 }
 0xcb3   : > { %v4694_v52 = vpack.c.bf16 %v7519_v8, %v7517_v58  ;;  %v4678_v30 = vsel %vm2395_vm0, %v7519_v8, 0.0 }
 0xcb4   : > { %4679 = vadd.xlane.f32.xlu1 %v4678_v30  ;;  %v7521_v43 = vpop.eup %7520 }
 0xcb5   : > { %6616 = vmatmul.mubr.msk.bf16.vlgmr.msra.gmra.mrb[88].mxu0 %vm2395_vm0, %v4694_v52  ;;  %v4681_v50 = vsel %vm2395_vm0, %v7521_v43, 0.0 }
 0xcb6   : > { %v7523_v37 = vpop.eup %7522  ;;  %4670 = vadd.xlane.f32.xlu0 %v4669_v12  ;;  %4887 = vmatpush1.bf16.msra.mxu0 %v7355_v11 }
 0xcb7   : > { %v4695_v54 = vpack.c.bf16 %v7523_v37, %v7521_v43  ;;  %4888 = vmatprep.subr.bf16.mxu0 %v7361_v49 }
 0xcb8   : > { %v7525_v21 = vpop.eup %7524  ;;  %4673 = vadd.xlane.f32.xlu1 %v4672_v39 }
 0xcb9   : > { %6619 = vmatprep.mubr.msk.bf16.mxu0 %vm2395_vm0, %v4695_v54  ;;  %v4687_v26 = vsel %vm2395_vm0, %v7525_v21, 0.0 }
 0xcba   : > { %v7527_v33 = vpop.eup %7526  ;;  %4688 = vadd.xlane.f32.xlu0 %v4687_v26  ;;  %4889 = vmatpush1.bf16.msra.mxu0 %v7359_v48 }
 0xcbb   : > { %v4696_v10 = vpack.c.bf16 %v7527_v33, %v7525_v21  ;;  %4890 = vmatprep.subr.bf16.mxu0 %v7364_v15 }
 0xcbd   : > { %6620 = vmatmul.mubr.msk.bf16.gmra.mrb[92].mxu0 %vm2395_vm0, %v4696_v10 }
 0xcbe   : > { %4682 = vadd.xlane.f32.xlu0 %v4681_v50  ;;  %4918 = vmatprep.mubr.bf16.mxu0 %v8957_v2 }
 0xcbf   : > { %4891 = vmatpush1.bf16.msra.mxu0 %v7362_v63 }
 0xcc0   : > { %4892 = vmatprep.subr.bf16.mxu0 %v7367_v40 }
 0xcc9   : > { %5066 = vrot.lane.b32.xlu1 %v8958_v28, %s7744_s21  ;;  %v7365_v28 = vld [vmem:[#allocation7 + $0x1c8] ss:$12 sps:$4 sm:$0xff]  }
 0xcca   : > { %4893 = vmatpush1.bf16.msra.mxu0 %v7365_v28 }
 0xccd   : > { %5068 = vrot.lane.b32.xlu1 %v8961_v4, %s7744_s21  ;;  %v4690_v4 = vsel %vm2395_vm0, %v7527_v33, 0.0 }
 0xcd4   : > { %5064 = vrot.lane.b32.xlu0 %v8144_v20, %s7744_s21  ;;  %v4684_v20 = vsel %vm2395_vm0, %v7523_v37, 0.0 }
 0xcd8   : > { %5052 = vrot.lane.b32.xlu0 %v8962_v3, %s7744_s21 }
 0xcdc   : > { %5056 = vrot.lane.b32.xlu0 %v8965_v25, %s7744_s21 }
 0xce0   : > { %5249 = vrot.lane.b32.xlu0 %v8182_v27, %s7744_s21 }
 0xcf1   : > { %4691 = vadd.xlane.f32.xlu1 %v4690_v4 }
 0xcf5   : > { %4685 = vadd.xlane.f32.xlu1 %v4684_v20 }
 0xd06   : > { %5070 = vrot.lane.b32.xlu1 %v8963_v6, %s7744_s21 }
 0xd0a   : > { %5054 = vrot.lane.b32.xlu1 %v8964_v22, %s7744_s21 }
 0xd0e   : > { %5058 = vrot.lane.b32.xlu1 %v8966_v24, %s7744_s21 }
 0xd12   : > { %5251 = vrot.lane.b32.xlu1 %v8184_v60, %s7744_s21 }
 0xd3f   : > { %v4677_v3 = vpop.xlane.xlu0 %4676 }
 0xd40   : > { %7528 = vrcp.f32 %v4677_v3 }
 0xd41   : > { %v4680_v22 = vpop.xlane.xlu1 %4679 }
 0xd42   : > { %7530 = vrcp.f32 %v4680_v22 }
 0xd43   : > { %v4671_v27 = vpop.xlane.xlu0 %4670 }
 0xd44   : > { %7532 = vrcp.f32 %v4671_v27 }
 0xd45   : > { %v4674_v45 = vpop.xlane.xlu1 %4673 }
 0xd46   : > { %7534 = vrcp.f32 %v4674_v45 }
 0xd47   : > { %v4689_v25 = vpop.xlane.xlu0 %4688 }
 0xd48   : > { %7536 = vrcp.f32 %v4689_v25 }
 0xd49   : > { %v5067_v61 = vpop.permute.xlu1 %5066 }
 0xd4a   : > { %v7529_v53 = vpop.eup %7528  ;;  %v5088_v63 = vsel %vm2395_vm0, %v5067_v61, 0 }
 0xd4b   : > { %v4683_v9 = vpop.xlane.xlu0 %4682 }
 0xd4c   : > { %7538 = vrcp.f32 %v4683_v9  ;;  %v7531_v59 = vpop.eup %7530 }
 0xd4d   : > { %v5069_v24 = vpop.permute.xlu1 %5068 }
 0xd4e   : > { %v7533_v18 = vpop.eup %7532  ;;  %v5091_v15 = vsel %vm2395_vm0, %v5069_v24, 0 }
 0xd4f   : > { %v5065_v7 = vpop.permute.xlu0 %5064 }
 0xd50   : > { %6891 = vmatprep.subr.msk.bf16.mxu1 %vm2395_vm0, %v5065_v7  ;;  %v7535_v1 = vpop.eup %7534  ;;  %v5085_v21 = vsel %vm2395_vm0, %v5065_v7, 0 }
 0xd52   : > { %v7537_v37 = vpop.eup %7536 }
 0xd53   : > { %v8715_v19 = vpop.permute.xlu0 %5052 }
 0xd56   : > { %v7539_v54 = vpop.eup %7538 }
 0xd57   : > { %v8717_v31 = vpop.permute.xlu0 %5056 }
 0xd5b   : > { %v5250_v6 = vpop.permute.xlu0 %5249 }
 0xd5c   : > { %6655 = vmatprep.subr.bf16.mxu0 %v5250_v6 }
 0xd7e   : > { %v4692_v32 = vpop.xlane.xlu1 %4691 }
 0xd7f   : > { %7540 = vrcp.f32 %v4692_v32 }
 0xd82   : > { %v4686_v60 = vpop.xlane.xlu1 %4685 }
 0xd83   : > { %7542 = vrcp.f32 %v4686_v60 }
 0xd86   : > { %v5071_v36 = vpop.permute.xlu1 %5070 }
 0xd87   : > { %v5094_v28 = vsel %vm2395_vm0, %v5071_v36, 0 }
 0xd88   : > { %v6617_v34 = vpop.f32.mrb[88].mxu0 }
 0xd89   : > { %v4784_v41 = vmul.f32 %v7529_v53, %v6617_v34  ;;  %v4743_v46 = vpop.f32.mrb[89].mxu0  ;;  %v7541_v10 = vpop.eup %7540 }
 0xd8a   : > { %v5055_v44 = vpop.permute.xlu1 %5054  ;;  %v6618_v23 = vpop.f32.mrb[90].mxu0  ;;  %v4782_v8 = vmul.f32 %v7533_v18, %v4743_v46 }
 0xd8b   : > { %v4785_v58 = vmul.f32 %v7531_v59, %v6618_v23  ;;  %v4746_v57 = vpop.f32.mrb[91].mxu0 }
 0xd8c   : > { %v4783_v52 = vmul.f32 %v7535_v1, %v4746_v57 }
 0xd8d   : > { %v4791_v30 = vpack.c.bf16 %v4785_v58, %v4784_v41  ;;  %v7543_v17 = vpop.eup %7542 }
 0xd8e   : > { %v4790_v43 = vpack.c.bf16 %v4783_v52, %v4782_v8  ;;  %v5059_v12 = vpop.permute.xlu1 %5058 }
 0xd90   : > { %v6621_v39 = vpop.f32.mrb[92].mxu0  ;;  %6140 = vmatmul.mubr.msk.bf16.vlgmr.msra.gmra.mrb[56].mxu0 %vm2395_vm0, %v4790_v43  ;;  %6631 = vmatprep.mubr.msk.bf16.mxu1 %vm2395_vm0, %v4790_v43 }
 0xd91   : > { %v4788_v26 = vmul.f32 %v7537_v37, %v6621_v39  ;;  %6656 = vmatpush3.bf16.msra.mxu0 %v5250_v6  ;;  %v4759_v33 = vpop.f32.mrb[93].mxu0  ;;  %6632 = vmatmul.mubr.msk.bf16.vlgmr.msra.gmra.mrb[64].mxu1 %vm2395_vm0, %v4791_v30 }
 0xd92   : > { %6640 = vmatpush3.bf16.xpose.msra.mxu1 %v5085_v21  ;;  %v5252_v50 = vpop.permute.xlu1 %5251  ;;  %v6622_v42 = vpop.f32.mrb[94].mxu0  ;;  %4928 = vmatprep.mubr.bf16.mxu0 %v8957_v2  ;;  %v4786_v51 = vmul.f32 %v7539_v54, %v4759_v33 }
 0xd93   : > { %v4789_v35 = vmul.f32 %v7541_v10, %v6622_v42  ;;  %6892 = vmatprep.subr.msk.bf16.mxu1 %vm2395_vm0, %v5067_v61  ;;  %v4762_v56 = vpop.f32.mrb[95].mxu0  ;;  %6657 = vmatprep.subr.bf16.mxu0 %v5252_v50 }
 0xd94   : > { %v4787_v11 = vmul.f32 %v7543_v17, %v4762_v56 }
 0xd95   : > { %v4793_v48 = vpack.c.bf16 %v4789_v35, %v4788_v26  ;;  %6658 = vmatpush3.bf16.msra.mxu0 %v5252_v50 }
 0xd96   : > { %v4792_v49 = vpack.c.bf16 %v4787_v11, %v4786_v51 }
 0xd98   : > { %6141 = vmatmul.mubr.msk.bf16.gmra.mrb[60].mxu0 %vm2395_vm0, %v4791_v30  ;;  %6635 = vmatprep.mubr.msk.bf16.mxu1 %vm2395_vm0, %v4792_v49 }
 0xd99   : > { %6636 = vmatmul.mubr.msk.bf16.gmra.mrb[68].mxu1 %vm2395_vm0, %v4793_v48  ;;  %4938 = vmatprep.mubr.bf16.mxu0 %v8957_v2 }
 0xd9a   : > { %6642 = vmatpush3.bf16.xpose.msra.mxu1 %v5088_v63  ;;  %6647 = vmatprep.mubr.msk.bf16.mxu1 %vm2395_vm0, %v8715_v19 }
 0xd9b   : > { %6893 = vmatprep.subr.msk.bf16.mxu1 %vm2395_vm0, %v5069_v24 }
 0xda0   : > { %6142 = vmatmul.mubr.msk.bf16.gmra.mrb[64].mxu0 %vm2395_vm0, %v4792_v49 }
 0xda1   : > { %4948 = vmatprep.mubr.bf16.mxu0 %v8957_v2 }
 0xda2   : > { %6644 = vmatpush3.bf16.xpose.msra.mxu1 %v5091_v15 }
 0xda3   : > { %6894 = vmatprep.subr.msk.bf16.mxu1 %vm2395_vm0, %v5071_v36 }
 0xda8   : > { %6143 = vmatmul.mubr.msk.bf16.gmra.mrb[68].mxu0 %vm2395_vm0, %v4793_v48 }
 0xdaa   : > { %6646 = vmatpush3.bf16.xpose.msra.mxu1 %v5094_v28 }
 0xdb1   : > { %6648 = vmatmul.mubr.msk.bf16.vlgmr.msra.gmra.mrb[96].mxu1 %vm2395_vm0, %v5055_v44 }
 0xdb2   : > { %6651 = vmatprep.mubr.msk.bf16.mxu1 %vm2395_vm0, %v8717_v31 }
 0xdb9   : > { %6652 = vmatmul.mubr.msk.bf16.gmra.mrb[100].mxu1 %vm2395_vm0, %v5059_v12 }
 0xe84   : > { %v6649_v40 = vpop.f32.mrb[96].mxu1 }
 0xe85   : > { %v5163_v4 = vsel %vm8195_vm1, %v6649_v40, -1e+30  ;;  %v5130_v20 = vpop.f32.mrb[97].mxu1 }
 0xe86   : > { %v5175_v3 = vsel %vm2395_vm0, %v5163_v4, -inf  ;;  %v6650_v27 = vpop.f32.mrb[98].mxu1  ;;  %v5161_v25 = vsel %vm8200_vm2, %v5130_v20, -1e+30 }
 0xe87   : > { %5176 = vmax.xlane.f32.xlu0 %v5175_v3  ;;  %v5133_v9 = vpop.f32.mrb[99].mxu1  ;;  %v5169_v31 = vsel %vm2395_vm0, %v5161_v25, -inf  ;;  %v5164_v47 = vsel %vm8204_vm3, %v6650_v27, -1e+30 }
 0xe88   : > { %v5162_v7 = vsel %vm8210_vm4, %v5133_v9, -1e+30  ;;  %v5178_v45 = vsel %vm2395_vm0, %v5164_v47, -inf }
 0xe89   : > { %v5172_v19 = vsel %vm2395_vm0, %v5162_v7, -inf }
 0xe8a   : > { %5173 = vmax.xlane.f32.xlu1 %v5172_v19  ;;  %v7370_v19 = vld [vmem:[#allocation7 + $0x1e4] ss:$12 sps:$4 sm:$0xff]  }
 0xe8b   : > { %5170 = vmax.xlane.f32.xlu0 %v5169_v31  ;;  %v7371_v31 = vld [vmem:[#allocation7 + $0x1e8] ss:$12 sps:$4 sm:$0xff]  }
 0xe8c   : > { %v6653_v6 = vpop.f32.mrb[100].mxu1  ;;  %6671 = vmatprep.subr.bf16.mxu1 %v7371_v31 }
 0xe8d   : > { %v5167_v22 = vsel %vm8225_vm5, %v6653_v6, -1e+30  ;;  %v5146_v38 = vpop.f32.mrb[101].mxu1  ;;  %v7375_v6 = vld [vmem:[#allocation7 + $0x200] ss:$12 sps:$4 sm:$0xff]   ;;  %6672 = vmatpush3.bf16.msra.mxu1 %v7371_v31 }
 0xe8e   : > { %v5187_v61 = vsel %vm2395_vm0, %v5167_v22, -inf  ;;  %v6654_v0 = vpop.f32.mrb[102].mxu1  ;;  %v5165_v24 = vsel %vm8234_vm6, %v5146_v38, -1e+30  ;;  %6673 = vmatprep.subr.bf16.mxu1 %v7375_v6  ;;  %v7378_v38 = vld [vmem:[#allocation7 + $0x214] ss:$12 sps:$4 sm:$0xff]  }
 0xe8f   : > { %v5168_v32 = vsel %vm8257_vm7, %v6654_v0, -1e+30  ;;  %5179 = vmax.xlane.f32.xlu0 %v5178_v45  ;;  %5188 = vmax.xlane.f32.xlu1 %v5187_v61  ;;  %v5149_v55 = vpop.f32.mrb[103].mxu1  ;;  %v5181_v60 = vsel %vm2395_vm0, %v5165_v24, -inf  ;;  %v7376_v45 = vld [vmem:[#allocation7 + $0x210] ss:$12 sps:$4 sm:$0xff]  }
 0xe90   : > { %v5190_v62 = vsel %vm2395_vm0, %v5168_v32, -inf  ;;  %v5166_v36 = vsel %vm8264_vm8, %v5149_v55, -1e+30  ;;  %v7379_v61 = vld [vmem:[#allocation7 + $0x218] ss:$12 sps:$4 sm:$0xff]  }
 0xe91   : > { %v5184_v53 = vsel %vm2395_vm0, %v5166_v36, -inf  ;;  %6674 = vmatpush3.bf16.msra.mxu1 %v7375_v6  ;;  %v7382_v0 = vld [vmem:[#allocation7 + $0x22c] ss:$12 sps:$4 sm:$0xff]  }
 0xe92   : > { %6675 = vmatprep.subr.bf16.mxu1 %v7379_v61 }
 0xe93   : > { %5182 = vmax.xlane.f32.xlu0 %v5181_v60  ;;  %5191 = vmax.xlane.f32.xlu1 %v5190_v62 }
 0xe95   : > { %6676 = vmatpush3.bf16.msra.mxu1 %v7379_v61 }
 0xe97   : > { %5185 = vmax.xlane.f32.xlu1 %v5184_v53 }
 0xea8   : > { %5255 = vrot.lane.b32.xlu1 %v8960_v14, %s7744_s21 }
 0xea9   : > { %5253 = vrot.lane.b32.xlu0 %v8959_v5, %s7744_s21 }
 0xf14   : > { %v5177_v29 = vpop.xlane.xlu0 %5176 }
 0xf15   : > { %v5195_v13 = vsub.f32 %v5163_v4, %v5177_v29 }
 0xf17   : > { %v5174_v34 = vpop.xlane.xlu1 %5173  ;;  %v5205_v16 = vmul.f32 1.442695, %v5195_v13 }
 0xf18   : > { %v5194_v59 = vsub.f32 %v5162_v7, %v5174_v34  ;;  %v5171_v41 = vpop.xlane.xlu0 %5170  ;;  %v7368_v7 = vld [vmem:[#allocation7 + $0x1e0] ss:$12 sps:$4 sm:$0xff]  }
 0xf19   : > { %v5193_v46 = vsub.f32 %v5161_v25, %v5171_v41 }
 0xf1a   : > { %v5203_v18 = vmul.f32 1.442695, %v5194_v59 }
 0xf1b   : > { %v5201_v44 = vmul.f32 1.442695, %v5193_v46 }
 0xf1c   : > { %7544 = vpow2.f32 %v5203_v18  ;;  %v5180_v23 = vpop.xlane.xlu0 %5179  ;;  %v5189_v1 = vpop.xlane.xlu1 %5188 }
 0xf1d   : > { %7546 = vpow2.f32 %v5201_v44  ;;  %v5196_v58 = vsub.f32 %v5164_v47, %v5180_v23  ;;  %v5199_v30 = vsub.f32 %v5167_v22, %v5189_v1  ;;  %v7374_v47 = vld [vmem:[#allocation7 + $0x1fc] ss:$12 sps:$4 sm:$0xff]   ;;  %v7372_v22 = vld [vmem:[#allocation7 + $0x1f8] ss:$12 sps:$4 sm:$0xff]  }
 0xf1e   : > { %7548 = vpow2.f32 %v5205_v16 }
 0xf1f   : > { %v5207_v57 = vmul.f32 1.442695, %v5196_v58  ;;  %v5213_v26 = vmul.f32 1.442695, %v5199_v30 }
 0xf20   : > { %v5183_v14 = vpop.xlane.xlu0 %5182  ;;  %v5192_v8 = vpop.xlane.xlu1 %5191 }
 0xf21   : > { %7550 = vpow2.f32 %v5207_v57  ;;  %v5197_v5 = vsub.f32 %v5165_v24, %v5183_v14  ;;  %v5200_v52 = vsub.f32 %v5168_v32, %v5192_v8  ;;  %v7380_v24 = vld [vmem:[#allocation7 + $0x228] ss:$12 sps:$4 sm:$0xff]   ;;  %v7383_v32 = vld [vmem:[#allocation7 + $0x230] ss:$12 sps:$4 sm:$0xff]  }
 0xf22   : > { %6677 = vmatprep.subr.bf16.mxu1 %v7383_v32 }
 0xf23   : > { %v5209_v43 = vmul.f32 1.442695, %v5197_v5  ;;  %v5215_v12 = vmul.f32 1.442695, %v5200_v52  ;;  %6678 = vmatpush3.bf16.msra.mxu1 %v7383_v32 }
 0xf24   : > { %v5254_v37 = vpop.permute.xlu0 %5253  ;;  %v5186_v39 = vpop.xlane.xlu1 %5185 }
 0xf25   : > { %v5198_v54 = vsub.f32 %v5166_v36, %v5186_v39  ;;  %6659 = vmatprep.subr.bf16.mxu0 %v5254_v37  ;;  %7552 = vpow2.f32 %v5209_v43 }
 0xf26   : > { %v7545_v21 = vpop.eup %7544  ;;  %6660 = vmatpush3.bf16.msra.mxu0 %v5254_v37  ;;  %7554 = vpow2.f32 %v5215_v12 }
 0xf27   : > { %v7547_v33 = vpop.eup %7546  ;;  %v5211_v10 = vmul.f32 1.442695, %v5198_v54  ;;  %v5220_v50 = vsel %vm2395_vm0, %v7545_v21, 0.0 }
 0xf28   : > { %5221 = vadd.xlane.f32.xlu1 %v5220_v50  ;;  %v5256_v42 = vpop.permute.xlu1 %5255  ;;  %v5217_v17 = vsel %vm2395_vm0, %v7547_v33, 0.0  ;;  %v5241_v35 = vpack.c.bf16 %v7545_v21, %v7547_v33  ;;  %v7549_v56 = vpop.eup %7548 }
 0xf29   : > { %7556 = vpow2.f32 %v5211_v10  ;;  %5218 = vadd.xlane.f32.xlu0 %v5217_v17  ;;  %6661 = vmatprep.subr.bf16.mxu0 %v5256_v42  ;;  %v5223_v48 = vsel %vm2395_vm0, %v7549_v56, 0.0 }
 0xf2a   : > { %7558 = vpow2.f32 %v5213_v26  ;;  %6662 = vmatpush3.bf16.msra.mxu0 %v5256_v42  ;;  %6663 = vmatprep.mubr.msk.bf16.mxu0 %vm2395_vm0, %v5241_v35 }
 0xf2b   : > { %v7551_v51 = vpop.eup %7550  ;;  %5450 = vmatprep.subr.bf16.mxu0 %v7370_v19 }
 0xf2c   : > { %v5242_v11 = vpack.c.bf16 %v7551_v51, %v7549_v56  ;;  %v5226_v49 = vsel %vm2395_vm0, %v7551_v51, 0.0  ;;  %v8967_v56 = vld [vmem:[#allocation21_spill] sm:$0xff] }
 0xf2d   : > { %5224 = vadd.xlane.f32.xlu0 %v5223_v48  ;;  %v5616_v51 = vsub.s32 0, %v8967_v56  ;;  %v5620_v48 = vsub.s32 1, %v8967_v56 }
 0xf2e   : > { %6664 = vmatmul.mubr.msk.bf16.vlgmr.msra.gmra.mrb[96].mxu0 %vm2395_vm0, %v5242_v11  ;;  %v5612_v11 = vld [vmem:[%s8903_s3] sm:$0x7] }
 0xf2f   : > { %v7553_v63 = vpop.eup %7552  ;;  %5451 = vmatpush1.bf16.msra.mxu0 %v7368_v7 }
 0xf30   : > { %v7555_v15 = vpop.eup %7554  ;;  %v5229_v4 = vsel %vm2395_vm0, %v7553_v63, 0.0  ;;  %5452 = vmatprep.subr.bf16.mxu0 %v7374_v47 }
 0xf31   : > { %5227 = vadd.xlane.f32.xlu0 %v5226_v49  ;;  %v5238_v9 = vsel %vm2395_vm0, %v7555_v15, 0.0  ;;  %v5624_v49 = vsub.s32 2, %v8967_v56 }
 0xf33   : > { %v7557_v28 = vpop.eup %7556  ;;  %5453 = vmatpush1.bf16.msra.mxu0 %v7372_v22 }
 0xf34   : > { %v7559_v40 = vpop.eup %7558  ;;  %v5232_v20 = vsel %vm2395_vm0, %v7557_v28, 0.0  ;;  %v5243_v3 = vpack.c.bf16 %v7557_v28, %v7553_v63  ;;  %5454 = vmatprep.subr.bf16.mxu0 %v7378_v38  ;;  %v8801_v63 = vrot.slane %v5612_v11, %v5616_v51  ;;  %v5625_v28 = vrot.slane %v5612_v11, %v5624_v49 }
 0xf35   : > { %5230 = vadd.xlane.f32.xlu0 %v5229_v4  ;;  %5233 = vadd.xlane.f32.xlu1 %v5232_v20  ;;  %v5244_v27 = vpack.c.bf16 %v7555_v15, %v7559_v40  ;;  %v5235_v25 = vsel %vm2395_vm0, %v7559_v40, 0.0  ;;  %v8803_v15 = vrot.slane %v5612_v11, %v5620_v48 }
 0xf36   : > { %6667 = vmatprep.mubr.msk.bf16.mxu0 %vm2395_vm0, %v5243_v3 }
 0xf37   : > { %6668 = vmatmul.mubr.msk.bf16.gmra.mrb[100].mxu0 %vm2395_vm0, %v5244_v27 }
 0xf38   : > { %5482 = vmatprep.mubr.bf16.mxu0 %v8957_v2  ;;  %5455 = vmatpush1.bf16.msra.mxu0 %v7376_v45 }
 0xf39   : > { %5236 = vadd.xlane.f32.xlu0 %v5235_v25  ;;  %5239 = vadd.xlane.f32.xlu1 %v5238_v9 }
 0xf3a   : > { %5456 = vmatprep.subr.bf16.mxu0 %v7382_v0 }
 0xf3c   : > { %5457 = vmatpush1.bf16.msra.mxu0 %v7380_v24 }
 0xfb5   : > { %v5222_v36 = vpop.xlane.xlu1 %5221 }
 0xfb6   : > { %v5219_v55 = vpop.xlane.xlu0 %5218  ;;  %7560 = vrcp.f32 %v5222_v36 }
 0xfba   : > { %v5225_v60 = vpop.xlane.xlu0 %5224 }
 0xfbb   : > { %7562 = vrcp.f32 %v5225_v60 }
 0xfbe   : > { %v5228_v62 = vpop.xlane.xlu0 %5227 }
 0xfbf   : > { %7564 = vrcp.f32 %v5228_v62 }
 0xfc0   : > { %7566 = vrcp.f32 %v5219_v55  ;;  %v7561_v59 = vpop.eup %7560 }
 0xfc2   : > { %v5231_v53 = vpop.xlane.xlu0 %5230  ;;  %v5234_v29 = vpop.xlane.xlu1 %5233 }
 0xfc3   : > { %7568 = vrcp.f32 %v5231_v53 }
 0xfc5   : > { %v7563_v46 = vpop.eup %7562 }
 0xfc6   : > { %v5237_v13 = vpop.xlane.xlu0 %5236  ;;  %v5240_v34 = vpop.xlane.xlu1 %5239 }
 0xfc7   : > { %7570 = vrcp.f32 %v5237_v13 }
 0xfc8   : > { %7572 = vrcp.f32 %v5240_v34 }
 0xfc9   : > { %v7565_v16 = vpop.eup %7564  ;;  %7574 = vrcp.f32 %v5234_v29 }
 0xfca   : > { %v7567_v23 = vpop.eup %7566 }
 0xfcd   : > { %v7569_v30 = vpop.eup %7568 }
 0xfd1   : > { %v7571_v12 = vpop.eup %7570 }
 0xfd2   : > { %v7573_v39 = vpop.eup %7572 }
 0xfd3   : > { %v7575_v21 = vpop.eup %7574 }
0x1001   : > { %v6665_v41 = vpop.f32.mrb[96].mxu0 }
0x1002   : > { %v5307_v18 = vpop.f32.mrb[97].mxu0  ;;  %v5348_v1 = vmul.f32 %v7563_v46, %v6665_v41 }
0x1003   : > { %v6666_v44 = vpop.f32.mrb[98].mxu0  ;;  %v5346_v14 = vmul.f32 %v7567_v23, %v5307_v18 }
0x1004   : > { %v5349_v58 = vmul.f32 %v7565_v16, %v6666_v44  ;;  %v5310_v57 = vpop.f32.mrb[99].mxu0 }
0x1005   : > { %v5347_v8 = vmul.f32 %v7561_v59, %v5310_v57 }
0x1006   : > { %v5355_v5 = vpack.c.bf16 %v5349_v58, %v5348_v1 }
0x1007   : > { %v5354_v52 = vpack.c.bf16 %v5347_v8, %v5346_v14 }
0x1009   : > { %6168 = vmatmul.mubr.msk.bf16.vlgmr.msra.gmra.mrb[56].mxu0 %vm2395_vm0, %v5354_v52  ;;  %6679 = vmatprep.mubr.msk.bf16.mxu1 %vm2395_vm0, %v5354_v52 }
0x100a   : > { %v6669_v43 = vpop.f32.mrb[100].mxu0  ;;  %6680 = vmatmul.mubr.msk.bf16.vlgmr.msra.gmra.mrb[64].mxu1 %vm2395_vm0, %v5355_v5  ;;  %5492 = vmatprep.mubr.bf16.mxu0 %v8957_v2 }
0x100b   : > { %v5323_v37 = vpop.f32.mrb[101].mxu0  ;;  %v5352_v26 = vmul.f32 %v7571_v12, %v6669_v43 }
0x100c   : > { %v6670_v54 = vpop.f32.mrb[102].mxu0  ;;  %v5350_v50 = vmul.f32 %v7569_v30, %v5323_v37 }
0x100d   : > { %v5353_v33 = vmul.f32 %v7573_v39, %v6670_v54  ;;  %v5326_v10 = vpop.f32.mrb[103].mxu0 }
0x100e   : > { %v5351_v42 = vmul.f32 %v7575_v21, %v5326_v10 }
0x100f   : > { %v5357_v17 = vpack.c.bf16 %v5353_v33, %v5352_v26 }
0x1010   : > { %v5356_v35 = vpack.c.bf16 %v5351_v42, %v5350_v50 }
0x1011   : > { %6169 = vmatmul.mubr.msk.bf16.gmra.mrb[60].mxu0 %vm2395_vm0, %v5355_v5 }
0x1012   : > { %6683 = vmatprep.mubr.msk.bf16.mxu1 %vm2395_vm0, %v5356_v35  ;;  %5502 = vmatprep.mubr.bf16.mxu0 %v8957_v2 }
0x1013   : > { %6684 = vmatmul.mubr.msk.bf16.gmra.mrb[68].mxu1 %vm2395_vm0, %v5357_v17 }
0x1019   : > { %6170 = vmatmul.mubr.msk.bf16.gmra.mrb[64].mxu0 %vm2395_vm0, %v5356_v35 }
0x101a   : > { %5512 = vmatprep.mubr.bf16.mxu0 %v8957_v2 }
0x1021   : > { %6171 = vmatmul.mubr.msk.bf16.gmra.mrb[68].mxu0 %vm2395_vm0, %v5357_v17 }
0x10dc   : > { %v5484_v40 = vpop.f32.mrb[56].mxu0 }
0x10dd   : > { %v5629_v2 = vadd.f32 %v8801_v63, %v5484_v40  ;;  %v5486_v4 = vpop.f32.mrb[57].mxu0  ;;  %v6681_v20 = vpop.f32.mrb[64].mxu1 }
0x10de   : > { %v5630_v3 = vadd.f32 %v8803_v15, %v5486_v4  ;;  %v5637_v27 = vadd.f32 %v6681_v20, %v5625_v28  ;;  %v5488_v25 = vpop.f32.mrb[58].mxu0  ;;  %v5557_v9 = vpop.f32.mrb[65].mxu1 }
0x10df   : > { %5653 = vst [vmem:[%s8809_s5] sm:$0xff] %v5629_v2  ;;  %v5632_v7 = vadd.f32 %v8801_v63, %v5488_v25  ;;  %v5631_v19 = vadd.f32 %v5625_v28, %v5557_v9  ;;  %v5490_v31 = vpop.f32.mrb[59].mxu0  ;;  %v6682_v47 = vpop.f32.mrb[66].mxu1 }
0x10e0   : > { %5654 = vst [vmem:[%s8809_s5 + $0x8] sm:$0xff] %v5630_v3  ;;  %5661 = vst [vmem:[%s8809_s5 + $0x40] sm:$0xff] %v5637_v27  ;;  %v5633_v6 = vadd.f32 %v8803_v15, %v5490_v31  ;;  %v5640_v22 = vadd.f32 %v6682_v47, %v5625_v28  ;;  %v5560_v38 = vpop.f32.mrb[67].mxu1 }
0x10e1   : > { %5656 = vst [vmem:[%s8809_s5 + $0x18] sm:$0xff] %v5632_v7  ;;  %5655 = vst [vmem:[%s8809_s5 + $0x10] sm:$0xff] %v5631_v19  ;;  %v5634_v45 = vadd.f32 %v5625_v28, %v5560_v38 }
0x10e2   : > { %5657 = vst [vmem:[%s8809_s5 + $0x20] sm:$0xff] %v5633_v6  ;;  %5664 = vst [vmem:[%s8809_s5 + $0x58] sm:$0xff] %v5640_v22 }
0x10e3   : > { %5658 = vst [vmem:[%s8809_s5 + $0x28] sm:$0xff] %v5634_v45 }
0x10e4   : > { %v5494_v61 = vpop.f32.mrb[60].mxu0 }
0x10e5   : > { %v5635_v0 = vadd.f32 %v8801_v63, %v5494_v61  ;;  %v5496_v24 = vpop.f32.mrb[61].mxu0 }
0x10e6   : > { %v5636_v32 = vadd.f32 %v8803_v15, %v5496_v24  ;;  %v5498_v55 = vpop.f32.mrb[62].mxu0  ;;  %v6685_v60 = vpop.f32.mrb[68].mxu1 }
0x10e7   : > { %5659 = vst [vmem:[%s8809_s5 + $0x30] sm:$0xff] %v5635_v0  ;;  %v5638_v62 = vadd.f32 %v8801_v63, %v5498_v55  ;;  %v5649_v36 = vadd.f32 %v6685_v60, %v5625_v28  ;;  %v5500_v53 = vpop.f32.mrb[63].mxu0  ;;  %v5573_v29 = vpop.f32.mrb[69].mxu1 }
0x10e8   : > { %5660 = vst [vmem:[%s8809_s5 + $0x38] sm:$0xff] %v5636_v32  ;;  %v5639_v13 = vadd.f32 %v8803_v15, %v5500_v53  ;;  %v5643_v34 = vadd.f32 %v5625_v28, %v5573_v29  ;;  %v6686_v59 = vpop.f32.mrb[70].mxu1 }
0x10e9   : > { %5662 = vst [vmem:[%s8809_s5 + $0x48] sm:$0xff] %v5638_v62  ;;  %5673 = vst [vmem:[%s8809_s5 + $0xa0] sm:$0xff] %v5649_v36  ;;  %v5652_v41 = vadd.f32 %v6686_v59, %v5625_v28  ;;  %v5576_v46 = vpop.f32.mrb[71].mxu1 }
0x10ea   : > { %5663 = vst [vmem:[%s8809_s5 + $0x50] sm:$0xff] %v5639_v13  ;;  %5667 = vst [vmem:[%s8809_s5 + $0x70] sm:$0xff] %v5643_v34  ;;  %v5646_v18 = vadd.f32 %v5625_v28, %v5576_v46 }
0x10eb   : > { %5676 = vst [vmem:[%s8809_s5 + $0xb8] sm:$0xff] %v5652_v41 }
0x10ec   : > { %5670 = vst [vmem:[%s8809_s5 + $0x88] sm:$0xff] %v5646_v18  ;;  %v5504_v16 = vpop.f32.mrb[64].mxu0 }
0x10ed   : > { %v5641_v44 = vadd.f32 %v8801_v63, %v5504_v16  ;;  %v5506_v23 = vpop.f32.mrb[65].mxu0 }
0x10ee   : > { %v5642_v1 = vadd.f32 %v8803_v15, %v5506_v23  ;;  %v5508_v58 = vpop.f32.mrb[66].mxu0 }
0x10ef   : > { %5665 = vst [vmem:[%s8809_s5 + $0x60] sm:$0xff] %v5641_v44  ;;  %v5644_v57 = vadd.f32 %v8801_v63, %v5508_v58  ;;  %v5510_v14 = vpop.f32.mrb[67].mxu0 }
0x10f0   : > { %5666 = vst [vmem:[%s8809_s5 + $0x68] sm:$0xff] %v5642_v1  ;;  %v5645_v8 = vadd.f32 %v8803_v15, %v5510_v14 }
0x10f1   : > { %5668 = vst [vmem:[%s8809_s5 + $0x78] sm:$0xff] %v5644_v57 }
0x10f2   : > { %5669 = vst [vmem:[%s8809_s5 + $0x80] sm:$0xff] %v5645_v8 }
0x10f4   : > { %v5514_v5 = vpop.f32.mrb[68].mxu0 }
0x10f5   : > { %v5647_v52 = vadd.f32 %v8801_v63, %v5514_v5  ;;  %v5516_v30 = vpop.f32.mrb[69].mxu0 }
0x10f6   : > { %v5648_v43 = vadd.f32 %v8803_v15, %v5516_v30  ;;  %v5518_v12 = vpop.f32.mrb[70].mxu0 }
0x10f7   : > { %5671 = vst [vmem:[%s8809_s5 + $0x90] sm:$0xff] %v5647_v52  ;;  %v5650_v37 = vadd.f32 %v8801_v63, %v5518_v12  ;;  %v5520_v39 = vpop.f32.mrb[71].mxu0 }
0x10f8   : > { %5672 = vst [vmem:[%s8809_s5 + $0x98] sm:$0xff] %v5648_v43  ;;  %v5651_v54 = vadd.f32 %v8803_v15, %v5520_v39 }
0x10f9   : > { %5674 = vst [vmem:[%s8809_s5 + $0xa8] sm:$0xff] %v5650_v37 }
0x10fa   : > { %5675 = vst [vmem:[%s8809_s5 + $0xb0] sm:$0xff] %v5651_v54 }
0x10fb   : > { %7675 = shalt.err (!%p7672_p2)
}
0x10fc   : > { %s7676_s10 = scalar_lea.hbm %s8850_s24, 3072  ;;  %s7680_s21 = scalar_lea.hbm %s8904_s4, 6144 }
0x10fd   : > { %p7677_p13 = scmp.ne.s32.totalorder %s8850_s24, %s7676_s10  ;;  %p7681_p4 = scmp.lt.u32.totalorder %s8850_s24, %s8904_s4 }
0x10fe   : > { %p7682_p7 = scmp.lt.u32.totalorder %s7680_s21, %s7676_s10  ;;  %p7684_p11 = scmp.lt.u32.totalorder %s7676_s10, %s8850_s24 }
0x10ff   : > { %p7678_p6 = pnand %p7677_p13, %p8968_p0 }
0x1100   : > { %p7683_p8 = por %p7682_p7, %p7681_p4 }
0x1101   : > { %p7679_p10 = pneg %p7678_p6 }
0x1102   : > { %p7685_p1 = por %p7684_p11, %p7683_p8 }
0x1104   : > { %p7686_p3 = pnand %p7685_p1, %p7679_p10 }
0x1106   : > { %7689 = shalt.err (!%p7686_p3)
}
0x1107   : > { %s7746_s5 = smov 384   ;;  %s7747_s25 = smov 24  }
0x1108   : > { %6909 = dma.vmem_to_hbm [thread:$0]  (%p8968_p0), %s8852_s7, 3072, %s8850_s24, %s5678_s19, %s7746_s5, %s7746_s5, %s7747_s25  }
0x1109 PF: > { %s5706_s28 = sand.u32 1, %s7720_s15   ;;  %p8969_p5 = scmp.ne.s32.totalorder %s8922_s22, 0 }
0x110a   : > { %p8970_p9 = scmp.ge.s32.totalorder %s7732_s18, 2  ;;  %s5707_s26 = scalar_lea.sflag [#allocation4], %s5706_s28 }
0x110c   : > { %p6923_p12 = pnand %p8970_p9, %p8969_p5 }
0x110e   : > { %7715 = dma.done.wait (!%p6923_p12), %s5707_s26, 3072  }
0x110f   : > { %7717 = vsyncadd (!%p6923_p12), %s5707_s26, 4294964224  ;;  %p18_p2 = scmp.ge.s32.totalorder %s7883_s11, 4   ;;  %s8971_s15 = smov %s7724_s16 }
0x1110   : > { %s8972_s16 = smov %s7728_s17  ;;  %s8973_s17 = smov %s7892_s14 }
0x1111   : > { %s8974_s18 = smov %s7883_s11  ;;  %20 = sbr.rel (!%p18_p2) target bundleno = 6 (0x6), region = 89 }
0x1118   :  { %5712 = vsyncpa [#allocation3], 1 }
0x1119   :  { %5714 = vsyncpa [#allocation3 + $0x1], 1 }
0x111a   :  { %5715 = vsyncpa [#allocation6], 1 }
0x111b   :  { %5716 = vsyncpa [#allocation4], 1 }
0x111c   :  { %5718 = vsyncpa [#allocation4 + $0x1], 1 }

</bundles_post_ra>
